<compile_context>
chip_gen: v6e
topology: v6e:2x2x1
jax: 0.10.0
libtpu: 0.0.40
codegen_flags: <defaults>
</compile_context>

<pallas_src>
import functools
import math

import jax
import jax.numpy as jnp
import numpy as np
from jax import lax
from jax.experimental import pallas as pl
from jax.experimental.pallas import tpu as pltpu


# ----------------------------- Pallas kernel ---------------------------------


def _rcblock_kernel(xT_ref, h0_ref,
                    wih6_ref, bfold6_ref,
                    whhT_f_ref, whhT_b_ref, bhhn_f_ref, bhhn_b_ref,
                    wconv_ref, bconv_ref, gamma_ref, beta_ref,
                    gsel_ref, gselT_ref, bsel_ref, bselT_ref,
                    out_ref,
                    gia_f_ref, gia_b_ref, outf_ref, outb_ref, rpad_ref,
                    *, ks, di, pad, num_groups, bs_pad, nf):
    TBp, H = xT_ref.shape                                  # TBp = nf * bs_pad, H = mfd
    mfd = H
    gs = mfd // num_groups
    H3 = 3 * H

    xT = xT_ref[...]                                       # (TBp, H), row = t*bs_pad + b

    # ---- fused input projection for BOTH directions: one MXU pass over xT ----
    # b_ih (all gates) and b_hh (r/z gates) pre-folded into bfold6 on host;
    # only the n-gate b_hh term stays inside the recurrence.
    gia_all = (jnp.dot(xT, wih6_ref[...], preferred_element_type=jnp.float32)
               + bfold6_ref[...])                          # (TBp, 6H)
    gia_f_ref[...] = gia_all[:, :H3]
    gia_b_ref[...] = gia_all[:, H3:]

    whhT_f = whhT_f_ref[...]
    whhT_b = whhT_b_ref[...]
    bn_f = bhhn_f_ref[...]                                 # (1, H) n-gate hidden bias
    bn_b = bhhn_b_ref[...]

    # ---- interleaved fwd/bwd recurrence; only the h-matmuls are serial --------
    def step(t, carry):
        h_f, h_b = carry
        tb = nf - 1 - t
        rf = pl.multiple_of(t * bs_pad, bs_pad)            # sublane-aligned slabs
        rb = pl.multiple_of(tb * bs_pad, bs_pad)
        gi_f = gia_f_ref[pl.ds(rf, bs_pad), :]             # (bs_pad, 3H)
        gi_b = gia_b_ref[pl.ds(rb, bs_pad), :]

        # issue both recurrent matmuls back-to-back so they pipeline on the MXU
        gh_f = jnp.dot(h_f, whhT_f, preferred_element_type=jnp.float32)
        gh_b = jnp.dot(h_b, whhT_b, preferred_element_type=jnp.float32)

        r_f = jax.nn.sigmoid(gi_f[:, 0:H] + gh_f[:, 0:H])
        z_f = jax.nn.sigmoid(gi_f[:, H:2 * H] + gh_f[:, H:2 * H])
        n_f = jnp.tanh(gi_f[:, 2 * H:] + r_f * (gh_f[:, 2 * H:] + bn_f))
        h_f_new = (1.0 - z_f) * n_f + z_f * h_f

        r_b = jax.nn.sigmoid(gi_b[:, 0:H] + gh_b[:, 0:H])
        z_b = jax.nn.sigmoid(gi_b[:, H:2 * H] + gh_b[:, H:2 * H])
        n_b = jnp.tanh(gi_b[:, 2 * H:] + r_b * (gh_b[:, 2 * H:] + bn_b))
        h_b_new = (1.0 - z_b) * n_b + z_b * h_b

        # slab-aligned stores into private tiles: no RMW on the serial path
        outf_ref[pl.ds(rf, bs_pad), :] = h_f_new
        outb_ref[pl.ds(rb, bs_pad), :] = h_b_new
        return (h_f_new, h_b_new)

    unroll = True if nf <= 16 else 4
    lax.fori_loop(0, nf, step, (h0_ref[0], h0_ref[1]), unroll=unroll)

    # ---- sum both directions once, go channel-major / lane-dense -------------
    r_il = (outf_ref[...] + outb_ref[...]).T               # (mfd, TBp)

    # ---- grouped dilated Conv1d: ks accumulate matmuls on shifted views ------
    PADL = pad * bs_pad
    if PADL > 0:                                           # zero only the pad slabs
        rpad_ref[:, 0:PADL] = jnp.zeros((mfd, PADL), jnp.float32)
        rpad_ref[:, PADL + TBp:PADL + TBp + PADL] = jnp.zeros((mfd, PADL), jnp.float32)
    rpad_ref[:, PADL:PADL + TBp] = r_il

    acc = None
    for k in range(ks):                                    # static, fully unrolled
        off = k * di * bs_pad
        tap = jnp.dot(wconv_ref[k], rpad_ref[:, off:off + TBp],
                      preferred_element_type=jnp.float32)  # (mfd, TBp)
        acc = tap if acc is None else acc + tap
    conv = acc + bconv_ref[...]

    # ---- GroupNorm: E[x^2] - mean^2, stats via small selection matmuls -------
    G = gsel_ref[...]                                      # (num_groups, mfd)
    GT = gselT_ref[...]                                    # (mfd, num_groups)
    B = bsel_ref[...]                                      # (TBp, bs) -- pad cols masked
    BT = bselT_ref[...]                                    # (bs, TBp)
    inv_cnt = 1.0 / float(gs * nf)

    s1 = jnp.dot(jnp.dot(G, conv, preferred_element_type=jnp.float32), B,
                 preferred_element_type=jnp.float32)       # (num_groups, bs)
    s2 = jnp.dot(jnp.dot(G, conv * conv, preferred_element_type=jnp.float32), B,
                 preferred_element_type=jnp.float32)       # independent of s1
    mean_gb = s1 * inv_cnt
    var_gb = s2 * inv_cnt - mean_gb * mean_gb
    rstd_gb = lax.rsqrt(var_gb + 1e-5)
    scale_gb = rstd_gb
    shift_gb = -mean_gb * rstd_gb
    scale_full = jnp.dot(jnp.dot(GT, scale_gb, preferred_element_type=jnp.float32), BT,
                         preferred_element_type=jnp.float32)   # (mfd, TBp)
    shift_full = jnp.dot(jnp.dot(GT, shift_gb, preferred_element_type=jnp.float32), BT,
                         preferred_element_type=jnp.float32)
    cn = (conv * scale_full + shift_full) * gamma_ref[...] + beta_ref[...]

    # ---- LeakyReLU (negative_slope=0.01) + residual ---------------------------
    c_out = jnp.where(cn >= 0, cn, 0.01 * cn)
    out_ref[...] = xT.T + r_il + c_out


# ----------------------------- wrapper / glue ---------------------------------


def _conv_block_diag(w_conv, num_groups):
    """(mfd, gs, ks) grouped conv weight -> (ks, mfd, mfd) block-diagonal matrices."""
    mfd, gs, ks = w_conv.shape
    wc = jnp.zeros((ks, mfd, mfd), jnp.float32)
    for g in range(num_groups):
        sl = slice(g * gs, (g + 1) * gs)
        wc = wc.at[:, sl, sl].set(jnp.transpose(w_conv[sl], (2, 0, 1)))
    return wc


def rcblock_forward(x, h0, p, *, ks, dilation, num_groups):
    bs, mfd, nf = x.shape
    H = mfd
    di = dilation
    # residual add requires conv output length == nf, which needs (ks-1)*di even
    assert (ks - 1) * di % 2 == 0, "(ks-1)*dilation must be even for RCBlock"
    pad = (ks - 1) * di // 2
    gs = mfd // num_groups

    BS_PAD = ((bs + 7) // 8) * 8                            # sublane-aligned batch
    TBp = nf * BS_PAD

    # layout plumbing (host side): time-major rows with padded batch inner
    x_tbm = jnp.transpose(x, (2, 0, 1))                     # (nf, bs, mfd)
    x_tbm = jnp.pad(x_tbm, ((0, 0), (0, BS_PAD - bs), (0, 0)))
    xT = x_tbm.reshape(TBp, mfd)                            # row = t*BS_PAD + b

    h0_t = jnp.transpose(h0, (1, 0, 2))                     # (2, bs, mfd): [0]=fwd, [1]=bwd
    h0_t = jnp.pad(h0_t, ((0, 0), (0, BS_PAD - bs), (0, 0)))

    def fold_bias(b_ih, b_hh):
        # b_ih fully folded; b_hh folded for r/z gates only (n-gate term stays in-loop)
        return b_ih + jnp.concatenate([b_hh[:2 * H], jnp.zeros((H,), jnp.float32)])

    wih6 = jnp.concatenate([p["w_ih_f"].T, p["w_ih_b"].T], axis=1)        # (mfd, 6H)
    bfold6 = jnp.concatenate([fold_bias(p["b_ih_f"], p["b_hh_f"]),
                              fold_bias(p["b_ih_b"], p["b_hh_b"])]).reshape(1, 6 * H)

    wc = _conv_block_diag(p["w_conv"], num_groups)          # (ks, mfd, mfd)

    # GroupNorm selection matrices (group<-channel, batch<-lane; pad columns masked)
    gsel = jnp.repeat(jnp.eye(num_groups, dtype=jnp.float32), gs, axis=1)  # (G, mfd)
    bsel = jnp.tile(jnp.eye(BS_PAD, bs, dtype=jnp.float32), (nf, 1))       # (TBp, bs)

    inputs = (
        xT, h0_t,
        wih6, bfold6,
        p["w_hh_f"].T, p["w_hh_b"].T,
        p["b_hh_f"][2 * H:].reshape(1, H), p["b_hh_b"][2 * H:].reshape(1, H),
        wc,
        p["b_conv"].reshape(mfd, 1),
        p["gamma"].reshape(mfd, 1),
        p["beta"].reshape(mfd, 1),
        gsel, gsel.T, bsel, bsel.T,
    )

    def full(shape):
        n = len(shape)
        return pl.BlockSpec(shape, lambda i, _n=n: (0,) * _n)

    in_specs = [full(a.shape) for a in inputs]
    out_specs = full((mfd, TBp))                            # lane-dense output slab

    kernel = functools.partial(_rcblock_kernel, ks=ks, di=di, pad=pad,
                               num_groups=num_groups, bs_pad=BS_PAD, nf=nf)

    scratch_shapes = [
        pltpu.VMEM((TBp, 3 * mfd), jnp.float32),            # gi_all forward
        pltpu.VMEM((TBp, 3 * mfd), jnp.float32),            # gi_all backward
        pltpu.VMEM((TBp, mfd), jnp.float32),                # forward GRU outputs
        pltpu.VMEM((TBp, mfd), jnp.float32),                # backward GRU outputs
        pltpu.VMEM((mfd, TBp + 2 * pad * BS_PAD), jnp.float32),  # padded conv input
    ]

    # explicit VMEM budget (sized for the real footprint, safe on v7x's 64 MiB)
    io_bytes = sum(int(np.prod(a.shape)) * 4 for a in inputs) + mfd * TBp * 4
    scratch_bytes = 4 * (2 * TBp * 3 * mfd + 2 * TBp * mfd
                         + mfd * (TBp + 2 * pad * BS_PAD))
    vmem_limit = int(min(max(2 * (2 * io_bytes + scratch_bytes), 16 << 20), 48 << 20))

    out_il = pl.pallas_call(
        kernel,
        out_shape=jax.ShapeDtypeStruct((mfd, TBp), jnp.float32),
        grid_spec=pltpu.PrefetchScalarGridSpec(
            num_scalar_prefetch=0,
            grid=(1,),                                      # batch folded into one step
            in_specs=in_specs,
            out_specs=out_specs,
            scratch_shapes=scratch_shapes,
        ),
        compiler_params=pltpu.CompilerParams(
            dimension_semantics=("arbitrary",),
            vmem_limit_bytes=vmem_limit),
    )(*inputs)

    # back to the PyTorch NCL layout (bs, mfd, nf), dropping batch padding
    out = out_il.reshape(mfd, nf, BS_PAD)[:, :, :bs]
    return jnp.transpose(out, (2, 0, 1))


# ----------------------------- pure-JAX reference -----------------------------


def rcblock_ref(x, h0, p, ks, di, num_groups):
    bs, mfd, nf = x.shape
    H = mfd
    pad = (ks - 1) * di // 2

    def gru_dir(w_ih, w_hh, b_ih, b_hh, h0d, reverse):
        seq = jnp.swapaxes(x, 1, 2)                         # (bs, nf, mfd)
        if reverse:
            seq = seq[:, ::-1, :]

        def step(h, xt):
            gi = xt @ w_ih.T + b_ih
            gh = h @ w_hh.T + b_hh
            r = jax.nn.sigmoid(gi[:, :H] + gh[:, :H])
            z = jax.nn.sigmoid(gi[:, H:2 * H] + gh[:, H:2 * H])
            n = jnp.tanh(gi[:, 2 * H:] + r * gh[:, 2 * H:])
            hn = (1 - z) * n + z * h
            return hn, hn

        _, outs = lax.scan(step, h0d, jnp.swapaxes(seq, 0, 1))
        outs = jnp.swapaxes(outs, 0, 1)
        if reverse:
            outs = outs[:, ::-1, :]
        return outs

    out_f = gru_dir(p["w_ih_f"], p["w_hh_f"], p["b_ih_f"], p["b_hh_f"], h0[:, 0, :], False)
    out_b = gru_dir(p["w_ih_b"], p["w_hh_b"], p["b_ih_b"], p["b_hh_b"], h0[:, 1, :], True)
    r = jnp.swapaxes(out_f + out_b, 1, 2)                   # (bs, mfd, nf)

    wc = _conv_block_diag(p["w_conv"], num_groups)
    rpad = jnp.pad(r, ((0, 0), (0, 0), (pad, pad)))
    c = p["b_conv"][None, :, None]
    for k in range(ks):
        c = c + jnp.einsum("oi,bit->bot", wc[k], rpad[:, :, k * di:k * di + nf])

    gs = mfd // num_groups
    c3 = c.reshape(bs, num_groups, gs, nf)
    mean = c3.mean(axis=(2, 3), keepdims=True)
    var = jnp.mean(jnp.square(c3 - mean), axis=(2, 3), keepdims=True)
    cn = ((c3 - mean) / jnp.sqrt(var + 1e-5)).reshape(bs, mfd, nf)
    cn = cn * p["gamma"][None, :, None] + p["beta"][None, :, None]
    c_out = jnp.where(cn >= 0, cn, 0.01 * cn)
    return x + r + c_out


# ----------------------------- parameter init ---------------------------------


def init_params(key, mfd, ks, num_groups):
    gs = mfd // num_groups
    keys = jax.random.split(key, 12)
    su = 1.0 / math.sqrt(mfd)
    cb = 1.0 / math.sqrt(gs * ks)

    def u(k, shape, bound):
        return jax.random.uniform(k, shape, jnp.float32, -bound, bound)

    return {
        "w_ih_f": u(keys[0], (3 * mfd, mfd), su),
        "w_hh_f": u(keys[1], (3 * mfd, mfd), su),
        "b_ih_f": u(keys[2], (3 * mfd,), su),
        "b_hh_f": u(keys[3], (3 * mfd,), su),
        "w_ih_b": u(keys[4], (3 * mfd, mfd), su),
        "w_hh_b": u(keys[5], (3 * mfd, mfd), su),
        "b_ih_b": u(keys[6], (3 * mfd,), su),
        "b_hh_b": u(keys[7], (3 * mfd,), su),
        "w_conv": u(keys[8], (mfd, gs, ks), cb),
        "b_conv": u(keys[9], (mfd,), cb),
        # GroupNorm affine (PyTorch default is ones/zeros; perturbed to exercise the path)
        "gamma": 1.0 + 0.1 * jax.random.normal(keys[10], (mfd,), jnp.float32),
        "beta": 0.1 * jax.random.normal(keys[11], (mfd,), jnp.float32),
    }


# ----------------------------------- main --------------------------------------


if __name__ == "__main__":
    bs, mfd, nf = 2, 32, 16          # feat_dim = mfd = 32, sequence length nf = 16
    ks, dilation, num_groups = 3, 1, 4

    key = jax.random.PRNGKey(0)
    kx, kh, kp = jax.random.split(key, 3)

    x = jax.random.normal(kx, (bs, mfd, nf), jnp.float32)
    # PyTorch's init_hidden draws N(0,1) each forward; done here deterministically.
    h0 = jax.random.normal(kh, (bs, 2, mfd), jnp.float32)        # [:, 0]=fwd, [:, 1]=bwd
    params = init_params(kp, mfd, ks, num_groups)

    out = rcblock_forward(x, h0, params, ks=ks, dilation=dilation, num_groups=num_groups)
    out = jax.block_until_ready(out)

    ref = rcblock_ref(x, h0, params, ks, dilation, num_groups)
    np.testing.assert_allclose(np.asarray(out), np.asarray(ref), rtol=2e-3, atol=2e-3)

    print("KERNEL_OK")
</pallas_src>

<mosaic_0001>
module attributes {stable_mosaic.version = 11 : i64} {
  func.func @_rcblock_kernel(%arg0: i32, %arg1: memref<128x32xf32, #tpu.memory_space<vmem>>, %arg2: memref<2x8x32xf32, #tpu.memory_space<vmem>>, %arg3: memref<32x192xf32, #tpu.memory_space<vmem>>, %arg4: memref<1x192xf32, #tpu.memory_space<vmem>>, %arg5: memref<32x96xf32, #tpu.memory_space<vmem>>, %arg6: memref<32x96xf32, #tpu.memory_space<vmem>>, %arg7: memref<1x32xf32, #tpu.memory_space<vmem>>, %arg8: memref<1x32xf32, #tpu.memory_space<vmem>>, %arg9: memref<3x32x32xf32, #tpu.memory_space<vmem>>, %arg10: memref<32x1xf32, #tpu.memory_space<vmem>>, %arg11: memref<32x1xf32, #tpu.memory_space<vmem>>, %arg12: memref<32x1xf32, #tpu.memory_space<vmem>>, %arg13: memref<4x32xf32, #tpu.memory_space<vmem>>, %arg14: memref<32x4xf32, #tpu.memory_space<vmem>>, %arg15: memref<128x2xf32, #tpu.memory_space<vmem>>, %arg16: memref<2x128xf32, #tpu.memory_space<vmem>>, %arg17: memref<32x128xf32, #tpu.memory_space<vmem>>, %arg18: memref<128x96xf32, #tpu.memory_space<vmem>>, %arg19: memref<128x96xf32, #tpu.memory_space<vmem>>, %arg20: memref<128x32xf32, #tpu.memory_space<vmem>>, %arg21: memref<128x32xf32, #tpu.memory_space<vmem>>, %arg22: memref<32x144xf32, #tpu.memory_space<vmem>>) attributes {dimension_semantics = [#tpu.dimension_semantics<arbitrary>], iteration_bounds = array<i64: 1>, scalar_prefetch = 0 : i64, scratch_operands = 5 : i64, tpu.core_type = #tpu.core_type<tc>, window_params = [{pipeline_mode = #tpu.pipeline_mode<synchronous>, transform_indices = @transform_0, window_bounds = array<i64: 128, 32>}, {pipeline_mode = #tpu.pipeline_mode<synchronous>, transform_indices = @transform_1, window_bounds = array<i64: 2, 8, 32>}, {pipeline_mode = #tpu.pipeline_mode<synchronous>, transform_indices = @transform_2, window_bounds = array<i64: 32, 192>}, {pipeline_mode = #tpu.pipeline_mode<synchronous>, transform_indices = @transform_3, window_bounds = array<i64: 1, 192>}, {pipeline_mode = #tpu.pipeline_mode<synchronous>, transform_indices = @transform_4, window_bounds = array<i64: 32, 96>}, {pipeline_mode = #tpu.pipeline_mode<synchronous>, transform_indices = @transform_5, window_bounds = array<i64: 32, 96>}, {pipeline_mode = #tpu.pipeline_mode<synchronous>, transform_indices = @transform_6, window_bounds = array<i64: 1, 32>}, {pipeline_mode = #tpu.pipeline_mode<synchronous>, transform_indices = @transform_7, window_bounds = array<i64: 1, 32>}, {pipeline_mode = #tpu.pipeline_mode<synchronous>, transform_indices = @transform_8, window_bounds = array<i64: 3, 32, 32>}, {pipeline_mode = #tpu.pipeline_mode<synchronous>, transform_indices = @transform_9, window_bounds = array<i64: 32, 1>}, {pipeline_mode = #tpu.pipeline_mode<synchronous>, transform_indices = @transform_10, window_bounds = array<i64: 32, 1>}, {pipeline_mode = #tpu.pipeline_mode<synchronous>, transform_indices = @transform_11, window_bounds = array<i64: 32, 1>}, {pipeline_mode = #tpu.pipeline_mode<synchronous>, transform_indices = @transform_12, window_bounds = array<i64: 4, 32>}, {pipeline_mode = #tpu.pipeline_mode<synchronous>, transform_indices = @transform_13, window_bounds = array<i64: 32, 4>}, {pipeline_mode = #tpu.pipeline_mode<synchronous>, transform_indices = @transform_14, window_bounds = array<i64: 128, 2>}, {pipeline_mode = #tpu.pipeline_mode<synchronous>, transform_indices = @transform_15, window_bounds = array<i64: 2, 128>}, {pipeline_mode = #tpu.pipeline_mode<synchronous>, transform_indices = @transform_16, window_bounds = array<i64: 32, 128>}]} {
    %c0 = arith.constant 0 : index
    %c0_0 = arith.constant 0 : index
    %0 = vector.load %arg1[%c0, %c0_0] : memref<128x32xf32, #tpu.memory_space<vmem>>, vector<128x32xf32>
    %c0_1 = arith.constant 0 : index
    %c0_2 = arith.constant 0 : index
    %1 = vector.load %arg3[%c0_1, %c0_2] : memref<32x192xf32, #tpu.memory_space<vmem>>, vector<32x192xf32>
    %cst = arith.constant dense<0.000000e+00> : vector<128x192xf32>
    %2 = tpu.matmul %0, %1, %cst {dimension_numbers = #tpu.dot_dimension_numbers<[1], [0], [0], [1], [0, 0, 1, 1], [], []>} : vector<128x32xf32>, vector<32x192xf32>, vector<128x192xf32> -> vector<128x192xf32>
    %c0_3 = arith.constant 0 : index
    %c0_4 = arith.constant 0 : index
    %3 = vector.load %arg4[%c0_3, %c0_4] : memref<1x192xf32, #tpu.memory_space<vmem>>, vector<1x192xf32>
    %4 = vector.broadcast %3 : vector<1x192xf32> to vector<128x192xf32>
    %5 = arith.addf %2, %4 : vector<128x192xf32>
    %6 = vector.extract_strided_slice %5 {offsets = [0, 0], sizes = [128, 96], strides = [1, 1]} : vector<128x192xf32> to vector<128x96xf32>
    %c0_5 = arith.constant 0 : index
    %c0_6 = arith.constant 0 : index
    %7 = vector.load %arg18[%c0_5, %c0_6] : memref<128x96xf32, #tpu.memory_space<vmem>>, vector<128x96xf32>
    tpu.vector_store %arg18[%c0_5, %c0_6], %6 {strides = array<i32>} : memref<128x96xf32, #tpu.memory_space<vmem>>, vector<128x96xf32>,
    %8 = vector.extract_strided_slice %5 {offsets = [0, 96], sizes = [128, 96], strides = [1, 1]} : vector<128x192xf32> to vector<128x96xf32>
    %c0_7 = arith.constant 0 : index
    %c0_8 = arith.constant 0 : index
    %9 = vector.load %arg19[%c0_7, %c0_8] : memref<128x96xf32, #tpu.memory_space<vmem>>, vector<128x96xf32>
    tpu.vector_store %arg19[%c0_7, %c0_8], %8 {strides = array<i32>} : memref<128x96xf32, #tpu.memory_space<vmem>>, vector<128x96xf32>,
    %c0_9 = arith.constant 0 : index
    %c0_10 = arith.constant 0 : index
    %10 = vector.load %arg5[%c0_9, %c0_10] : memref<32x96xf32, #tpu.memory_space<vmem>>, vector<32x96xf32>
    %c0_11 = arith.constant 0 : index
    %c0_12 = arith.constant 0 : index
    %11 = vector.load %arg6[%c0_11, %c0_12] : memref<32x96xf32, #tpu.memory_space<vmem>>, vector<32x96xf32>
    %c0_13 = arith.constant 0 : index
    %c0_14 = arith.constant 0 : index
    %12 = vector.load %arg7[%c0_13, %c0_14] : memref<1x32xf32, #tpu.memory_space<vmem>>, vector<1x32xf32>
    %c0_15 = arith.constant 0 : index
    %c0_16 = arith.constant 0 : index
    %13 = vector.load %arg8[%c0_15, %c0_16] : memref<1x32xf32, #tpu.memory_space<vmem>>, vector<1x32xf32>
    %c0_17 = arith.constant 0 : index
    %c0_18 = arith.constant 0 : index
    %c0_19 = arith.constant 0 : index
    %14 = vector.load %arg2[%c0_17, %c0_18, %c0_19] : memref<2x8x32xf32, #tpu.memory_space<vmem>>, vector<1x8x32xf32>
    %15 = vector.shape_cast %14 : vector<1x8x32xf32> to vector<8x32xf32>
    %c1 = arith.constant 1 : index
    %c0_20 = arith.constant 0 : index
    %c0_21 = arith.constant 0 : index
    %16 = vector.load %arg2[%c1, %c0_20, %c0_21] : memref<2x8x32xf32, #tpu.memory_space<vmem>>, vector<1x8x32xf32>
    %17 = vector.shape_cast %16 : vector<1x8x32xf32> to vector<8x32xf32>
    %c0_i32 = arith.constant 0 : i32
    %c15_i32 = arith.constant 15 : i32
    %18 = arith.subi %c15_i32, %c0_i32 : i32
    %c8_i32 = arith.constant 8 : i32
    %19 = arith.muli %c0_i32, %c8_i32 : i32
    %20 = tpu.assume_multiple %19, 8 : i32
    %c8_i32_22 = arith.constant 8 : i32
    %21 = arith.muli %18, %c8_i32_22 : i32
    %22 = tpu.assume_multiple %21, 8 : i32
    %23 = arith.index_cast %20 : i32 to index
    %c0_23 = arith.constant 0 : index
    %24 = vector.load %arg18[%23, %c0_23] : memref<128x96xf32, #tpu.memory_space<vmem>>, vector<8x96xf32>
    %25 = arith.index_cast %22 : i32 to index
    %c0_24 = arith.constant 0 : index
    %26 = vector.load %arg19[%25, %c0_24] : memref<128x96xf32, #tpu.memory_space<vmem>>, vector<8x96xf32>
    %cst_25 = arith.constant dense<0.000000e+00> : vector<8x96xf32>
    %27 = tpu.matmul %15, %10, %cst_25 {dimension_numbers = #tpu.dot_dimension_numbers<[1], [0], [0], [1], [0, 0, 1, 1], [], []>} : vector<8x32xf32>, vector<32x96xf32>, vector<8x96xf32> -> vector<8x96xf32>
    %cst_26 = arith.constant dense<0.000000e+00> : vector<8x96xf32>
    %28 = tpu.matmul %17, %11, %cst_26 {dimension_numbers = #tpu.dot_dimension_numbers<[1], [0], [0], [1], [0, 0, 1, 1], [], []>} : vector<8x32xf32>, vector<32x96xf32>, vector<8x96xf32> -> vector<8x96xf32>
    %29 = vector.extract_strided_slice %24 {offsets = [0, 0], sizes = [8, 32], strides = [1, 1]} : vector<8x96xf32> to vector<8x32xf32>
    %30 = vector.extract_strided_slice %27 {offsets = [0, 0], sizes = [8, 32], strides = [1, 1]} : vector<8x96xf32> to vector<8x32xf32>
    %31 = arith.addf %29, %30 : vector<8x32xf32>
    %32 = arith.negf %31 : vector<8x32xf32>
    %33 = math.exp %32 : vector<8x32xf32>
    %cst_27 = arith.constant 1.000000e+00 : f32
    %34 = vector.broadcast %cst_27 : f32 to vector<8x32xf32>
    %35 = arith.addf %34, %33 : vector<8x32xf32>
    %36 = arith.divf %34, %35 : vector<8x32xf32>
    %37 = vector.extract_strided_slice %24 {offsets = [0, 32], sizes = [8, 32], strides = [1, 1]} : vector<8x96xf32> to vector<8x32xf32>
    %38 = vector.extract_strided_slice %27 {offsets = [0, 32], sizes = [8, 32], strides = [1, 1]} : vector<8x96xf32> to vector<8x32xf32>
    %39 = arith.addf %37, %38 : vector<8x32xf32>
    %40 = arith.negf %39 : vector<8x32xf32>
    %41 = math.exp %40 : vector<8x32xf32>
    %cst_28 = arith.constant 1.000000e+00 : f32
    %42 = vector.broadcast %cst_28 : f32 to vector<8x32xf32>
    %43 = arith.addf %42, %41 : vector<8x32xf32>
    %44 = arith.divf %42, %43 : vector<8x32xf32>
    %45 = vector.extract_strided_slice %24 {offsets = [0, 64], sizes = [8, 32], strides = [1, 1]} : vector<8x96xf32> to vector<8x32xf32>
    %46 = vector.extract_strided_slice %27 {offsets = [0, 64], sizes = [8, 32], strides = [1, 1]} : vector<8x96xf32> to vector<8x32xf32>
    %47 = vector.broadcast %12 : vector<1x32xf32> to vector<8x32xf32>
    %48 = arith.addf %46, %47 : vector<8x32xf32>
    %49 = arith.mulf %36, %48 : vector<8x32xf32>
    %50 = arith.addf %45, %49 : vector<8x32xf32>
    %51 = math.tanh %50 : vector<8x32xf32>
    %cst_29 = arith.constant 1.000000e+00 : f32
    %52 = vector.broadcast %cst_29 : f32 to vector<8x32xf32>
    %53 = arith.subf %52, %44 : vector<8x32xf32>
    %54 = arith.mulf %53, %51 : vector<8x32xf32>
    %55 = arith.mulf %44, %15 : vector<8x32xf32>
    %56 = arith.addf %54, %55 : vector<8x32xf32>
    %57 = vector.extract_strided_slice %26 {offsets = [0, 0], sizes = [8, 32], strides = [1, 1]} : vector<8x96xf32> to vector<8x32xf32>
    %58 = vector.extract_strided_slice %28 {offsets = [0, 0], sizes = [8, 32], strides = [1, 1]} : vector<8x96xf32> to vector<8x32xf32>
    %59 = arith.addf %57, %58 : vector<8x32xf32>
    %60 = arith.negf %59 : vector<8x32xf32>
    %61 = math.exp %60 : vector<8x32xf32>
    %cst_30 = arith.constant 1.000000e+00 : f32
    %62 = vector.broadcast %cst_30 : f32 to vector<8x32xf32>
    %63 = arith.addf %62, %61 : vector<8x32xf32>
    %64 = arith.divf %62, %63 : vector<8x32xf32>
    %65 = vector.extract_strided_slice %26 {offsets = [0, 32], sizes = [8, 32], strides = [1, 1]} : vector<8x96xf32> to vector<8x32xf32>
    %66 = vector.extract_strided_slice %28 {offsets = [0, 32], sizes = [8, 32], strides = [1, 1]} : vector<8x96xf32> to vector<8x32xf32>
    %67 = arith.addf %65, %66 : vector<8x32xf32>
    %68 = arith.negf %67 : vector<8x32xf32>
    %69 = math.exp %68 : vector<8x32xf32>
    %cst_31 = arith.constant 1.000000e+00 : f32
    %70 = vector.broadcast %cst_31 : f32 to vector<8x32xf32>
    %71 = arith.addf %70, %69 : vector<8x32xf32>
    %72 = arith.divf %70, %71 : vector<8x32xf32>
    %73 = vector.extract_strided_slice %26 {offsets = [0, 64], sizes = [8, 32], strides = [1, 1]} : vector<8x96xf32> to vector<8x32xf32>
    %74 = vector.extract_strided_slice %28 {offsets = [0, 64], sizes = [8, 32], strides = [1, 1]} : vector<8x96xf32> to vector<8x32xf32>
    %75 = vector.broadcast %13 : vector<1x32xf32> to vector<8x32xf32>
    %76 = arith.addf %74, %75 : vector<8x32xf32>
    %77 = arith.mulf %64, %76 : vector<8x32xf32>
    %78 = arith.addf %73, %77 : vector<8x32xf32>
    %79 = math.tanh %78 : vector<8x32xf32>
    %cst_32 = arith.constant 1.000000e+00 : f32
    %80 = vector.broadcast %cst_32 : f32 to vector<8x32xf32>
    %81 = arith.subf %80, %72 : vector<8x32xf32>
    %82 = arith.mulf %81, %79 : vector<8x32xf32>
    %83 = arith.mulf %72, %17 : vector<8x32xf32>
    %84 = arith.addf %82, %83 : vector<8x32xf32>
    %85 = arith.index_cast %20 : i32 to index
    %c0_33 = arith.constant 0 : index
    %86 = vector.load %arg20[%85, %c0_33] : memref<128x32xf32, #tpu.memory_space<vmem>>, vector<8x32xf32>
    tpu.vector_store %arg20[%85, %c0_33], %56 {strides = array<i32>} : memref<128x32xf32, #tpu.memory_space<vmem>>, vector<8x32xf32>,
    %87 = arith.index_cast %22 : i32 to index
    %c0_34 = arith.constant 0 : index
    %88 = vector.load %arg21[%87, %c0_34] : memref<128x32xf32, #tpu.memory_space<vmem>>, vector<8x32xf32>
    tpu.vector_store %arg21[%87, %c0_34], %84 {strides = array<i32>} : memref<128x32xf32, #tpu.memory_space<vmem>>, vector<8x32xf32>,
    %c1_i32 = arith.constant 1 : i32
    %c15_i32_35 = arith.constant 15 : i32
    %89 = arith.subi %c15_i32_35, %c1_i32 : i32
    %c8_i32_36 = arith.constant 8 : i32
    %90 = arith.muli %c1_i32, %c8_i32_36 : i32
    %91 = tpu.assume_multiple %90, 8 : i32
    %c8_i32_37 = arith.constant 8 : i32
    %92 = arith.muli %89, %c8_i32_37 : i32
    %93 = tpu.assume_multiple %92, 8 : i32
    %94 = arith.index_cast %91 : i32 to index
    %c0_38 = arith.constant 0 : index
    %95 = vector.load %arg18[%94, %c0_38] : memref<128x96xf32, #tpu.memory_space<vmem>>, vector<8x96xf32>
    %96 = arith.index_cast %93 : i32 to index
    %c0_39 = arith.constant 0 : index
    %97 = vector.load %arg19[%96, %c0_39] : memref<128x96xf32, #tpu.memory_space<vmem>>, vector<8x96xf32>
    %cst_40 = arith.constant dense<0.000000e+00> : vector<8x96xf32>
    %98 = tpu.matmul %56, %10, %cst_40 {dimension_numbers = #tpu.dot_dimension_numbers<[1], [0], [0], [1], [0, 0, 1, 1], [], []>} : vector<8x32xf32>, vector<32x96xf32>, vector<8x96xf32> -> vector<8x96xf32>
    %cst_41 = arith.constant dense<0.000000e+00> : vector<8x96xf32>
    %99 = tpu.matmul %84, %11, %cst_41 {dimension_numbers = #tpu.dot_dimension_numbers<[1], [0], [0], [1], [0, 0, 1, 1], [], []>} : vector<8x32xf32>, vector<32x96xf32>, vector<8x96xf32> -> vector<8x96xf32>
    %100 = vector.extract_strided_slice %95 {offsets = [0, 0], sizes = [8, 32], strides = [1, 1]} : vector<8x96xf32> to vector<8x32xf32>
    %101 = vector.extract_strided_slice %98 {offsets = [0, 0], sizes = [8, 32], strides = [1, 1]} : vector<8x96xf32> to vector<8x32xf32>
    %102 = arith.addf %100, %101 : vector<8x32xf32>
    %103 = arith.negf %102 : vector<8x32xf32>
    %104 = math.exp %103 : vector<8x32xf32>
    %cst_42 = arith.constant 1.000000e+00 : f32
    %105 = vector.broadcast %cst_42 : f32 to vector<8x32xf32>
    %106 = arith.addf %105, %104 : vector<8x32xf32>
    %107 = arith.divf %105, %106 : vector<8x32xf32>
    %108 = vector.extract_strided_slice %95 {offsets = [0, 32], sizes = [8, 32], strides = [1, 1]} : vector<8x96xf32> to vector<8x32xf32>
    %109 = vector.extract_strided_slice %98 {offsets = [0, 32], sizes = [8, 32], strides = [1, 1]} : vector<8x96xf32> to vector<8x32xf32>
    %110 = arith.addf %108, %109 : vector<8x32xf32>
    %111 = arith.negf %110 : vector<8x32xf32>
    %112 = math.exp %111 : vector<8x32xf32>
    %cst_43 = arith.constant 1.000000e+00 : f32
    %113 = vector.broadcast %cst_43 : f32 to vector<8x32xf32>
    %114 = arith.addf %113, %112 : vector<8x32xf32>
    %115 = arith.divf %113, %114 : vector<8x32xf32>
    %116 = vector.extract_strided_slice %95 {offsets = [0, 64], sizes = [8, 32], strides = [1, 1]} : vector<8x96xf32> to vector<8x32xf32>
    %117 = vector.extract_strided_slice %98 {offsets = [0, 64], sizes = [8, 32], strides = [1, 1]} : vector<8x96xf32> to vector<8x32xf32>
    %118 = vector.broadcast %12 : vector<1x32xf32> to vector<8x32xf32>
    %119 = arith.addf %117, %118 : vector<8x32xf32>
    %120 = arith.mulf %107, %119 : vector<8x32xf32>
    %121 = arith.addf %116, %120 : vector<8x32xf32>
    %122 = math.tanh %121 : vector<8x32xf32>
    %cst_44 = arith.constant 1.000000e+00 : f32
    %123 = vector.broadcast %cst_44 : f32 to vector<8x32xf32>
    %124 = arith.subf %123, %115 : vector<8x32xf32>
    %125 = arith.mulf %124, %122 : vector<8x32xf32>
    %126 = arith.mulf %115, %56 : vector<8x32xf32>
    %127 = arith.addf %125, %126 : vector<8x32xf32>
    %128 = vector.extract_strided_slice %97 {offsets = [0, 0], sizes = [8, 32], strides = [1, 1]} : vector<8x96xf32> to vector<8x32xf32>
    %129 = vector.extract_strided_slice %99 {offsets = [0, 0], sizes = [8, 32], strides = [1, 1]} : vector<8x96xf32> to vector<8x32xf32>
    %130 = arith.addf %128, %129 : vector<8x32xf32>
    %131 = arith.negf %130 : vector<8x32xf32>
    %132 = math.exp %131 : vector<8x32xf32>
    %cst_45 = arith.constant 1.000000e+00 : f32
    %133 = vector.broadcast %cst_45 : f32 to vector<8x32xf32>
    %134 = arith.addf %133, %132 : vector<8x32xf32>
    %135 = arith.divf %133, %134 : vector<8x32xf32>
    %136 = vector.extract_strided_slice %97 {offsets = [0, 32], sizes = [8, 32], strides = [1, 1]} : vector<8x96xf32> to vector<8x32xf32>
    %137 = vector.extract_strided_slice %99 {offsets = [0, 32], sizes = [8, 32], strides = [1, 1]} : vector<8x96xf32> to vector<8x32xf32>
    %138 = arith.addf %136, %137 : vector<8x32xf32>
    %139 = arith.negf %138 : vector<8x32xf32>
    %140 = math.exp %139 : vector<8x32xf32>
    %cst_46 = arith.constant 1.000000e+00 : f32
    %141 = vector.broadcast %cst_46 : f32 to vector<8x32xf32>
    %142 = arith.addf %141, %140 : vector<8x32xf32>
    %143 = arith.divf %141, %142 : vector<8x32xf32>
    %144 = vector.extract_strided_slice %97 {offsets = [0, 64], sizes = [8, 32], strides = [1, 1]} : vector<8x96xf32> to vector<8x32xf32>
    %145 = vector.extract_strided_slice %99 {offsets = [0, 64], sizes = [8, 32], strides = [1, 1]} : vector<8x96xf32> to vector<8x32xf32>
    %146 = vector.broadcast %13 : vector<1x32xf32> to vector<8x32xf32>
    %147 = arith.addf %145, %146 : vector<8x32xf32>
    %148 = arith.mulf %135, %147 : vector<8x32xf32>
    %149 = arith.addf %144, %148 : vector<8x32xf32>
    %150 = math.tanh %149 : vector<8x32xf32>
    %cst_47 = arith.constant 1.000000e+00 : f32
    %151 = vector.broadcast %cst_47 : f32 to vector<8x32xf32>
    %152 = arith.subf %151, %143 : vector<8x32xf32>
    %153 = arith.mulf %152, %150 : vector<8x32xf32>
    %154 = arith.mulf %143, %84 : vector<8x32xf32>
    %155 = arith.addf %153, %154 : vector<8x32xf32>
    %156 = arith.index_cast %91 : i32 to index
    %c0_48 = arith.constant 0 : index
    %157 = vector.load %arg20[%156, %c0_48] : memref<128x32xf32, #tpu.memory_space<vmem>>, vector<8x32xf32>
    tpu.vector_store %arg20[%156, %c0_48], %127 {strides = array<i32>} : memref<128x32xf32, #tpu.memory_space<vmem>>, vector<8x32xf32>,
    %158 = arith.index_cast %93 : i32 to index
    %c0_49 = arith.constant 0 : index
    %159 = vector.load %arg21[%158, %c0_49] : memref<128x32xf32, #tpu.memory_space<vmem>>, vector<8x32xf32>
    tpu.vector_store %arg21[%158, %c0_49], %155 {strides = array<i32>} : memref<128x32xf32, #tpu.memory_space<vmem>>, vector<8x32xf32>,
    %c2_i32 = arith.constant 2 : i32
    %c15_i32_50 = arith.constant 15 : i32
    %160 = arith.subi %c15_i32_50, %c2_i32 : i32
    %c8_i32_51 = arith.constant 8 : i32
    %161 = arith.muli %c2_i32, %c8_i32_51 : i32
    %162 = tpu.assume_multiple %161, 8 : i32
    %c8_i32_52 = arith.constant 8 : i32
    %163 = arith.muli %160, %c8_i32_52 : i32
    %164 = tpu.assume_multiple %163, 8 : i32
    %165 = arith.index_cast %162 : i32 to index
    %c0_53 = arith.constant 0 : index
    %166 = vector.load %arg18[%165, %c0_53] : memref<128x96xf32, #tpu.memory_space<vmem>>, vector<8x96xf32>
    %167 = arith.index_cast %164 : i32 to index
    %c0_54 = arith.constant 0 : index
    %168 = vector.load %arg19[%167, %c0_54] : memref<128x96xf32, #tpu.memory_space<vmem>>, vector<8x96xf32>
    %cst_55 = arith.constant dense<0.000000e+00> : vector<8x96xf32>
    %169 = tpu.matmul %127, %10, %cst_55 {dimension_numbers = #tpu.dot_dimension_numbers<[1], [0], [0], [1], [0, 0, 1, 1], [], []>} : vector<8x32xf32>, vector<32x96xf32>, vector<8x96xf32> -> vector<8x96xf32>
    %cst_56 = arith.constant dense<0.000000e+00> : vector<8x96xf32>
    %170 = tpu.matmul %155, %11, %cst_56 {dimension_numbers = #tpu.dot_dimension_numbers<[1], [0], [0], [1], [0, 0, 1, 1], [], []>} : vector<8x32xf32>, vector<32x96xf32>, vector<8x96xf32> -> vector<8x96xf32>
    %171 = vector.extract_strided_slice %166 {offsets = [0, 0], sizes = [8, 32], strides = [1, 1]} : vector<8x96xf32> to vector<8x32xf32>
    %172 = vector.extract_strided_slice %169 {offsets = [0, 0], sizes = [8, 32], strides = [1, 1]} : vector<8x96xf32> to vector<8x32xf32>
    %173 = arith.addf %171, %172 : vector<8x32xf32>
    %174 = arith.negf %173 : vector<8x32xf32>
    %175 = math.exp %174 : vector<8x32xf32>
    %cst_57 = arith.constant 1.000000e+00 : f32
    %176 = vector.broadcast %cst_57 : f32 to vector<8x32xf32>
    %177 = arith.addf %176, %175 : vector<8x32xf32>
    %178 = arith.divf %176, %177 : vector<8x32xf32>
    %179 = vector.extract_strided_slice %166 {offsets = [0, 32], sizes = [8, 32], strides = [1, 1]} : vector<8x96xf32> to vector<8x32xf32>
    %180 = vector.extract_strided_slice %169 {offsets = [0, 32], sizes = [8, 32], strides = [1, 1]} : vector<8x96xf32> to vector<8x32xf32>
    %181 = arith.addf %179, %180 : vector<8x32xf32>
    %182 = arith.negf %181 : vector<8x32xf32>
    %183 = math.exp %182 : vector<8x32xf32>
    %cst_58 = arith.constant 1.000000e+00 : f32
    %184 = vector.broadcast %cst_58 : f32 to vector<8x32xf32>
    %185 = arith.addf %184, %183 : vector<8x32xf32>
    %186 = arith.divf %184, %185 : vector<8x32xf32>
    %187 = vector.extract_strided_slice %166 {offsets = [0, 64], sizes = [8, 32], strides = [1, 1]} : vector<8x96xf32> to vector<8x32xf32>
    %188 = vector.extract_strided_slice %169 {offsets = [0, 64], sizes = [8, 32], strides = [1, 1]} : vector<8x96xf32> to vector<8x32xf32>
    %189 = vector.broadcast %12 : vector<1x32xf32> to vector<8x32xf32>
    %190 = arith.addf %188, %189 : vector<8x32xf32>
    %191 = arith.mulf %178, %190 : vector<8x32xf32>
    %192 = arith.addf %187, %191 : vector<8x32xf32>
    %193 = math.tanh %192 : vector<8x32xf32>
    %cst_59 = arith.constant 1.000000e+00 : f32
    %194 = vector.broadcast %cst_59 : f32 to vector<8x32xf32>
    %195 = arith.subf %194, %186 : vector<8x32xf32>
    %196 = arith.mulf %195, %193 : vector<8x32xf32>
    %197 = arith.mulf %186, %127 : vector<8x32xf32>
    %198 = arith.addf %196, %197 : vector<8x32xf32>
    %199 = vector.extract_strided_slice %168 {offsets = [0, 0], sizes = [8, 32], strides = [1, 1]} : vector<8x96xf32> to vector<8x32xf32>
    %200 = vector.extract_strided_slice %170 {offsets = [0, 0], sizes = [8, 32], strides = [1, 1]} : vector<8x96xf32> to vector<8x32xf32>
    %201 = arith.addf %199, %200 : vector<8x32xf32>
    %202 = arith.negf %201 : vector<8x32xf32>
    %203 = math.exp %202 : vector<8x32xf32>
    %cst_60 = arith.constant 1.000000e+00 : f32
    %204 = vector.broadcast %cst_60 : f32 to vector<8x32xf32>
    %205 = arith.addf %204, %203 : vector<8x32xf32>
    %206 = arith.divf %204, %205 : vector<8x32xf32>
    %207 = vector.extract_strided_slice %168 {offsets = [0, 32], sizes = [8, 32], strides = [1, 1]} : vector<8x96xf32> to vector<8x32xf32>
    %208 = vector.extract_strided_slice %170 {offsets = [0, 32], sizes = [8, 32], strides = [1, 1]} : vector<8x96xf32> to vector<8x32xf32>
    %209 = arith.addf %207, %208 : vector<8x32xf32>
    %210 = arith.negf %209 : vector<8x32xf32>
    %211 = math.exp %210 : vector<8x32xf32>
    %cst_61 = arith.constant 1.000000e+00 : f32
    %212 = vector.broadcast %cst_61 : f32 to vector<8x32xf32>
    %213 = arith.addf %212, %211 : vector<8x32xf32>
    %214 = arith.divf %212, %213 : vector<8x32xf32>
    %215 = vector.extract_strided_slice %168 {offsets = [0, 64], sizes = [8, 32], strides = [1, 1]} : vector<8x96xf32> to vector<8x32xf32>
    %216 = vector.extract_strided_slice %170 {offsets = [0, 64], sizes = [8, 32], strides = [1, 1]} : vector<8x96xf32> to vector<8x32xf32>
    %217 = vector.broadcast %13 : vector<1x32xf32> to vector<8x32xf32>
    %218 = arith.addf %216, %217 : vector<8x32xf32>
    %219 = arith.mulf %206, %218 : vector<8x32xf32>
    %220 = arith.addf %215, %219 : vector<8x32xf32>
    %221 = math.tanh %220 : vector<8x32xf32>
    %cst_62 = arith.constant 1.000000e+00 : f32
    %222 = vector.broadcast %cst_62 : f32 to vector<8x32xf32>
    %223 = arith.subf %222, %214 : vector<8x32xf32>
    %224 = arith.mulf %223, %221 : vector<8x32xf32>
    %225 = arith.mulf %214, %155 : vector<8x32xf32>
    %226 = arith.addf %224, %225 : vector<8x32xf32>
    %227 = arith.index_cast %162 : i32 to index
    %c0_63 = arith.constant 0 : index
    %228 = vector.load %arg20[%227, %c0_63] : memref<128x32xf32, #tpu.memory_space<vmem>>, vector<8x32xf32>
    tpu.vector_store %arg20[%227, %c0_63], %198 {strides = array<i32>} : memref<128x32xf32, #tpu.memory_space<vmem>>, vector<8x32xf32>,
    %229 = arith.index_cast %164 : i32 to index
    %c0_64 = arith.constant 0 : index
    %230 = vector.load %arg21[%229, %c0_64] : memref<128x32xf32, #tpu.memory_space<vmem>>, vector<8x32xf32>
    tpu.vector_store %arg21[%229, %c0_64], %226 {strides = array<i32>} : memref<128x32xf32, #tpu.memory_space<vmem>>, vector<8x32xf32>,
    %c3_i32 = arith.constant 3 : i32
    %c15_i32_65 = arith.constant 15 : i32
    %231 = arith.subi %c15_i32_65, %c3_i32 : i32
    %c8_i32_66 = arith.constant 8 : i32
    %232 = arith.muli %c3_i32, %c8_i32_66 : i32
    %233 = tpu.assume_multiple %232, 8 : i32
    %c8_i32_67 = arith.constant 8 : i32
    %234 = arith.muli %231, %c8_i32_67 : i32
    %235 = tpu.assume_multiple %234, 8 : i32
    %236 = arith.index_cast %233 : i32 to index
    %c0_68 = arith.constant 0 : index
    %237 = vector.load %arg18[%236, %c0_68] : memref<128x96xf32, #tpu.memory_space<vmem>>, vector<8x96xf32>
    %238 = arith.index_cast %235 : i32 to index
    %c0_69 = arith.constant 0 : index
    %239 = vector.load %arg19[%238, %c0_69] : memref<128x96xf32, #tpu.memory_space<vmem>>, vector<8x96xf32>
    %cst_70 = arith.constant dense<0.000000e+00> : vector<8x96xf32>
    %240 = tpu.matmul %198, %10, %cst_70 {dimension_numbers = #tpu.dot_dimension_numbers<[1], [0], [0], [1], [0, 0, 1, 1], [], []>} : vector<8x32xf32>, vector<32x96xf32>, vector<8x96xf32> -> vector<8x96xf32>
    %cst_71 = arith.constant dense<0.000000e+00> : vector<8x96xf32>
    %241 = tpu.matmul %226, %11, %cst_71 {dimension_numbers = #tpu.dot_dimension_numbers<[1], [0], [0], [1], [0, 0, 1, 1], [], []>} : vector<8x32xf32>, vector<32x96xf32>, vector<8x96xf32> -> vector<8x96xf32>
    %242 = vector.extract_strided_slice %237 {offsets = [0, 0], sizes = [8, 32], strides = [1, 1]} : vector<8x96xf32> to vector<8x32xf32>
    %243 = vector.extract_strided_slice %240 {offsets = [0, 0], sizes = [8, 32], strides = [1, 1]} : vector<8x96xf32> to vector<8x32xf32>
    %244 = arith.addf %242, %243 : vector<8x32xf32>
    %245 = arith.negf %244 : vector<8x32xf32>
    %246 = math.exp %245 : vector<8x32xf32>
    %cst_72 = arith.constant 1.000000e+00 : f32
    %247 = vector.broadcast %cst_72 : f32 to vector<8x32xf32>
    %248 = arith.addf %247, %246 : vector<8x32xf32>
    %249 = arith.divf %247, %248 : vector<8x32xf32>
    %250 = vector.extract_strided_slice %237 {offsets = [0, 32], sizes = [8, 32], strides = [1, 1]} : vector<8x96xf32> to vector<8x32xf32>
    %251 = vector.extract_strided_slice %240 {offsets = [0, 32], sizes = [8, 32], strides = [1, 1]} : vector<8x96xf32> to vector<8x32xf32>
    %252 = arith.addf %250, %251 : vector<8x32xf32>
    %253 = arith.negf %252 : vector<8x32xf32>
    %254 = math.exp %253 : vector<8x32xf32>
    %cst_73 = arith.constant 1.000000e+00 : f32
    %255 = vector.broadcast %cst_73 : f32 to vector<8x32xf32>
    %256 = arith.addf %255, %254 : vector<8x32xf32>
    %257 = arith.divf %255, %256 : vector<8x32xf32>
    %258 = vector.extract_strided_slice %237 {offsets = [0, 64], sizes = [8, 32], strides = [1, 1]} : vector<8x96xf32> to vector<8x32xf32>
    %259 = vector.extract_strided_slice %240 {offsets = [0, 64], sizes = [8, 32], strides = [1, 1]} : vector<8x96xf32> to vector<8x32xf32>
    %260 = vector.broadcast %12 : vector<1x32xf32> to vector<8x32xf32>
    %261 = arith.addf %259, %260 : vector<8x32xf32>
    %262 = arith.mulf %249, %261 : vector<8x32xf32>
    %263 = arith.addf %258, %262 : vector<8x32xf32>
    %264 = math.tanh %263 : vector<8x32xf32>
    %cst_74 = arith.constant 1.000000e+00 : f32
    %265 = vector.broadcast %cst_74 : f32 to vector<8x32xf32>
    %266 = arith.subf %265, %257 : vector<8x32xf32>
    %267 = arith.mulf %266, %264 : vector<8x32xf32>
    %268 = arith.mulf %257, %198 : vector<8x32xf32>
    %269 = arith.addf %267, %268 : vector<8x32xf32>
    %270 = vector.extract_strided_slice %239 {offsets = [0, 0], sizes = [8, 32], strides = [1, 1]} : vector<8x96xf32> to vector<8x32xf32>
    %271 = vector.extract_strided_slice %241 {offsets = [0, 0], sizes = [8, 32], strides = [1, 1]} : vector<8x96xf32> to vector<8x32xf32>
    %272 = arith.addf %270, %271 : vector<8x32xf32>
    %273 = arith.negf %272 : vector<8x32xf32>
    %274 = math.exp %273 : vector<8x32xf32>
    %cst_75 = arith.constant 1.000000e+00 : f32
    %275 = vector.broadcast %cst_75 : f32 to vector<8x32xf32>
    %276 = arith.addf %275, %274 : vector<8x32xf32>
    %277 = arith.divf %275, %276 : vector<8x32xf32>
    %278 = vector.extract_strided_slice %239 {offsets = [0, 32], sizes = [8, 32], strides = [1, 1]} : vector<8x96xf32> to vector<8x32xf32>
    %279 = vector.extract_strided_slice %241 {offsets = [0, 32], sizes = [8, 32], strides = [1, 1]} : vector<8x96xf32> to vector<8x32xf32>
    %280 = arith.addf %278, %279 : vector<8x32xf32>
    %281 = arith.negf %280 : vector<8x32xf32>
    %282 = math.exp %281 : vector<8x32xf32>
    %cst_76 = arith.constant 1.000000e+00 : f32
    %283 = vector.broadcast %cst_76 : f32 to vector<8x32xf32>
    %284 = arith.addf %283, %282 : vector<8x32xf32>
    %285 = arith.divf %283, %284 : vector<8x32xf32>
    %286 = vector.extract_strided_slice %239 {offsets = [0, 64], sizes = [8, 32], strides = [1, 1]} : vector<8x96xf32> to vector<8x32xf32>
    %287 = vector.extract_strided_slice %241 {offsets = [0, 64], sizes = [8, 32], strides = [1, 1]} : vector<8x96xf32> to vector<8x32xf32>
    %288 = vector.broadcast %13 : vector<1x32xf32> to vector<8x32xf32>
    %289 = arith.addf %287, %288 : vector<8x32xf32>
    %290 = arith.mulf %277, %289 : vector<8x32xf32>
    %291 = arith.addf %286, %290 : vector<8x32xf32>
    %292 = math.tanh %291 : vector<8x32xf32>
    %cst_77 = arith.constant 1.000000e+00 : f32
    %293 = vector.broadcast %cst_77 : f32 to vector<8x32xf32>
    %294 = arith.subf %293, %285 : vector<8x32xf32>
    %295 = arith.mulf %294, %292 : vector<8x32xf32>
    %296 = arith.mulf %285, %226 : vector<8x32xf32>
    %297 = arith.addf %295, %296 : vector<8x32xf32>
    %298 = arith.index_cast %233 : i32 to index
    %c0_78 = arith.constant 0 : index
    %299 = vector.load %arg20[%298, %c0_78] : memref<128x32xf32, #tpu.memory_space<vmem>>, vector<8x32xf32>
    tpu.vector_store %arg20[%298, %c0_78], %269 {strides = array<i32>} : memref<128x32xf32, #tpu.memory_space<vmem>>, vector<8x32xf32>,
    %300 = arith.index_cast %235 : i32 to index
    %c0_79 = arith.constant 0 : index
    %301 = vector.load %arg21[%300, %c0_79] : memref<128x32xf32, #tpu.memory_space<vmem>>, vector<8x32xf32>
    tpu.vector_store %arg21[%300, %c0_79], %297 {strides = array<i32>} : memref<128x32xf32, #tpu.memory_space<vmem>>, vector<8x32xf32>,
    %c4_i32 = arith.constant 4 : i32
    %c15_i32_80 = arith.constant 15 : i32
    %302 = arith.subi %c15_i32_80, %c4_i32 : i32
    %c8_i32_81 = arith.constant 8 : i32
    %303 = arith.muli %c4_i32, %c8_i32_81 : i32
    %304 = tpu.assume_multiple %303, 8 : i32
    %c8_i32_82 = arith.constant 8 : i32
    %305 = arith.muli %302, %c8_i32_82 : i32
    %306 = tpu.assume_multiple %305, 8 : i32
    %307 = arith.index_cast %304 : i32 to index
    %c0_83 = arith.constant 0 : index
    %308 = vector.load %arg18[%307, %c0_83] : memref<128x96xf32, #tpu.memory_space<vmem>>, vector<8x96xf32>
    %309 = arith.index_cast %306 : i32 to index
    %c0_84 = arith.constant 0 : index
    %310 = vector.load %arg19[%309, %c0_84] : memref<128x96xf32, #tpu.memory_space<vmem>>, vector<8x96xf32>
    %cst_85 = arith.constant dense<0.000000e+00> : vector<8x96xf32>
    %311 = tpu.matmul %269, %10, %cst_85 {dimension_numbers = #tpu.dot_dimension_numbers<[1], [0], [0], [1], [0, 0, 1, 1], [], []>} : vector<8x32xf32>, vector<32x96xf32>, vector<8x96xf32> -> vector<8x96xf32>
    %cst_86 = arith.constant dense<0.000000e+00> : vector<8x96xf32>
    %312 = tpu.matmul %297, %11, %cst_86 {dimension_numbers = #tpu.dot_dimension_numbers<[1], [0], [0], [1], [0, 0, 1, 1], [], []>} : vector<8x32xf32>, vector<32x96xf32>, vector<8x96xf32> -> vector<8x96xf32>
    %313 = vector.extract_strided_slice %308 {offsets = [0, 0], sizes = [8, 32], strides = [1, 1]} : vector<8x96xf32> to vector<8x32xf32>
    %314 = vector.extract_strided_slice %311 {offsets = [0, 0], sizes = [8, 32], strides = [1, 1]} : vector<8x96xf32> to vector<8x32xf32>
    %315 = arith.addf %313, %314 : vector<8x32xf32>
    %316 = arith.negf %315 : vector<8x32xf32>
    %317 = math.exp %316 : vector<8x32xf32>
    %cst_87 = arith.constant 1.000000e+00 : f32
    %318 = vector.broadcast %cst_87 : f32 to vector<8x32xf32>
    %319 = arith.addf %318, %317 : vector<8x32xf32>
    %320 = arith.divf %318, %319 : vector<8x32xf32>
    %321 = vector.extract_strided_slice %308 {offsets = [0, 32], sizes = [8, 32], strides = [1, 1]} : vector<8x96xf32> to vector<8x32xf32>
    %322 = vector.extract_strided_slice %311 {offsets = [0, 32], sizes = [8, 32], strides = [1, 1]} : vector<8x96xf32> to vector<8x32xf32>
    %323 = arith.addf %321, %322 : vector<8x32xf32>
    %324 = arith.negf %323 : vector<8x32xf32>
    %325 = math.exp %324 : vector<8x32xf32>
    %cst_88 = arith.constant 1.000000e+00 : f32
    %326 = vector.broadcast %cst_88 : f32 to vector<8x32xf32>
    %327 = arith.addf %326, %325 : vector<8x32xf32>
    %328 = arith.divf %326, %327 : vector<8x32xf32>
    %329 = vector.extract_strided_slice %308 {offsets = [0, 64], sizes = [8, 32], strides = [1, 1]} : vector<8x96xf32> to vector<8x32xf32>
    %330 = vector.extract_strided_slice %311 {offsets = [0, 64], sizes = [8, 32], strides = [1, 1]} : vector<8x96xf32> to vector<8x32xf32>
    %331 = vector.broadcast %12 : vector<1x32xf32> to vector<8x32xf32>
    %332 = arith.addf %330, %331 : vector<8x32xf32>
    %333 = arith.mulf %320, %332 : vector<8x32xf32>
    %334 = arith.addf %329, %333 : vector<8x32xf32>
    %335 = math.tanh %334 : vector<8x32xf32>
    %cst_89 = arith.constant 1.000000e+00 : f32
    %336 = vector.broadcast %cst_89 : f32 to vector<8x32xf32>
    %337 = arith.subf %336, %328 : vector<8x32xf32>
    %338 = arith.mulf %337, %335 : vector<8x32xf32>
    %339 = arith.mulf %328, %269 : vector<8x32xf32>
    %340 = arith.addf %338, %339 : vector<8x32xf32>
    %341 = vector.extract_strided_slice %310 {offsets = [0, 0], sizes = [8, 32], strides = [1, 1]} : vector<8x96xf32> to vector<8x32xf32>
    %342 = vector.extract_strided_slice %312 {offsets = [0, 0], sizes = [8, 32], strides = [1, 1]} : vector<8x96xf32> to vector<8x32xf32>
    %343 = arith.addf %341, %342 : vector<8x32xf32>
    %344 = arith.negf %343 : vector<8x32xf32>
    %345 = math.exp %344 : vector<8x32xf32>
    %cst_90 = arith.constant 1.000000e+00 : f32
    %346 = vector.broadcast %cst_90 : f32 to vector<8x32xf32>
    %347 = arith.addf %346, %345 : vector<8x32xf32>
    %348 = arith.divf %346, %347 : vector<8x32xf32>
    %349 = vector.extract_strided_slice %310 {offsets = [0, 32], sizes = [8, 32], strides = [1, 1]} : vector<8x96xf32> to vector<8x32xf32>
    %350 = vector.extract_strided_slice %312 {offsets = [0, 32], sizes = [8, 32], strides = [1, 1]} : vector<8x96xf32> to vector<8x32xf32>
    %351 = arith.addf %349, %350 : vector<8x32xf32>
    %352 = arith.negf %351 : vector<8x32xf32>
    %353 = math.exp %352 : vector<8x32xf32>
    %cst_91 = arith.constant 1.000000e+00 : f32
    %354 = vector.broadcast %cst_91 : f32 to vector<8x32xf32>
    %355 = arith.addf %354, %353 : vector<8x32xf32>
    %356 = arith.divf %354, %355 : vector<8x32xf32>
    %357 = vector.extract_strided_slice %310 {offsets = [0, 64], sizes = [8, 32], strides = [1, 1]} : vector<8x96xf32> to vector<8x32xf32>
    %358 = vector.extract_strided_slice %312 {offsets = [0, 64], sizes = [8, 32], strides = [1, 1]} : vector<8x96xf32> to vector<8x32xf32>
    %359 = vector.broadcast %13 : vector<1x32xf32> to vector<8x32xf32>
    %360 = arith.addf %358, %359 : vector<8x32xf32>
    %361 = arith.mulf %348, %360 : vector<8x32xf32>
    %362 = arith.addf %357, %361 : vector<8x32xf32>
    %363 = math.tanh %362 : vector<8x32xf32>
    %cst_92 = arith.constant 1.000000e+00 : f32
    %364 = vector.broadcast %cst_92 : f32 to vector<8x32xf32>
    %365 = arith.subf %364, %356 : vector<8x32xf32>
    %366 = arith.mulf %365, %363 : vector<8x32xf32>
    %367 = arith.mulf %356, %297 : vector<8x32xf32>
    %368 = arith.addf %366, %367 : vector<8x32xf32>
    %369 = arith.index_cast %304 : i32 to index
    %c0_93 = arith.constant 0 : index
    %370 = vector.load %arg20[%369, %c0_93] : memref<128x32xf32, #tpu.memory_space<vmem>>, vector<8x32xf32>
    tpu.vector_store %arg20[%369, %c0_93], %340 {strides = array<i32>} : memref<128x32xf32, #tpu.memory_space<vmem>>, vector<8x32xf32>,
    %371 = arith.index_cast %306 : i32 to index
    %c0_94 = arith.constant 0 : index
    %372 = vector.load %arg21[%371, %c0_94] : memref<128x32xf32, #tpu.memory_space<vmem>>, vector<8x32xf32>
    tpu.vector_store %arg21[%371, %c0_94], %368 {strides = array<i32>} : memref<128x32xf32, #tpu.memory_space<vmem>>, vector<8x32xf32>,
    %c5_i32 = arith.constant 5 : i32
    %c15_i32_95 = arith.constant 15 : i32
    %373 = arith.subi %c15_i32_95, %c5_i32 : i32
    %c8_i32_96 = arith.constant 8 : i32
    %374 = arith.muli %c5_i32, %c8_i32_96 : i32
    %375 = tpu.assume_multiple %374, 8 : i32
    %c8_i32_97 = arith.constant 8 : i32
    %376 = arith.muli %373, %c8_i32_97 : i32
    %377 = tpu.assume_multiple %376, 8 : i32
    %378 = arith.index_cast %375 : i32 to index
    %c0_98 = arith.constant 0 : index
    %379 = vector.load %arg18[%378, %c0_98] : memref<128x96xf32, #tpu.memory_space<vmem>>, vector<8x96xf32>
    %380 = arith.index_cast %377 : i32 to index
    %c0_99 = arith.constant 0 : index
    %381 = vector.load %arg19[%380, %c0_99] : memref<128x96xf32, #tpu.memory_space<vmem>>, vector<8x96xf32>
    %cst_100 = arith.constant dense<0.000000e+00> : vector<8x96xf32>
    %382 = tpu.matmul %340, %10, %cst_100 {dimension_numbers = #tpu.dot_dimension_numbers<[1], [0], [0], [1], [0, 0, 1, 1], [], []>} : vector<8x32xf32>, vector<32x96xf32>, vector<8x96xf32> -> vector<8x96xf32>
    %cst_101 = arith.constant dense<0.000000e+00> : vector<8x96xf32>
    %383 = tpu.matmul %368, %11, %cst_101 {dimension_numbers = #tpu.dot_dimension_numbers<[1], [0], [0], [1], [0, 0, 1, 1], [], []>} : vector<8x32xf32>, vector<32x96xf32>, vector<8x96xf32> -> vector<8x96xf32>
    %384 = vector.extract_strided_slice %379 {offsets = [0, 0], sizes = [8, 32], strides = [1, 1]} : vector<8x96xf32> to vector<8x32xf32>
    %385 = vector.extract_strided_slice %382 {offsets = [0, 0], sizes = [8, 32], strides = [1, 1]} : vector<8x96xf32> to vector<8x32xf32>
    %386 = arith.addf %384, %385 : vector<8x32xf32>
    %387 = arith.negf %386 : vector<8x32xf32>
    %388 = math.exp %387 : vector<8x32xf32>
    %cst_102 = arith.constant 1.000000e+00 : f32
    %389 = vector.broadcast %cst_102 : f32 to vector<8x32xf32>
    %390 = arith.addf %389, %388 : vector<8x32xf32>
    %391 = arith.divf %389, %390 : vector<8x32xf32>
    %392 = vector.extract_strided_slice %379 {offsets = [0, 32], sizes = [8, 32], strides = [1, 1]} : vector<8x96xf32> to vector<8x32xf32>
    %393 = vector.extract_strided_slice %382 {offsets = [0, 32], sizes = [8, 32], strides = [1, 1]} : vector<8x96xf32> to vector<8x32xf32>
    %394 = arith.addf %392, %393 : vector<8x32xf32>
    %395 = arith.negf %394 : vector<8x32xf32>
    %396 = math.exp %395 : vector<8x32xf32>
    %cst_103 = arith.constant 1.000000e+00 : f32
    %397 = vector.broadcast %cst_103 : f32 to vector<8x32xf32>
    %398 = arith.addf %397, %396 : vector<8x32xf32>
    %399 = arith.divf %397, %398 : vector<8x32xf32>
    %400 = vector.extract_strided_slice %379 {offsets = [0, 64], sizes = [8, 32], strides = [1, 1]} : vector<8x96xf32> to vector<8x32xf32>
    %401 = vector.extract_strided_slice %382 {offsets = [0, 64], sizes = [8, 32], strides = [1, 1]} : vector<8x96xf32> to vector<8x32xf32>
    %402 = vector.broadcast %12 : vector<1x32xf32> to vector<8x32xf32>
    %403 = arith.addf %401, %402 : vector<8x32xf32>
    %404 = arith.mulf %391, %403 : vector<8x32xf32>
    %405 = arith.addf %400, %404 : vector<8x32xf32>
    %406 = math.tanh %405 : vector<8x32xf32>
    %cst_104 = arith.constant 1.000000e+00 : f32
    %407 = vector.broadcast %cst_104 : f32 to vector<8x32xf32>
    %408 = arith.subf %407, %399 : vector<8x32xf32>
    %409 = arith.mulf %408, %406 : vector<8x32xf32>
    %410 = arith.mulf %399, %340 : vector<8x32xf32>
    %411 = arith.addf %409, %410 : vector<8x32xf32>
    %412 = vector.extract_strided_slice %381 {offsets = [0, 0], sizes = [8, 32], strides = [1, 1]} : vector<8x96xf32> to vector<8x32xf32>
    %413 = vector.extract_strided_slice %383 {offsets = [0, 0], sizes = [8, 32], strides = [1, 1]} : vector<8x96xf32> to vector<8x32xf32>
    %414 = arith.addf %412, %413 : vector<8x32xf32>
    %415 = arith.negf %414 : vector<8x32xf32>
    %416 = math.exp %415 : vector<8x32xf32>
    %cst_105 = arith.constant 1.000000e+00 : f32
    %417 = vector.broadcast %cst_105 : f32 to vector<8x32xf32>
    %418 = arith.addf %417, %416 : vector<8x32xf32>
    %419 = arith.divf %417, %418 : vector<8x32xf32>
    %420 = vector.extract_strided_slice %381 {offsets = [0, 32], sizes = [8, 32], strides = [1, 1]} : vector<8x96xf32> to vector<8x32xf32>
    %421 = vector.extract_strided_slice %383 {offsets = [0, 32], sizes = [8, 32], strides = [1, 1]} : vector<8x96xf32> to vector<8x32xf32>
    %422 = arith.addf %420, %421 : vector<8x32xf32>
    %423 = arith.negf %422 : vector<8x32xf32>
    %424 = math.exp %423 : vector<8x32xf32>
    %cst_106 = arith.constant 1.000000e+00 : f32
    %425 = vector.broadcast %cst_106 : f32 to vector<8x32xf32>
    %426 = arith.addf %425, %424 : vector<8x32xf32>
    %427 = arith.divf %425, %426 : vector<8x32xf32>
    %428 = vector.extract_strided_slice %381 {offsets = [0, 64], sizes = [8, 32], strides = [1, 1]} : vector<8x96xf32> to vector<8x32xf32>
    %429 = vector.extract_strided_slice %383 {offsets = [0, 64], sizes = [8, 32], strides = [1, 1]} : vector<8x96xf32> to vector<8x32xf32>
    %430 = vector.broadcast %13 : vector<1x32xf32> to vector<8x32xf32>
    %431 = arith.addf %429, %430 : vector<8x32xf32>
    %432 = arith.mulf %419, %431 : vector<8x32xf32>
    %433 = arith.addf %428, %432 : vector<8x32xf32>
    %434 = math.tanh %433 : vector<8x32xf32>
    %cst_107 = arith.constant 1.000000e+00 : f32
    %435 = vector.broadcast %cst_107 : f32 to vector<8x32xf32>
    %436 = arith.subf %435, %427 : vector<8x32xf32>
    %437 = arith.mulf %436, %434 : vector<8x32xf32>
    %438 = arith.mulf %427, %368 : vector<8x32xf32>
    %439 = arith.addf %437, %438 : vector<8x32xf32>
    %440 = arith.index_cast %375 : i32 to index
    %c0_108 = arith.constant 0 : index
    %441 = vector.load %arg20[%440, %c0_108] : memref<128x32xf32, #tpu.memory_space<vmem>>, vector<8x32xf32>
    tpu.vector_store %arg20[%440, %c0_108], %411 {strides = array<i32>} : memref<128x32xf32, #tpu.memory_space<vmem>>, vector<8x32xf32>,
    %442 = arith.index_cast %377 : i32 to index
    %c0_109 = arith.constant 0 : index
    %443 = vector.load %arg21[%442, %c0_109] : memref<128x32xf32, #tpu.memory_space<vmem>>, vector<8x32xf32>
    tpu.vector_store %arg21[%442, %c0_109], %439 {strides = array<i32>} : memref<128x32xf32, #tpu.memory_space<vmem>>, vector<8x32xf32>,
    %c6_i32 = arith.constant 6 : i32
    %c15_i32_110 = arith.constant 15 : i32
    %444 = arith.subi %c15_i32_110, %c6_i32 : i32
    %c8_i32_111 = arith.constant 8 : i32
    %445 = arith.muli %c6_i32, %c8_i32_111 : i32
    %446 = tpu.assume_multiple %445, 8 : i32
    %c8_i32_112 = arith.constant 8 : i32
    %447 = arith.muli %444, %c8_i32_112 : i32
    %448 = tpu.assume_multiple %447, 8 : i32
    %449 = arith.index_cast %446 : i32 to index
    %c0_113 = arith.constant 0 : index
    %450 = vector.load %arg18[%449, %c0_113] : memref<128x96xf32, #tpu.memory_space<vmem>>, vector<8x96xf32>
    %451 = arith.index_cast %448 : i32 to index
    %c0_114 = arith.constant 0 : index
    %452 = vector.load %arg19[%451, %c0_114] : memref<128x96xf32, #tpu.memory_space<vmem>>, vector<8x96xf32>
    %cst_115 = arith.constant dense<0.000000e+00> : vector<8x96xf32>
    %453 = tpu.matmul %411, %10, %cst_115 {dimension_numbers = #tpu.dot_dimension_numbers<[1], [0], [0], [1], [0, 0, 1, 1], [], []>} : vector<8x32xf32>, vector<32x96xf32>, vector<8x96xf32> -> vector<8x96xf32>
    %cst_116 = arith.constant dense<0.000000e+00> : vector<8x96xf32>
    %454 = tpu.matmul %439, %11, %cst_116 {dimension_numbers = #tpu.dot_dimension_numbers<[1], [0], [0], [1], [0, 0, 1, 1], [], []>} : vector<8x32xf32>, vector<32x96xf32>, vector<8x96xf32> -> vector<8x96xf32>
    %455 = vector.extract_strided_slice %450 {offsets = [0, 0], sizes = [8, 32], strides = [1, 1]} : vector<8x96xf32> to vector<8x32xf32>
    %456 = vector.extract_strided_slice %453 {offsets = [0, 0], sizes = [8, 32], strides = [1, 1]} : vector<8x96xf32> to vector<8x32xf32>
    %457 = arith.addf %455, %456 : vector<8x32xf32>
    %458 = arith.negf %457 : vector<8x32xf32>
    %459 = math.exp %458 : vector<8x32xf32>
    %cst_117 = arith.constant 1.000000e+00 : f32
    %460 = vector.broadcast %cst_117 : f32 to vector<8x32xf32>
    %461 = arith.addf %460, %459 : vector<8x32xf32>
    %462 = arith.divf %460, %461 : vector<8x32xf32>
    %463 = vector.extract_strided_slice %450 {offsets = [0, 32], sizes = [8, 32], strides = [1, 1]} : vector<8x96xf32> to vector<8x32xf32>
    %464 = vector.extract_strided_slice %453 {offsets = [0, 32], sizes = [8, 32], strides = [1, 1]} : vector<8x96xf32> to vector<8x32xf32>
    %465 = arith.addf %463, %464 : vector<8x32xf32>
    %466 = arith.negf %465 : vector<8x32xf32>
    %467 = math.exp %466 : vector<8x32xf32>
    %cst_118 = arith.constant 1.000000e+00 : f32
    %468 = vector.broadcast %cst_118 : f32 to vector<8x32xf32>
    %469 = arith.addf %468, %467 : vector<8x32xf32>
    %470 = arith.divf %468, %469 : vector<8x32xf32>
    %471 = vector.extract_strided_slice %450 {offsets = [0, 64], sizes = [8, 32], strides = [1, 1]} : vector<8x96xf32> to vector<8x32xf32>
    %472 = vector.extract_strided_slice %453 {offsets = [0, 64], sizes = [8, 32], strides = [1, 1]} : vector<8x96xf32> to vector<8x32xf32>
    %473 = vector.broadcast %12 : vector<1x32xf32> to vector<8x32xf32>
    %474 = arith.addf %472, %473 : vector<8x32xf32>
    %475 = arith.mulf %462, %474 : vector<8x32xf32>
    %476 = arith.addf %471, %475 : vector<8x32xf32>
    %477 = math.tanh %476 : vector<8x32xf32>
    %cst_119 = arith.constant 1.000000e+00 : f32
    %478 = vector.broadcast %cst_119 : f32 to vector<8x32xf32>
    %479 = arith.subf %478, %470 : vector<8x32xf32>
    %480 = arith.mulf %479, %477 : vector<8x32xf32>
    %481 = arith.mulf %470, %411 : vector<8x32xf32>
    %482 = arith.addf %480, %481 : vector<8x32xf32>
    %483 = vector.extract_strided_slice %452 {offsets = [0, 0], sizes = [8, 32], strides = [1, 1]} : vector<8x96xf32> to vector<8x32xf32>
    %484 = vector.extract_strided_slice %454 {offsets = [0, 0], sizes = [8, 32], strides = [1, 1]} : vector<8x96xf32> to vector<8x32xf32>
    %485 = arith.addf %483, %484 : vector<8x32xf32>
    %486 = arith.negf %485 : vector<8x32xf32>
    %487 = math.exp %486 : vector<8x32xf32>
    %cst_120 = arith.constant 1.000000e+00 : f32
    %488 = vector.broadcast %cst_120 : f32 to vector<8x32xf32>
    %489 = arith.addf %488, %487 : vector<8x32xf32>
    %490 = arith.divf %488, %489 : vector<8x32xf32>
    %491 = vector.extract_strided_slice %452 {offsets = [0, 32], sizes = [8, 32], strides = [1, 1]} : vector<8x96xf32> to vector<8x32xf32>
    %492 = vector.extract_strided_slice %454 {offsets = [0, 32], sizes = [8, 32], strides = [1, 1]} : vector<8x96xf32> to vector<8x32xf32>
    %493 = arith.addf %491, %492 : vector<8x32xf32>
    %494 = arith.negf %493 : vector<8x32xf32>
    %495 = math.exp %494 : vector<8x32xf32>
    %cst_121 = arith.constant 1.000000e+00 : f32
    %496 = vector.broadcast %cst_121 : f32 to vector<8x32xf32>
    %497 = arith.addf %496, %495 : vector<8x32xf32>
    %498 = arith.divf %496, %497 : vector<8x32xf32>
    %499 = vector.extract_strided_slice %452 {offsets = [0, 64], sizes = [8, 32], strides = [1, 1]} : vector<8x96xf32> to vector<8x32xf32>
    %500 = vector.extract_strided_slice %454 {offsets = [0, 64], sizes = [8, 32], strides = [1, 1]} : vector<8x96xf32> to vector<8x32xf32>
    %501 = vector.broadcast %13 : vector<1x32xf32> to vector<8x32xf32>
    %502 = arith.addf %500, %501 : vector<8x32xf32>
    %503 = arith.mulf %490, %502 : vector<8x32xf32>
    %504 = arith.addf %499, %503 : vector<8x32xf32>
    %505 = math.tanh %504 : vector<8x32xf32>
    %cst_122 = arith.constant 1.000000e+00 : f32
    %506 = vector.broadcast %cst_122 : f32 to vector<8x32xf32>
    %507 = arith.subf %506, %498 : vector<8x32xf32>
    %508 = arith.mulf %507, %505 : vector<8x32xf32>
    %509 = arith.mulf %498, %439 : vector<8x32xf32>
    %510 = arith.addf %508, %509 : vector<8x32xf32>
    %511 = arith.index_cast %446 : i32 to index
    %c0_123 = arith.constant 0 : index
    %512 = vector.load %arg20[%511, %c0_123] : memref<128x32xf32, #tpu.memory_space<vmem>>, vector<8x32xf32>
    tpu.vector_store %arg20[%511, %c0_123], %482 {strides = array<i32>} : memref<128x32xf32, #tpu.memory_space<vmem>>, vector<8x32xf32>,
    %513 = arith.index_cast %448 : i32 to index
    %c0_124 = arith.constant 0 : index
    %514 = vector.load %arg21[%513, %c0_124] : memref<128x32xf32, #tpu.memory_space<vmem>>, vector<8x32xf32>
    tpu.vector_store %arg21[%513, %c0_124], %510 {strides = array<i32>} : memref<128x32xf32, #tpu.memory_space<vmem>>, vector<8x32xf32>,
    %c7_i32 = arith.constant 7 : i32
    %c15_i32_125 = arith.constant 15 : i32
    %515 = arith.subi %c15_i32_125, %c7_i32 : i32
    %c8_i32_126 = arith.constant 8 : i32
    %516 = arith.muli %c7_i32, %c8_i32_126 : i32
    %517 = tpu.assume_multiple %516, 8 : i32
    %c8_i32_127 = arith.constant 8 : i32
    %518 = arith.muli %515, %c8_i32_127 : i32
    %519 = tpu.assume_multiple %518, 8 : i32
    %520 = arith.index_cast %517 : i32 to index
    %c0_128 = arith.constant 0 : index
    %521 = vector.load %arg18[%520, %c0_128] : memref<128x96xf32, #tpu.memory_space<vmem>>, vector<8x96xf32>
    %522 = arith.index_cast %519 : i32 to index
    %c0_129 = arith.constant 0 : index
    %523 = vector.load %arg19[%522, %c0_129] : memref<128x96xf32, #tpu.memory_space<vmem>>, vector<8x96xf32>
    %cst_130 = arith.constant dense<0.000000e+00> : vector<8x96xf32>
    %524 = tpu.matmul %482, %10, %cst_130 {dimension_numbers = #tpu.dot_dimension_numbers<[1], [0], [0], [1], [0, 0, 1, 1], [], []>} : vector<8x32xf32>, vector<32x96xf32>, vector<8x96xf32> -> vector<8x96xf32>
    %cst_131 = arith.constant dense<0.000000e+00> : vector<8x96xf32>
    %525 = tpu.matmul %510, %11, %cst_131 {dimension_numbers = #tpu.dot_dimension_numbers<[1], [0], [0], [1], [0, 0, 1, 1], [], []>} : vector<8x32xf32>, vector<32x96xf32>, vector<8x96xf32> -> vector<8x96xf32>
    %526 = vector.extract_strided_slice %521 {offsets = [0, 0], sizes = [8, 32], strides = [1, 1]} : vector<8x96xf32> to vector<8x32xf32>
    %527 = vector.extract_strided_slice %524 {offsets = [0, 0], sizes = [8, 32], strides = [1, 1]} : vector<8x96xf32> to vector<8x32xf32>
    %528 = arith.addf %526, %527 : vector<8x32xf32>
    %529 = arith.negf %528 : vector<8x32xf32>
    %530 = math.exp %529 : vector<8x32xf32>
    %cst_132 = arith.constant 1.000000e+00 : f32
    %531 = vector.broadcast %cst_132 : f32 to vector<8x32xf32>
    %532 = arith.addf %531, %530 : vector<8x32xf32>
    %533 = arith.divf %531, %532 : vector<8x32xf32>
    %534 = vector.extract_strided_slice %521 {offsets = [0, 32], sizes = [8, 32], strides = [1, 1]} : vector<8x96xf32> to vector<8x32xf32>
    %535 = vector.extract_strided_slice %524 {offsets = [0, 32], sizes = [8, 32], strides = [1, 1]} : vector<8x96xf32> to vector<8x32xf32>
    %536 = arith.addf %534, %535 : vector<8x32xf32>
    %537 = arith.negf %536 : vector<8x32xf32>
    %538 = math.exp %537 : vector<8x32xf32>
    %cst_133 = arith.constant 1.000000e+00 : f32
    %539 = vector.broadcast %cst_133 : f32 to vector<8x32xf32>
    %540 = arith.addf %539, %538 : vector<8x32xf32>
    %541 = arith.divf %539, %540 : vector<8x32xf32>
    %542 = vector.extract_strided_slice %521 {offsets = [0, 64], sizes = [8, 32], strides = [1, 1]} : vector<8x96xf32> to vector<8x32xf32>
    %543 = vector.extract_strided_slice %524 {offsets = [0, 64], sizes = [8, 32], strides = [1, 1]} : vector<8x96xf32> to vector<8x32xf32>
    %544 = vector.broadcast %12 : vector<1x32xf32> to vector<8x32xf32>
    %545 = arith.addf %543, %544 : vector<8x32xf32>
    %546 = arith.mulf %533, %545 : vector<8x32xf32>
    %547 = arith.addf %542, %546 : vector<8x32xf32>
    %548 = math.tanh %547 : vector<8x32xf32>
    %cst_134 = arith.constant 1.000000e+00 : f32
    %549 = vector.broadcast %cst_134 : f32 to vector<8x32xf32>
    %550 = arith.subf %549, %541 : vector<8x32xf32>
    %551 = arith.mulf %550, %548 : vector<8x32xf32>
    %552 = arith.mulf %541, %482 : vector<8x32xf32>
    %553 = arith.addf %551, %552 : vector<8x32xf32>
    %554 = vector.extract_strided_slice %523 {offsets = [0, 0], sizes = [8, 32], strides = [1, 1]} : vector<8x96xf32> to vector<8x32xf32>
    %555 = vector.extract_strided_slice %525 {offsets = [0, 0], sizes = [8, 32], strides = [1, 1]} : vector<8x96xf32> to vector<8x32xf32>
    %556 = arith.addf %554, %555 : vector<8x32xf32>
    %557 = arith.negf %556 : vector<8x32xf32>
    %558 = math.exp %557 : vector<8x32xf32>
    %cst_135 = arith.constant 1.000000e+00 : f32
    %559 = vector.broadcast %cst_135 : f32 to vector<8x32xf32>
    %560 = arith.addf %559, %558 : vector<8x32xf32>
    %561 = arith.divf %559, %560 : vector<8x32xf32>
    %562 = vector.extract_strided_slice %523 {offsets = [0, 32], sizes = [8, 32], strides = [1, 1]} : vector<8x96xf32> to vector<8x32xf32>
    %563 = vector.extract_strided_slice %525 {offsets = [0, 32], sizes = [8, 32], strides = [1, 1]} : vector<8x96xf32> to vector<8x32xf32>
    %564 = arith.addf %562, %563 : vector<8x32xf32>
    %565 = arith.negf %564 : vector<8x32xf32>
    %566 = math.exp %565 : vector<8x32xf32>
    %cst_136 = arith.constant 1.000000e+00 : f32
    %567 = vector.broadcast %cst_136 : f32 to vector<8x32xf32>
    %568 = arith.addf %567, %566 : vector<8x32xf32>
    %569 = arith.divf %567, %568 : vector<8x32xf32>
    %570 = vector.extract_strided_slice %523 {offsets = [0, 64], sizes = [8, 32], strides = [1, 1]} : vector<8x96xf32> to vector<8x32xf32>
    %571 = vector.extract_strided_slice %525 {offsets = [0, 64], sizes = [8, 32], strides = [1, 1]} : vector<8x96xf32> to vector<8x32xf32>
    %572 = vector.broadcast %13 : vector<1x32xf32> to vector<8x32xf32>
    %573 = arith.addf %571, %572 : vector<8x32xf32>
    %574 = arith.mulf %561, %573 : vector<8x32xf32>
    %575 = arith.addf %570, %574 : vector<8x32xf32>
    %576 = math.tanh %575 : vector<8x32xf32>
    %cst_137 = arith.constant 1.000000e+00 : f32
    %577 = vector.broadcast %cst_137 : f32 to vector<8x32xf32>
    %578 = arith.subf %577, %569 : vector<8x32xf32>
    %579 = arith.mulf %578, %576 : vector<8x32xf32>
    %580 = arith.mulf %569, %510 : vector<8x32xf32>
    %581 = arith.addf %579, %580 : vector<8x32xf32>
    %582 = arith.index_cast %517 : i32 to index
    %c0_138 = arith.constant 0 : index
    %583 = vector.load %arg20[%582, %c0_138] : memref<128x32xf32, #tpu.memory_space<vmem>>, vector<8x32xf32>
    tpu.vector_store %arg20[%582, %c0_138], %553 {strides = array<i32>} : memref<128x32xf32, #tpu.memory_space<vmem>>, vector<8x32xf32>,
    %584 = arith.index_cast %519 : i32 to index
    %c0_139 = arith.constant 0 : index
    %585 = vector.load %arg21[%584, %c0_139] : memref<128x32xf32, #tpu.memory_space<vmem>>, vector<8x32xf32>
    tpu.vector_store %arg21[%584, %c0_139], %581 {strides = array<i32>} : memref<128x32xf32, #tpu.memory_space<vmem>>, vector<8x32xf32>,
    %c8_i32_140 = arith.constant 8 : i32
    %c15_i32_141 = arith.constant 15 : i32
    %586 = arith.subi %c15_i32_141, %c8_i32_140 : i32
    %c8_i32_142 = arith.constant 8 : i32
    %587 = arith.muli %c8_i32_140, %c8_i32_142 : i32
    %588 = tpu.assume_multiple %587, 8 : i32
    %c8_i32_143 = arith.constant 8 : i32
    %589 = arith.muli %586, %c8_i32_143 : i32
    %590 = tpu.assume_multiple %589, 8 : i32
    %591 = arith.index_cast %588 : i32 to index
    %c0_144 = arith.constant 0 : index
    %592 = vector.load %arg18[%591, %c0_144] : memref<128x96xf32, #tpu.memory_space<vmem>>, vector<8x96xf32>
    %593 = arith.index_cast %590 : i32 to index
    %c0_145 = arith.constant 0 : index
    %594 = vector.load %arg19[%593, %c0_145] : memref<128x96xf32, #tpu.memory_space<vmem>>, vector<8x96xf32>
    %cst_146 = arith.constant dense<0.000000e+00> : vector<8x96xf32>
    %595 = tpu.matmul %553, %10, %cst_146 {dimension_numbers = #tpu.dot_dimension_numbers<[1], [0], [0], [1], [0, 0, 1, 1], [], []>} : vector<8x32xf32>, vector<32x96xf32>, vector<8x96xf32> -> vector<8x96xf32>
    %cst_147 = arith.constant dense<0.000000e+00> : vector<8x96xf32>
    %596 = tpu.matmul %581, %11, %cst_147 {dimension_numbers = #tpu.dot_dimension_numbers<[1], [0], [0], [1], [0, 0, 1, 1], [], []>} : vector<8x32xf32>, vector<32x96xf32>, vector<8x96xf32> -> vector<8x96xf32>
    %597 = vector.extract_strided_slice %592 {offsets = [0, 0], sizes = [8, 32], strides = [1, 1]} : vector<8x96xf32> to vector<8x32xf32>
    %598 = vector.extract_strided_slice %595 {offsets = [0, 0], sizes = [8, 32], strides = [1, 1]} : vector<8x96xf32> to vector<8x32xf32>
    %599 = arith.addf %597, %598 : vector<8x32xf32>
    %600 = arith.negf %599 : vector<8x32xf32>
    %601 = math.exp %600 : vector<8x32xf32>
    %cst_148 = arith.constant 1.000000e+00 : f32
    %602 = vector.broadcast %cst_148 : f32 to vector<8x32xf32>
    %603 = arith.addf %602, %601 : vector<8x32xf32>
    %604 = arith.divf %602, %603 : vector<8x32xf32>
    %605 = vector.extract_strided_slice %592 {offsets = [0, 32], sizes = [8, 32], strides = [1, 1]} : vector<8x96xf32> to vector<8x32xf32>
    %606 = vector.extract_strided_slice %595 {offsets = [0, 32], sizes = [8, 32], strides = [1, 1]} : vector<8x96xf32> to vector<8x32xf32>
    %607 = arith.addf %605, %606 : vector<8x32xf32>
    %608 = arith.negf %607 : vector<8x32xf32>
    %609 = math.exp %608 : vector<8x32xf32>
    %cst_149 = arith.constant 1.000000e+00 : f32
    %610 = vector.broadcast %cst_149 : f32 to vector<8x32xf32>
    %611 = arith.addf %610, %609 : vector<8x32xf32>
    %612 = arith.divf %610, %611 : vector<8x32xf32>
    %613 = vector.extract_strided_slice %592 {offsets = [0, 64], sizes = [8, 32], strides = [1, 1]} : vector<8x96xf32> to vector<8x32xf32>
    %614 = vector.extract_strided_slice %595 {offsets = [0, 64], sizes = [8, 32], strides = [1, 1]} : vector<8x96xf32> to vector<8x32xf32>
    %615 = vector.broadcast %12 : vector<1x32xf32> to vector<8x32xf32>
    %616 = arith.addf %614, %615 : vector<8x32xf32>
    %617 = arith.mulf %604, %616 : vector<8x32xf32>
    %618 = arith.addf %613, %617 : vector<8x32xf32>
    %619 = math.tanh %618 : vector<8x32xf32>
    %cst_150 = arith.constant 1.000000e+00 : f32
    %620 = vector.broadcast %cst_150 : f32 to vector<8x32xf32>
    %621 = arith.subf %620, %612 : vector<8x32xf32>
    %622 = arith.mulf %621, %619 : vector<8x32xf32>
    %623 = arith.mulf %612, %553 : vector<8x32xf32>
    %624 = arith.addf %622, %623 : vector<8x32xf32>
    %625 = vector.extract_strided_slice %594 {offsets = [0, 0], sizes = [8, 32], strides = [1, 1]} : vector<8x96xf32> to vector<8x32xf32>
    %626 = vector.extract_strided_slice %596 {offsets = [0, 0], sizes = [8, 32], strides = [1, 1]} : vector<8x96xf32> to vector<8x32xf32>
    %627 = arith.addf %625, %626 : vector<8x32xf32>
    %628 = arith.negf %627 : vector<8x32xf32>
    %629 = math.exp %628 : vector<8x32xf32>
    %cst_151 = arith.constant 1.000000e+00 : f32
    %630 = vector.broadcast %cst_151 : f32 to vector<8x32xf32>
    %631 = arith.addf %630, %629 : vector<8x32xf32>
    %632 = arith.divf %630, %631 : vector<8x32xf32>
    %633 = vector.extract_strided_slice %594 {offsets = [0, 32], sizes = [8, 32], strides = [1, 1]} : vector<8x96xf32> to vector<8x32xf32>
    %634 = vector.extract_strided_slice %596 {offsets = [0, 32], sizes = [8, 32], strides = [1, 1]} : vector<8x96xf32> to vector<8x32xf32>
    %635 = arith.addf %633, %634 : vector<8x32xf32>
    %636 = arith.negf %635 : vector<8x32xf32>
    %637 = math.exp %636 : vector<8x32xf32>
    %cst_152 = arith.constant 1.000000e+00 : f32
    %638 = vector.broadcast %cst_152 : f32 to vector<8x32xf32>
    %639 = arith.addf %638, %637 : vector<8x32xf32>
    %640 = arith.divf %638, %639 : vector<8x32xf32>
    %641 = vector.extract_strided_slice %594 {offsets = [0, 64], sizes = [8, 32], strides = [1, 1]} : vector<8x96xf32> to vector<8x32xf32>
    %642 = vector.extract_strided_slice %596 {offsets = [0, 64], sizes = [8, 32], strides = [1, 1]} : vector<8x96xf32> to vector<8x32xf32>
    %643 = vector.broadcast %13 : vector<1x32xf32> to vector<8x32xf32>
    %644 = arith.addf %642, %643 : vector<8x32xf32>
    %645 = arith.mulf %632, %644 : vector<8x32xf32>
    %646 = arith.addf %641, %645 : vector<8x32xf32>
    %647 = math.tanh %646 : vector<8x32xf32>
    %cst_153 = arith.constant 1.000000e+00 : f32
    %648 = vector.broadcast %cst_153 : f32 to vector<8x32xf32>
    %649 = arith.subf %648, %640 : vector<8x32xf32>
    %650 = arith.mulf %649, %647 : vector<8x32xf32>
    %651 = arith.mulf %640, %581 : vector<8x32xf32>
    %652 = arith.addf %650, %651 : vector<8x32xf32>
    %653 = arith.index_cast %588 : i32 to index
    %c0_154 = arith.constant 0 : index
    %654 = vector.load %arg20[%653, %c0_154] : memref<128x32xf32, #tpu.memory_space<vmem>>, vector<8x32xf32>
    tpu.vector_store %arg20[%653, %c0_154], %624 {strides = array<i32>} : memref<128x32xf32, #tpu.memory_space<vmem>>, vector<8x32xf32>,
    %655 = arith.index_cast %590 : i32 to index
    %c0_155 = arith.constant 0 : index
    %656 = vector.load %arg21[%655, %c0_155] : memref<128x32xf32, #tpu.memory_space<vmem>>, vector<8x32xf32>
    tpu.vector_store %arg21[%655, %c0_155], %652 {strides = array<i32>} : memref<128x32xf32, #tpu.memory_space<vmem>>, vector<8x32xf32>,
    %c9_i32 = arith.constant 9 : i32
    %c15_i32_156 = arith.constant 15 : i32
    %657 = arith.subi %c15_i32_156, %c9_i32 : i32
    %c8_i32_157 = arith.constant 8 : i32
    %658 = arith.muli %c9_i32, %c8_i32_157 : i32
    %659 = tpu.assume_multiple %658, 8 : i32
    %c8_i32_158 = arith.constant 8 : i32
    %660 = arith.muli %657, %c8_i32_158 : i32
    %661 = tpu.assume_multiple %660, 8 : i32
    %662 = arith.index_cast %659 : i32 to index
    %c0_159 = arith.constant 0 : index
    %663 = vector.load %arg18[%662, %c0_159] : memref<128x96xf32, #tpu.memory_space<vmem>>, vector<8x96xf32>
    %664 = arith.index_cast %661 : i32 to index
    %c0_160 = arith.constant 0 : index
    %665 = vector.load %arg19[%664, %c0_160] : memref<128x96xf32, #tpu.memory_space<vmem>>, vector<8x96xf32>
    %cst_161 = arith.constant dense<0.000000e+00> : vector<8x96xf32>
    %666 = tpu.matmul %624, %10, %cst_161 {dimension_numbers = #tpu.dot_dimension_numbers<[1], [0], [0], [1], [0, 0, 1, 1], [], []>} : vector<8x32xf32>, vector<32x96xf32>, vector<8x96xf32> -> vector<8x96xf32>
    %cst_162 = arith.constant dense<0.000000e+00> : vector<8x96xf32>
    %667 = tpu.matmul %652, %11, %cst_162 {dimension_numbers = #tpu.dot_dimension_numbers<[1], [0], [0], [1], [0, 0, 1, 1], [], []>} : vector<8x32xf32>, vector<32x96xf32>, vector<8x96xf32> -> vector<8x96xf32>
    %668 = vector.extract_strided_slice %663 {offsets = [0, 0], sizes = [8, 32], strides = [1, 1]} : vector<8x96xf32> to vector<8x32xf32>
    %669 = vector.extract_strided_slice %666 {offsets = [0, 0], sizes = [8, 32], strides = [1, 1]} : vector<8x96xf32> to vector<8x32xf32>
    %670 = arith.addf %668, %669 : vector<8x32xf32>
    %671 = arith.negf %670 : vector<8x32xf32>
    %672 = math.exp %671 : vector<8x32xf32>
    %cst_163 = arith.constant 1.000000e+00 : f32
    %673 = vector.broadcast %cst_163 : f32 to vector<8x32xf32>
    %674 = arith.addf %673, %672 : vector<8x32xf32>
    %675 = arith.divf %673, %674 : vector<8x32xf32>
    %676 = vector.extract_strided_slice %663 {offsets = [0, 32], sizes = [8, 32], strides = [1, 1]} : vector<8x96xf32> to vector<8x32xf32>
    %677 = vector.extract_strided_slice %666 {offsets = [0, 32], sizes = [8, 32], strides = [1, 1]} : vector<8x96xf32> to vector<8x32xf32>
    %678 = arith.addf %676, %677 : vector<8x32xf32>
    %679 = arith.negf %678 : vector<8x32xf32>
    %680 = math.exp %679 : vector<8x32xf32>
    %cst_164 = arith.constant 1.000000e+00 : f32
    %681 = vector.broadcast %cst_164 : f32 to vector<8x32xf32>
    %682 = arith.addf %681, %680 : vector<8x32xf32>
    %683 = arith.divf %681, %682 : vector<8x32xf32>
    %684 = vector.extract_strided_slice %663 {offsets = [0, 64], sizes = [8, 32], strides = [1, 1]} : vector<8x96xf32> to vector<8x32xf32>
    %685 = vector.extract_strided_slice %666 {offsets = [0, 64], sizes = [8, 32], strides = [1, 1]} : vector<8x96xf32> to vector<8x32xf32>
    %686 = vector.broadcast %12 : vector<1x32xf32> to vector<8x32xf32>
    %687 = arith.addf %685, %686 : vector<8x32xf32>
    %688 = arith.mulf %675, %687 : vector<8x32xf32>
    %689 = arith.addf %684, %688 : vector<8x32xf32>
    %690 = math.tanh %689 : vector<8x32xf32>
    %cst_165 = arith.constant 1.000000e+00 : f32
    %691 = vector.broadcast %cst_165 : f32 to vector<8x32xf32>
    %692 = arith.subf %691, %683 : vector<8x32xf32>
    %693 = arith.mulf %692, %690 : vector<8x32xf32>
    %694 = arith.mulf %683, %624 : vector<8x32xf32>
    %695 = arith.addf %693, %694 : vector<8x32xf32>
    %696 = vector.extract_strided_slice %665 {offsets = [0, 0], sizes = [8, 32], strides = [1, 1]} : vector<8x96xf32> to vector<8x32xf32>
    %697 = vector.extract_strided_slice %667 {offsets = [0, 0], sizes = [8, 32], strides = [1, 1]} : vector<8x96xf32> to vector<8x32xf32>
    %698 = arith.addf %696, %697 : vector<8x32xf32>
    %699 = arith.negf %698 : vector<8x32xf32>
    %700 = math.exp %699 : vector<8x32xf32>
    %cst_166 = arith.constant 1.000000e+00 : f32
    %701 = vector.broadcast %cst_166 : f32 to vector<8x32xf32>
    %702 = arith.addf %701, %700 : vector<8x32xf32>
    %703 = arith.divf %701, %702 : vector<8x32xf32>
    %704 = vector.extract_strided_slice %665 {offsets = [0, 32], sizes = [8, 32], strides = [1, 1]} : vector<8x96xf32> to vector<8x32xf32>
    %705 = vector.extract_strided_slice %667 {offsets = [0, 32], sizes = [8, 32], strides = [1, 1]} : vector<8x96xf32> to vector<8x32xf32>
    %706 = arith.addf %704, %705 : vector<8x32xf32>
    %707 = arith.negf %706 : vector<8x32xf32>
    %708 = math.exp %707 : vector<8x32xf32>
    %cst_167 = arith.constant 1.000000e+00 : f32
    %709 = vector.broadcast %cst_167 : f32 to vector<8x32xf32>
    %710 = arith.addf %709, %708 : vector<8x32xf32>
    %711 = arith.divf %709, %710 : vector<8x32xf32>
    %712 = vector.extract_strided_slice %665 {offsets = [0, 64], sizes = [8, 32], strides = [1, 1]} : vector<8x96xf32> to vector<8x32xf32>
    %713 = vector.extract_strided_slice %667 {offsets = [0, 64], sizes = [8, 32], strides = [1, 1]} : vector<8x96xf32> to vector<8x32xf32>
    %714 = vector.broadcast %13 : vector<1x32xf32> to vector<8x32xf32>
    %715 = arith.addf %713, %714 : vector<8x32xf32>
    %716 = arith.mulf %703, %715 : vector<8x32xf32>
    %717 = arith.addf %712, %716 : vector<8x32xf32>
    %718 = math.tanh %717 : vector<8x32xf32>
    %cst_168 = arith.constant 1.000000e+00 : f32
    %719 = vector.broadcast %cst_168 : f32 to vector<8x32xf32>
    %720 = arith.subf %719, %711 : vector<8x32xf32>
    %721 = arith.mulf %720, %718 : vector<8x32xf32>
    %722 = arith.mulf %711, %652 : vector<8x32xf32>
    %723 = arith.addf %721, %722 : vector<8x32xf32>
    %724 = arith.index_cast %659 : i32 to index
    %c0_169 = arith.constant 0 : index
    %725 = vector.load %arg20[%724, %c0_169] : memref<128x32xf32, #tpu.memory_space<vmem>>, vector<8x32xf32>
    tpu.vector_store %arg20[%724, %c0_169], %695 {strides = array<i32>} : memref<128x32xf32, #tpu.memory_space<vmem>>, vector<8x32xf32>,
    %726 = arith.index_cast %661 : i32 to index
    %c0_170 = arith.constant 0 : index
    %727 = vector.load %arg21[%726, %c0_170] : memref<128x32xf32, #tpu.memory_space<vmem>>, vector<8x32xf32>
    tpu.vector_store %arg21[%726, %c0_170], %723 {strides = array<i32>} : memref<128x32xf32, #tpu.memory_space<vmem>>, vector<8x32xf32>,
    %c10_i32 = arith.constant 10 : i32
    %c15_i32_171 = arith.constant 15 : i32
    %728 = arith.subi %c15_i32_171, %c10_i32 : i32
    %c8_i32_172 = arith.constant 8 : i32
    %729 = arith.muli %c10_i32, %c8_i32_172 : i32
    %730 = tpu.assume_multiple %729, 8 : i32
    %c8_i32_173 = arith.constant 8 : i32
    %731 = arith.muli %728, %c8_i32_173 : i32
    %732 = tpu.assume_multiple %731, 8 : i32
    %733 = arith.index_cast %730 : i32 to index
    %c0_174 = arith.constant 0 : index
    %734 = vector.load %arg18[%733, %c0_174] : memref<128x96xf32, #tpu.memory_space<vmem>>, vector<8x96xf32>
    %735 = arith.index_cast %732 : i32 to index
    %c0_175 = arith.constant 0 : index
    %736 = vector.load %arg19[%735, %c0_175] : memref<128x96xf32, #tpu.memory_space<vmem>>, vector<8x96xf32>
    %cst_176 = arith.constant dense<0.000000e+00> : vector<8x96xf32>
    %737 = tpu.matmul %695, %10, %cst_176 {dimension_numbers = #tpu.dot_dimension_numbers<[1], [0], [0], [1], [0, 0, 1, 1], [], []>} : vector<8x32xf32>, vector<32x96xf32>, vector<8x96xf32> -> vector<8x96xf32>
    %cst_177 = arith.constant dense<0.000000e+00> : vector<8x96xf32>
    %738 = tpu.matmul %723, %11, %cst_177 {dimension_numbers = #tpu.dot_dimension_numbers<[1], [0], [0], [1], [0, 0, 1, 1], [], []>} : vector<8x32xf32>, vector<32x96xf32>, vector<8x96xf32> -> vector<8x96xf32>
    %739 = vector.extract_strided_slice %734 {offsets = [0, 0], sizes = [8, 32], strides = [1, 1]} : vector<8x96xf32> to vector<8x32xf32>
    %740 = vector.extract_strided_slice %737 {offsets = [0, 0], sizes = [8, 32], strides = [1, 1]} : vector<8x96xf32> to vector<8x32xf32>
    %741 = arith.addf %739, %740 : vector<8x32xf32>
    %742 = arith.negf %741 : vector<8x32xf32>
    %743 = math.exp %742 : vector<8x32xf32>
    %cst_178 = arith.constant 1.000000e+00 : f32
    %744 = vector.broadcast %cst_178 : f32 to vector<8x32xf32>
    %745 = arith.addf %744, %743 : vector<8x32xf32>
    %746 = arith.divf %744, %745 : vector<8x32xf32>
    %747 = vector.extract_strided_slice %734 {offsets = [0, 32], sizes = [8, 32], strides = [1, 1]} : vector<8x96xf32> to vector<8x32xf32>
    %748 = vector.extract_strided_slice %737 {offsets = [0, 32], sizes = [8, 32], strides = [1, 1]} : vector<8x96xf32> to vector<8x32xf32>
    %749 = arith.addf %747, %748 : vector<8x32xf32>
    %750 = arith.negf %749 : vector<8x32xf32>
    %751 = math.exp %750 : vector<8x32xf32>
    %cst_179 = arith.constant 1.000000e+00 : f32
    %752 = vector.broadcast %cst_179 : f32 to vector<8x32xf32>
    %753 = arith.addf %752, %751 : vector<8x32xf32>
    %754 = arith.divf %752, %753 : vector<8x32xf32>
    %755 = vector.extract_strided_slice %734 {offsets = [0, 64], sizes = [8, 32], strides = [1, 1]} : vector<8x96xf32> to vector<8x32xf32>
    %756 = vector.extract_strided_slice %737 {offsets = [0, 64], sizes = [8, 32], strides = [1, 1]} : vector<8x96xf32> to vector<8x32xf32>
    %757 = vector.broadcast %12 : vector<1x32xf32> to vector<8x32xf32>
    %758 = arith.addf %756, %757 : vector<8x32xf32>
    %759 = arith.mulf %746, %758 : vector<8x32xf32>
    %760 = arith.addf %755, %759 : vector<8x32xf32>
    %761 = math.tanh %760 : vector<8x32xf32>
    %cst_180 = arith.constant 1.000000e+00 : f32
    %762 = vector.broadcast %cst_180 : f32 to vector<8x32xf32>
    %763 = arith.subf %762, %754 : vector<8x32xf32>
    %764 = arith.mulf %763, %761 : vector<8x32xf32>
    %765 = arith.mulf %754, %695 : vector<8x32xf32>
    %766 = arith.addf %764, %765 : vector<8x32xf32>
    %767 = vector.extract_strided_slice %736 {offsets = [0, 0], sizes = [8, 32], strides = [1, 1]} : vector<8x96xf32> to vector<8x32xf32>
    %768 = vector.extract_strided_slice %738 {offsets = [0, 0], sizes = [8, 32], strides = [1, 1]} : vector<8x96xf32> to vector<8x32xf32>
    %769 = arith.addf %767, %768 : vector<8x32xf32>
    %770 = arith.negf %769 : vector<8x32xf32>
    %771 = math.exp %770 : vector<8x32xf32>
    %cst_181 = arith.constant 1.000000e+00 : f32
    %772 = vector.broadcast %cst_181 : f32 to vector<8x32xf32>
    %773 = arith.addf %772, %771 : vector<8x32xf32>
    %774 = arith.divf %772, %773 : vector<8x32xf32>
    %775 = vector.extract_strided_slice %736 {offsets = [0, 32], sizes = [8, 32], strides = [1, 1]} : vector<8x96xf32> to vector<8x32xf32>
    %776 = vector.extract_strided_slice %738 {offsets = [0, 32], sizes = [8, 32], strides = [1, 1]} : vector<8x96xf32> to vector<8x32xf32>
    %777 = arith.addf %775, %776 : vector<8x32xf32>
    %778 = arith.negf %777 : vector<8x32xf32>
    %779 = math.exp %778 : vector<8x32xf32>
    %cst_182 = arith.constant 1.000000e+00 : f32
    %780 = vector.broadcast %cst_182 : f32 to vector<8x32xf32>
    %781 = arith.addf %780, %779 : vector<8x32xf32>
    %782 = arith.divf %780, %781 : vector<8x32xf32>
    %783 = vector.extract_strided_slice %736 {offsets = [0, 64], sizes = [8, 32], strides = [1, 1]} : vector<8x96xf32> to vector<8x32xf32>
    %784 = vector.extract_strided_slice %738 {offsets = [0, 64], sizes = [8, 32], strides = [1, 1]} : vector<8x96xf32> to vector<8x32xf32>
    %785 = vector.broadcast %13 : vector<1x32xf32> to vector<8x32xf32>
    %786 = arith.addf %784, %785 : vector<8x32xf32>
    %787 = arith.mulf %774, %786 : vector<8x32xf32>
    %788 = arith.addf %783, %787 : vector<8x32xf32>
    %789 = math.tanh %788 : vector<8x32xf32>
    %cst_183 = arith.constant 1.000000e+00 : f32
    %790 = vector.broadcast %cst_183 : f32 to vector<8x32xf32>
    %791 = arith.subf %790, %782 : vector<8x32xf32>
    %792 = arith.mulf %791, %789 : vector<8x32xf32>
    %793 = arith.mulf %782, %723 : vector<8x32xf32>
    %794 = arith.addf %792, %793 : vector<8x32xf32>
    %795 = arith.index_cast %730 : i32 to index
    %c0_184 = arith.constant 0 : index
    %796 = vector.load %arg20[%795, %c0_184] : memref<128x32xf32, #tpu.memory_space<vmem>>, vector<8x32xf32>
    tpu.vector_store %arg20[%795, %c0_184], %766 {strides = array<i32>} : memref<128x32xf32, #tpu.memory_space<vmem>>, vector<8x32xf32>,
    %797 = arith.index_cast %732 : i32 to index
    %c0_185 = arith.constant 0 : index
    %798 = vector.load %arg21[%797, %c0_185] : memref<128x32xf32, #tpu.memory_space<vmem>>, vector<8x32xf32>
    tpu.vector_store %arg21[%797, %c0_185], %794 {strides = array<i32>} : memref<128x32xf32, #tpu.memory_space<vmem>>, vector<8x32xf32>,
    %c11_i32 = arith.constant 11 : i32
    %c15_i32_186 = arith.constant 15 : i32
    %799 = arith.subi %c15_i32_186, %c11_i32 : i32
    %c8_i32_187 = arith.constant 8 : i32
    %800 = arith.muli %c11_i32, %c8_i32_187 : i32
    %801 = tpu.assume_multiple %800, 8 : i32
    %c8_i32_188 = arith.constant 8 : i32
    %802 = arith.muli %799, %c8_i32_188 : i32
    %803 = tpu.assume_multiple %802, 8 : i32
    %804 = arith.index_cast %801 : i32 to index
    %c0_189 = arith.constant 0 : index
    %805 = vector.load %arg18[%804, %c0_189] : memref<128x96xf32, #tpu.memory_space<vmem>>, vector<8x96xf32>
    %806 = arith.index_cast %803 : i32 to index
    %c0_190 = arith.constant 0 : index
    %807 = vector.load %arg19[%806, %c0_190] : memref<128x96xf32, #tpu.memory_space<vmem>>, vector<8x96xf32>
    %cst_191 = arith.constant dense<0.000000e+00> : vector<8x96xf32>
    %808 = tpu.matmul %766, %10, %cst_191 {dimension_numbers = #tpu.dot_dimension_numbers<[1], [0], [0], [1], [0, 0, 1, 1], [], []>} : vector<8x32xf32>, vector<32x96xf32>, vector<8x96xf32> -> vector<8x96xf32>
    %cst_192 = arith.constant dense<0.000000e+00> : vector<8x96xf32>
    %809 = tpu.matmul %794, %11, %cst_192 {dimension_numbers = #tpu.dot_dimension_numbers<[1], [0], [0], [1], [0, 0, 1, 1], [], []>} : vector<8x32xf32>, vector<32x96xf32>, vector<8x96xf32> -> vector<8x96xf32>
    %810 = vector.extract_strided_slice %805 {offsets = [0, 0], sizes = [8, 32], strides = [1, 1]} : vector<8x96xf32> to vector<8x32xf32>
    %811 = vector.extract_strided_slice %808 {offsets = [0, 0], sizes = [8, 32], strides = [1, 1]} : vector<8x96xf32> to vector<8x32xf32>
    %812 = arith.addf %810, %811 : vector<8x32xf32>
    %813 = arith.negf %812 : vector<8x32xf32>
    %814 = math.exp %813 : vector<8x32xf32>
    %cst_193 = arith.constant 1.000000e+00 : f32
    %815 = vector.broadcast %cst_193 : f32 to vector<8x32xf32>
    %816 = arith.addf %815, %814 : vector<8x32xf32>
    %817 = arith.divf %815, %816 : vector<8x32xf32>
    %818 = vector.extract_strided_slice %805 {offsets = [0, 32], sizes = [8, 32], strides = [1, 1]} : vector<8x96xf32> to vector<8x32xf32>
    %819 = vector.extract_strided_slice %808 {offsets = [0, 32], sizes = [8, 32], strides = [1, 1]} : vector<8x96xf32> to vector<8x32xf32>
    %820 = arith.addf %818, %819 : vector<8x32xf32>
    %821 = arith.negf %820 : vector<8x32xf32>
    %822 = math.exp %821 : vector<8x32xf32>
    %cst_194 = arith.constant 1.000000e+00 : f32
    %823 = vector.broadcast %cst_194 : f32 to vector<8x32xf32>
    %824 = arith.addf %823, %822 : vector<8x32xf32>
    %825 = arith.divf %823, %824 : vector<8x32xf32>
    %826 = vector.extract_strided_slice %805 {offsets = [0, 64], sizes = [8, 32], strides = [1, 1]} : vector<8x96xf32> to vector<8x32xf32>
    %827 = vector.extract_strided_slice %808 {offsets = [0, 64], sizes = [8, 32], strides = [1, 1]} : vector<8x96xf32> to vector<8x32xf32>
    %828 = vector.broadcast %12 : vector<1x32xf32> to vector<8x32xf32>
    %829 = arith.addf %827, %828 : vector<8x32xf32>
    %830 = arith.mulf %817, %829 : vector<8x32xf32>
    %831 = arith.addf %826, %830 : vector<8x32xf32>
    %832 = math.tanh %831 : vector<8x32xf32>
    %cst_195 = arith.constant 1.000000e+00 : f32
    %833 = vector.broadcast %cst_195 : f32 to vector<8x32xf32>
    %834 = arith.subf %833, %825 : vector<8x32xf32>
    %835 = arith.mulf %834, %832 : vector<8x32xf32>
    %836 = arith.mulf %825, %766 : vector<8x32xf32>
    %837 = arith.addf %835, %836 : vector<8x32xf32>
    %838 = vector.extract_strided_slice %807 {offsets = [0, 0], sizes = [8, 32], strides = [1, 1]} : vector<8x96xf32> to vector<8x32xf32>
    %839 = vector.extract_strided_slice %809 {offsets = [0, 0], sizes = [8, 32], strides = [1, 1]} : vector<8x96xf32> to vector<8x32xf32>
    %840 = arith.addf %838, %839 : vector<8x32xf32>
    %841 = arith.negf %840 : vector<8x32xf32>
    %842 = math.exp %841 : vector<8x32xf32>
    %cst_196 = arith.constant 1.000000e+00 : f32
    %843 = vector.broadcast %cst_196 : f32 to vector<8x32xf32>
    %844 = arith.addf %843, %842 : vector<8x32xf32>
    %845 = arith.divf %843, %844 : vector<8x32xf32>
    %846 = vector.extract_strided_slice %807 {offsets = [0, 32], sizes = [8, 32], strides = [1, 1]} : vector<8x96xf32> to vector<8x32xf32>
    %847 = vector.extract_strided_slice %809 {offsets = [0, 32], sizes = [8, 32], strides = [1, 1]} : vector<8x96xf32> to vector<8x32xf32>
    %848 = arith.addf %846, %847 : vector<8x32xf32>
    %849 = arith.negf %848 : vector<8x32xf32>
    %850 = math.exp %849 : vector<8x32xf32>
    %cst_197 = arith.constant 1.000000e+00 : f32
    %851 = vector.broadcast %cst_197 : f32 to vector<8x32xf32>
    %852 = arith.addf %851, %850 : vector<8x32xf32>
    %853 = arith.divf %851, %852 : vector<8x32xf32>
    %854 = vector.extract_strided_slice %807 {offsets = [0, 64], sizes = [8, 32], strides = [1, 1]} : vector<8x96xf32> to vector<8x32xf32>
    %855 = vector.extract_strided_slice %809 {offsets = [0, 64], sizes = [8, 32], strides = [1, 1]} : vector<8x96xf32> to vector<8x32xf32>
    %856 = vector.broadcast %13 : vector<1x32xf32> to vector<8x32xf32>
    %857 = arith.addf %855, %856 : vector<8x32xf32>
    %858 = arith.mulf %845, %857 : vector<8x32xf32>
    %859 = arith.addf %854, %858 : vector<8x32xf32>
    %860 = math.tanh %859 : vector<8x32xf32>
    %cst_198 = arith.constant 1.000000e+00 : f32
    %861 = vector.broadcast %cst_198 : f32 to vector<8x32xf32>
    %862 = arith.subf %861, %853 : vector<8x32xf32>
    %863 = arith.mulf %862, %860 : vector<8x32xf32>
    %864 = arith.mulf %853, %794 : vector<8x32xf32>
    %865 = arith.addf %863, %864 : vector<8x32xf32>
    %866 = arith.index_cast %801 : i32 to index
    %c0_199 = arith.constant 0 : index
    %867 = vector.load %arg20[%866, %c0_199] : memref<128x32xf32, #tpu.memory_space<vmem>>, vector<8x32xf32>
    tpu.vector_store %arg20[%866, %c0_199], %837 {strides = array<i32>} : memref<128x32xf32, #tpu.memory_space<vmem>>, vector<8x32xf32>,
    %868 = arith.index_cast %803 : i32 to index
    %c0_200 = arith.constant 0 : index
    %869 = vector.load %arg21[%868, %c0_200] : memref<128x32xf32, #tpu.memory_space<vmem>>, vector<8x32xf32>
    tpu.vector_store %arg21[%868, %c0_200], %865 {strides = array<i32>} : memref<128x32xf32, #tpu.memory_space<vmem>>, vector<8x32xf32>,
    %c12_i32 = arith.constant 12 : i32
    %c15_i32_201 = arith.constant 15 : i32
    %870 = arith.subi %c15_i32_201, %c12_i32 : i32
    %c8_i32_202 = arith.constant 8 : i32
    %871 = arith.muli %c12_i32, %c8_i32_202 : i32
    %872 = tpu.assume_multiple %871, 8 : i32
    %c8_i32_203 = arith.constant 8 : i32
    %873 = arith.muli %870, %c8_i32_203 : i32
    %874 = tpu.assume_multiple %873, 8 : i32
    %875 = arith.index_cast %872 : i32 to index
    %c0_204 = arith.constant 0 : index
    %876 = vector.load %arg18[%875, %c0_204] : memref<128x96xf32, #tpu.memory_space<vmem>>, vector<8x96xf32>
    %877 = arith.index_cast %874 : i32 to index
    %c0_205 = arith.constant 0 : index
    %878 = vector.load %arg19[%877, %c0_205] : memref<128x96xf32, #tpu.memory_space<vmem>>, vector<8x96xf32>
    %cst_206 = arith.constant dense<0.000000e+00> : vector<8x96xf32>
    %879 = tpu.matmul %837, %10, %cst_206 {dimension_numbers = #tpu.dot_dimension_numbers<[1], [0], [0], [1], [0, 0, 1, 1], [], []>} : vector<8x32xf32>, vector<32x96xf32>, vector<8x96xf32> -> vector<8x96xf32>
    %cst_207 = arith.constant dense<0.000000e+00> : vector<8x96xf32>
    %880 = tpu.matmul %865, %11, %cst_207 {dimension_numbers = #tpu.dot_dimension_numbers<[1], [0], [0], [1], [0, 0, 1, 1], [], []>} : vector<8x32xf32>, vector<32x96xf32>, vector<8x96xf32> -> vector<8x96xf32>
    %881 = vector.extract_strided_slice %876 {offsets = [0, 0], sizes = [8, 32], strides = [1, 1]} : vector<8x96xf32> to vector<8x32xf32>
    %882 = vector.extract_strided_slice %879 {offsets = [0, 0], sizes = [8, 32], strides = [1, 1]} : vector<8x96xf32> to vector<8x32xf32>
    %883 = arith.addf %881, %882 : vector<8x32xf32>
    %884 = arith.negf %883 : vector<8x32xf32>
    %885 = math.exp %884 : vector<8x32xf32>
    %cst_208 = arith.constant 1.000000e+00 : f32
    %886 = vector.broadcast %cst_208 : f32 to vector<8x32xf32>
    %887 = arith.addf %886, %885 : vector<8x32xf32>
    %888 = arith.divf %886, %887 : vector<8x32xf32>
    %889 = vector.extract_strided_slice %876 {offsets = [0, 32], sizes = [8, 32], strides = [1, 1]} : vector<8x96xf32> to vector<8x32xf32>
    %890 = vector.extract_strided_slice %879 {offsets = [0, 32], sizes = [8, 32], strides = [1, 1]} : vector<8x96xf32> to vector<8x32xf32>
    %891 = arith.addf %889, %890 : vector<8x32xf32>
    %892 = arith.negf %891 : vector<8x32xf32>
    %893 = math.exp %892 : vector<8x32xf32>
    %cst_209 = arith.constant 1.000000e+00 : f32
    %894 = vector.broadcast %cst_209 : f32 to vector<8x32xf32>
    %895 = arith.addf %894, %893 : vector<8x32xf32>
    %896 = arith.divf %894, %895 : vector<8x32xf32>
    %897 = vector.extract_strided_slice %876 {offsets = [0, 64], sizes = [8, 32], strides = [1, 1]} : vector<8x96xf32> to vector<8x32xf32>
    %898 = vector.extract_strided_slice %879 {offsets = [0, 64], sizes = [8, 32], strides = [1, 1]} : vector<8x96xf32> to vector<8x32xf32>
    %899 = vector.broadcast %12 : vector<1x32xf32> to vector<8x32xf32>
    %900 = arith.addf %898, %899 : vector<8x32xf32>
    %901 = arith.mulf %888, %900 : vector<8x32xf32>
    %902 = arith.addf %897, %901 : vector<8x32xf32>
    %903 = math.tanh %902 : vector<8x32xf32>
    %cst_210 = arith.constant 1.000000e+00 : f32
    %904 = vector.broadcast %cst_210 : f32 to vector<8x32xf32>
    %905 = arith.subf %904, %896 : vector<8x32xf32>
    %906 = arith.mulf %905, %903 : vector<8x32xf32>
    %907 = arith.mulf %896, %837 : vector<8x32xf32>
    %908 = arith.addf %906, %907 : vector<8x32xf32>
    %909 = vector.extract_strided_slice %878 {offsets = [0, 0], sizes = [8, 32], strides = [1, 1]} : vector<8x96xf32> to vector<8x32xf32>
    %910 = vector.extract_strided_slice %880 {offsets = [0, 0], sizes = [8, 32], strides = [1, 1]} : vector<8x96xf32> to vector<8x32xf32>
    %911 = arith.addf %909, %910 : vector<8x32xf32>
    %912 = arith.negf %911 : vector<8x32xf32>
    %913 = math.exp %912 : vector<8x32xf32>
    %cst_211 = arith.constant 1.000000e+00 : f32
    %914 = vector.broadcast %cst_211 : f32 to vector<8x32xf32>
    %915 = arith.addf %914, %913 : vector<8x32xf32>
    %916 = arith.divf %914, %915 : vector<8x32xf32>
    %917 = vector.extract_strided_slice %878 {offsets = [0, 32], sizes = [8, 32], strides = [1, 1]} : vector<8x96xf32> to vector<8x32xf32>
    %918 = vector.extract_strided_slice %880 {offsets = [0, 32], sizes = [8, 32], strides = [1, 1]} : vector<8x96xf32> to vector<8x32xf32>
    %919 = arith.addf %917, %918 : vector<8x32xf32>
    %920 = arith.negf %919 : vector<8x32xf32>
    %921 = math.exp %920 : vector<8x32xf32>
    %cst_212 = arith.constant 1.000000e+00 : f32
    %922 = vector.broadcast %cst_212 : f32 to vector<8x32xf32>
    %923 = arith.addf %922, %921 : vector<8x32xf32>
    %924 = arith.divf %922, %923 : vector<8x32xf32>
    %925 = vector.extract_strided_slice %878 {offsets = [0, 64], sizes = [8, 32], strides = [1, 1]} : vector<8x96xf32> to vector<8x32xf32>
    %926 = vector.extract_strided_slice %880 {offsets = [0, 64], sizes = [8, 32], strides = [1, 1]} : vector<8x96xf32> to vector<8x32xf32>
    %927 = vector.broadcast %13 : vector<1x32xf32> to vector<8x32xf32>
    %928 = arith.addf %926, %927 : vector<8x32xf32>
    %929 = arith.mulf %916, %928 : vector<8x32xf32>
    %930 = arith.addf %925, %929 : vector<8x32xf32>
    %931 = math.tanh %930 : vector<8x32xf32>
    %cst_213 = arith.constant 1.000000e+00 : f32
    %932 = vector.broadcast %cst_213 : f32 to vector<8x32xf32>
    %933 = arith.subf %932, %924 : vector<8x32xf32>
    %934 = arith.mulf %933, %931 : vector<8x32xf32>
    %935 = arith.mulf %924, %865 : vector<8x32xf32>
    %936 = arith.addf %934, %935 : vector<8x32xf32>
    %937 = arith.index_cast %872 : i32 to index
    %c0_214 = arith.constant 0 : index
    %938 = vector.load %arg20[%937, %c0_214] : memref<128x32xf32, #tpu.memory_space<vmem>>, vector<8x32xf32>
    tpu.vector_store %arg20[%937, %c0_214], %908 {strides = array<i32>} : memref<128x32xf32, #tpu.memory_space<vmem>>, vector<8x32xf32>,
    %939 = arith.index_cast %874 : i32 to index
    %c0_215 = arith.constant 0 : index
    %940 = vector.load %arg21[%939, %c0_215] : memref<128x32xf32, #tpu.memory_space<vmem>>, vector<8x32xf32>
    tpu.vector_store %arg21[%939, %c0_215], %936 {strides = array<i32>} : memref<128x32xf32, #tpu.memory_space<vmem>>, vector<8x32xf32>,
    %c13_i32 = arith.constant 13 : i32
    %c15_i32_216 = arith.constant 15 : i32
    %941 = arith.subi %c15_i32_216, %c13_i32 : i32
    %c8_i32_217 = arith.constant 8 : i32
    %942 = arith.muli %c13_i32, %c8_i32_217 : i32
    %943 = tpu.assume_multiple %942, 8 : i32
    %c8_i32_218 = arith.constant 8 : i32
    %944 = arith.muli %941, %c8_i32_218 : i32
    %945 = tpu.assume_multiple %944, 8 : i32
    %946 = arith.index_cast %943 : i32 to index
    %c0_219 = arith.constant 0 : index
    %947 = vector.load %arg18[%946, %c0_219] : memref<128x96xf32, #tpu.memory_space<vmem>>, vector<8x96xf32>
    %948 = arith.index_cast %945 : i32 to index
    %c0_220 = arith.constant 0 : index
    %949 = vector.load %arg19[%948, %c0_220] : memref<128x96xf32, #tpu.memory_space<vmem>>, vector<8x96xf32>
    %cst_221 = arith.constant dense<0.000000e+00> : vector<8x96xf32>
    %950 = tpu.matmul %908, %10, %cst_221 {dimension_numbers = #tpu.dot_dimension_numbers<[1], [0], [0], [1], [0, 0, 1, 1], [], []>} : vector<8x32xf32>, vector<32x96xf32>, vector<8x96xf32> -> vector<8x96xf32>
    %cst_222 = arith.constant dense<0.000000e+00> : vector<8x96xf32>
    %951 = tpu.matmul %936, %11, %cst_222 {dimension_numbers = #tpu.dot_dimension_numbers<[1], [0], [0], [1], [0, 0, 1, 1], [], []>} : vector<8x32xf32>, vector<32x96xf32>, vector<8x96xf32> -> vector<8x96xf32>
    %952 = vector.extract_strided_slice %947 {offsets = [0, 0], sizes = [8, 32], strides = [1, 1]} : vector<8x96xf32> to vector<8x32xf32>
    %953 = vector.extract_strided_slice %950 {offsets = [0, 0], sizes = [8, 32], strides = [1, 1]} : vector<8x96xf32> to vector<8x32xf32>
    %954 = arith.addf %952, %953 : vector<8x32xf32>
    %955 = arith.negf %954 : vector<8x32xf32>
    %956 = math.exp %955 : vector<8x32xf32>
    %cst_223 = arith.constant 1.000000e+00 : f32
    %957 = vector.broadcast %cst_223 : f32 to vector<8x32xf32>
    %958 = arith.addf %957, %956 : vector<8x32xf32>
    %959 = arith.divf %957, %958 : vector<8x32xf32>
    %960 = vector.extract_strided_slice %947 {offsets = [0, 32], sizes = [8, 32], strides = [1, 1]} : vector<8x96xf32> to vector<8x32xf32>
    %961 = vector.extract_strided_slice %950 {offsets = [0, 32], sizes = [8, 32], strides = [1, 1]} : vector<8x96xf32> to vector<8x32xf32>
    %962 = arith.addf %960, %961 : vector<8x32xf32>
    %963 = arith.negf %962 : vector<8x32xf32>
    %964 = math.exp %963 : vector<8x32xf32>
    %cst_224 = arith.constant 1.000000e+00 : f32
    %965 = vector.broadcast %cst_224 : f32 to vector<8x32xf32>
    %966 = arith.addf %965, %964 : vector<8x32xf32>
    %967 = arith.divf %965, %966 : vector<8x32xf32>
    %968 = vector.extract_strided_slice %947 {offsets = [0, 64], sizes = [8, 32], strides = [1, 1]} : vector<8x96xf32> to vector<8x32xf32>
    %969 = vector.extract_strided_slice %950 {offsets = [0, 64], sizes = [8, 32], strides = [1, 1]} : vector<8x96xf32> to vector<8x32xf32>
    %970 = vector.broadcast %12 : vector<1x32xf32> to vector<8x32xf32>
    %971 = arith.addf %969, %970 : vector<8x32xf32>
    %972 = arith.mulf %959, %971 : vector<8x32xf32>
    %973 = arith.addf %968, %972 : vector<8x32xf32>
    %974 = math.tanh %973 : vector<8x32xf32>
    %cst_225 = arith.constant 1.000000e+00 : f32
    %975 = vector.broadcast %cst_225 : f32 to vector<8x32xf32>
    %976 = arith.subf %975, %967 : vector<8x32xf32>
    %977 = arith.mulf %976, %974 : vector<8x32xf32>
    %978 = arith.mulf %967, %908 : vector<8x32xf32>
    %979 = arith.addf %977, %978 : vector<8x32xf32>
    %980 = vector.extract_strided_slice %949 {offsets = [0, 0], sizes = [8, 32], strides = [1, 1]} : vector<8x96xf32> to vector<8x32xf32>
    %981 = vector.extract_strided_slice %951 {offsets = [0, 0], sizes = [8, 32], strides = [1, 1]} : vector<8x96xf32> to vector<8x32xf32>
    %982 = arith.addf %980, %981 : vector<8x32xf32>
    %983 = arith.negf %982 : vector<8x32xf32>
    %984 = math.exp %983 : vector<8x32xf32>
    %cst_226 = arith.constant 1.000000e+00 : f32
    %985 = vector.broadcast %cst_226 : f32 to vector<8x32xf32>
    %986 = arith.addf %985, %984 : vector<8x32xf32>
    %987 = arith.divf %985, %986 : vector<8x32xf32>
    %988 = vector.extract_strided_slice %949 {offsets = [0, 32], sizes = [8, 32], strides = [1, 1]} : vector<8x96xf32> to vector<8x32xf32>
    %989 = vector.extract_strided_slice %951 {offsets = [0, 32], sizes = [8, 32], strides = [1, 1]} : vector<8x96xf32> to vector<8x32xf32>
    %990 = arith.addf %988, %989 : vector<8x32xf32>
    %991 = arith.negf %990 : vector<8x32xf32>
    %992 = math.exp %991 : vector<8x32xf32>
    %cst_227 = arith.constant 1.000000e+00 : f32
    %993 = vector.broadcast %cst_227 : f32 to vector<8x32xf32>
    %994 = arith.addf %993, %992 : vector<8x32xf32>
    %995 = arith.divf %993, %994 : vector<8x32xf32>
    %996 = vector.extract_strided_slice %949 {offsets = [0, 64], sizes = [8, 32], strides = [1, 1]} : vector<8x96xf32> to vector<8x32xf32>
    %997 = vector.extract_strided_slice %951 {offsets = [0, 64], sizes = [8, 32], strides = [1, 1]} : vector<8x96xf32> to vector<8x32xf32>
    %998 = vector.broadcast %13 : vector<1x32xf32> to vector<8x32xf32>
    %999 = arith.addf %997, %998 : vector<8x32xf32>
    %1000 = arith.mulf %987, %999 : vector<8x32xf32>
    %1001 = arith.addf %996, %1000 : vector<8x32xf32>
    %1002 = math.tanh %1001 : vector<8x32xf32>
    %cst_228 = arith.constant 1.000000e+00 : f32
    %1003 = vector.broadcast %cst_228 : f32 to vector<8x32xf32>
    %1004 = arith.subf %1003, %995 : vector<8x32xf32>
    %1005 = arith.mulf %1004, %1002 : vector<8x32xf32>
    %1006 = arith.mulf %995, %936 : vector<8x32xf32>
    %1007 = arith.addf %1005, %1006 : vector<8x32xf32>
    %1008 = arith.index_cast %943 : i32 to index
    %c0_229 = arith.constant 0 : index
    %1009 = vector.load %arg20[%1008, %c0_229] : memref<128x32xf32, #tpu.memory_space<vmem>>, vector<8x32xf32>
    tpu.vector_store %arg20[%1008, %c0_229], %979 {strides = array<i32>} : memref<128x32xf32, #tpu.memory_space<vmem>>, vector<8x32xf32>,
    %1010 = arith.index_cast %945 : i32 to index
    %c0_230 = arith.constant 0 : index
    %1011 = vector.load %arg21[%1010, %c0_230] : memref<128x32xf32, #tpu.memory_space<vmem>>, vector<8x32xf32>
    tpu.vector_store %arg21[%1010, %c0_230], %1007 {strides = array<i32>} : memref<128x32xf32, #tpu.memory_space<vmem>>, vector<8x32xf32>,
    %c14_i32 = arith.constant 14 : i32
    %c15_i32_231 = arith.constant 15 : i32
    %1012 = arith.subi %c15_i32_231, %c14_i32 : i32
    %c8_i32_232 = arith.constant 8 : i32
    %1013 = arith.muli %c14_i32, %c8_i32_232 : i32
    %1014 = tpu.assume_multiple %1013, 8 : i32
    %c8_i32_233 = arith.constant 8 : i32
    %1015 = arith.muli %1012, %c8_i32_233 : i32
    %1016 = tpu.assume_multiple %1015, 8 : i32
    %1017 = arith.index_cast %1014 : i32 to index
    %c0_234 = arith.constant 0 : index
    %1018 = vector.load %arg18[%1017, %c0_234] : memref<128x96xf32, #tpu.memory_space<vmem>>, vector<8x96xf32>
    %1019 = arith.index_cast %1016 : i32 to index
    %c0_235 = arith.constant 0 : index
    %1020 = vector.load %arg19[%1019, %c0_235] : memref<128x96xf32, #tpu.memory_space<vmem>>, vector<8x96xf32>
    %cst_236 = arith.constant dense<0.000000e+00> : vector<8x96xf32>
    %1021 = tpu.matmul %979, %10, %cst_236 {dimension_numbers = #tpu.dot_dimension_numbers<[1], [0], [0], [1], [0, 0, 1, 1], [], []>} : vector<8x32xf32>, vector<32x96xf32>, vector<8x96xf32> -> vector<8x96xf32>
    %cst_237 = arith.constant dense<0.000000e+00> : vector<8x96xf32>
    %1022 = tpu.matmul %1007, %11, %cst_237 {dimension_numbers = #tpu.dot_dimension_numbers<[1], [0], [0], [1], [0, 0, 1, 1], [], []>} : vector<8x32xf32>, vector<32x96xf32>, vector<8x96xf32> -> vector<8x96xf32>
    %1023 = vector.extract_strided_slice %1018 {offsets = [0, 0], sizes = [8, 32], strides = [1, 1]} : vector<8x96xf32> to vector<8x32xf32>
    %1024 = vector.extract_strided_slice %1021 {offsets = [0, 0], sizes = [8, 32], strides = [1, 1]} : vector<8x96xf32> to vector<8x32xf32>
    %1025 = arith.addf %1023, %1024 : vector<8x32xf32>
    %1026 = arith.negf %1025 : vector<8x32xf32>
    %1027 = math.exp %1026 : vector<8x32xf32>
    %cst_238 = arith.constant 1.000000e+00 : f32
    %1028 = vector.broadcast %cst_238 : f32 to vector<8x32xf32>
    %1029 = arith.addf %1028, %1027 : vector<8x32xf32>
    %1030 = arith.divf %1028, %1029 : vector<8x32xf32>
    %1031 = vector.extract_strided_slice %1018 {offsets = [0, 32], sizes = [8, 32], strides = [1, 1]} : vector<8x96xf32> to vector<8x32xf32>
    %1032 = vector.extract_strided_slice %1021 {offsets = [0, 32], sizes = [8, 32], strides = [1, 1]} : vector<8x96xf32> to vector<8x32xf32>
    %1033 = arith.addf %1031, %1032 : vector<8x32xf32>
    %1034 = arith.negf %1033 : vector<8x32xf32>
    %1035 = math.exp %1034 : vector<8x32xf32>
    %cst_239 = arith.constant 1.000000e+00 : f32
    %1036 = vector.broadcast %cst_239 : f32 to vector<8x32xf32>
    %1037 = arith.addf %1036, %1035 : vector<8x32xf32>
    %1038 = arith.divf %1036, %1037 : vector<8x32xf32>
    %1039 = vector.extract_strided_slice %1018 {offsets = [0, 64], sizes = [8, 32], strides = [1, 1]} : vector<8x96xf32> to vector<8x32xf32>
    %1040 = vector.extract_strided_slice %1021 {offsets = [0, 64], sizes = [8, 32], strides = [1, 1]} : vector<8x96xf32> to vector<8x32xf32>
    %1041 = vector.broadcast %12 : vector<1x32xf32> to vector<8x32xf32>
    %1042 = arith.addf %1040, %1041 : vector<8x32xf32>
    %1043 = arith.mulf %1030, %1042 : vector<8x32xf32>
    %1044 = arith.addf %1039, %1043 : vector<8x32xf32>
    %1045 = math.tanh %1044 : vector<8x32xf32>
    %cst_240 = arith.constant 1.000000e+00 : f32
    %1046 = vector.broadcast %cst_240 : f32 to vector<8x32xf32>
    %1047 = arith.subf %1046, %1038 : vector<8x32xf32>
    %1048 = arith.mulf %1047, %1045 : vector<8x32xf32>
    %1049 = arith.mulf %1038, %979 : vector<8x32xf32>
    %1050 = arith.addf %1048, %1049 : vector<8x32xf32>
    %1051 = vector.extract_strided_slice %1020 {offsets = [0, 0], sizes = [8, 32], strides = [1, 1]} : vector<8x96xf32> to vector<8x32xf32>
    %1052 = vector.extract_strided_slice %1022 {offsets = [0, 0], sizes = [8, 32], strides = [1, 1]} : vector<8x96xf32> to vector<8x32xf32>
    %1053 = arith.addf %1051, %1052 : vector<8x32xf32>
    %1054 = arith.negf %1053 : vector<8x32xf32>
    %1055 = math.exp %1054 : vector<8x32xf32>
    %cst_241 = arith.constant 1.000000e+00 : f32
    %1056 = vector.broadcast %cst_241 : f32 to vector<8x32xf32>
    %1057 = arith.addf %1056, %1055 : vector<8x32xf32>
    %1058 = arith.divf %1056, %1057 : vector<8x32xf32>
    %1059 = vector.extract_strided_slice %1020 {offsets = [0, 32], sizes = [8, 32], strides = [1, 1]} : vector<8x96xf32> to vector<8x32xf32>
    %1060 = vector.extract_strided_slice %1022 {offsets = [0, 32], sizes = [8, 32], strides = [1, 1]} : vector<8x96xf32> to vector<8x32xf32>
    %1061 = arith.addf %1059, %1060 : vector<8x32xf32>
    %1062 = arith.negf %1061 : vector<8x32xf32>
    %1063 = math.exp %1062 : vector<8x32xf32>
    %cst_242 = arith.constant 1.000000e+00 : f32
    %1064 = vector.broadcast %cst_242 : f32 to vector<8x32xf32>
    %1065 = arith.addf %1064, %1063 : vector<8x32xf32>
    %1066 = arith.divf %1064, %1065 : vector<8x32xf32>
    %1067 = vector.extract_strided_slice %1020 {offsets = [0, 64], sizes = [8, 32], strides = [1, 1]} : vector<8x96xf32> to vector<8x32xf32>
    %1068 = vector.extract_strided_slice %1022 {offsets = [0, 64], sizes = [8, 32], strides = [1, 1]} : vector<8x96xf32> to vector<8x32xf32>
    %1069 = vector.broadcast %13 : vector<1x32xf32> to vector<8x32xf32>
    %1070 = arith.addf %1068, %1069 : vector<8x32xf32>
    %1071 = arith.mulf %1058, %1070 : vector<8x32xf32>
    %1072 = arith.addf %1067, %1071 : vector<8x32xf32>
    %1073 = math.tanh %1072 : vector<8x32xf32>
    %cst_243 = arith.constant 1.000000e+00 : f32
    %1074 = vector.broadcast %cst_243 : f32 to vector<8x32xf32>
    %1075 = arith.subf %1074, %1066 : vector<8x32xf32>
    %1076 = arith.mulf %1075, %1073 : vector<8x32xf32>
    %1077 = arith.mulf %1066, %1007 : vector<8x32xf32>
    %1078 = arith.addf %1076, %1077 : vector<8x32xf32>
    %1079 = arith.index_cast %1014 : i32 to index
    %c0_244 = arith.constant 0 : index
    %1080 = vector.load %arg20[%1079, %c0_244] : memref<128x32xf32, #tpu.memory_space<vmem>>, vector<8x32xf32>
    tpu.vector_store %arg20[%1079, %c0_244], %1050 {strides = array<i32>} : memref<128x32xf32, #tpu.memory_space<vmem>>, vector<8x32xf32>,
    %1081 = arith.index_cast %1016 : i32 to index
    %c0_245 = arith.constant 0 : index
    %1082 = vector.load %arg21[%1081, %c0_245] : memref<128x32xf32, #tpu.memory_space<vmem>>, vector<8x32xf32>
    tpu.vector_store %arg21[%1081, %c0_245], %1078 {strides = array<i32>} : memref<128x32xf32, #tpu.memory_space<vmem>>, vector<8x32xf32>,
    %c15_i32_246 = arith.constant 15 : i32
    %c15_i32_247 = arith.constant 15 : i32
    %1083 = arith.subi %c15_i32_247, %c15_i32_246 : i32
    %c8_i32_248 = arith.constant 8 : i32
    %1084 = arith.muli %c15_i32_246, %c8_i32_248 : i32
    %1085 = tpu.assume_multiple %1084, 8 : i32
    %c8_i32_249 = arith.constant 8 : i32
    %1086 = arith.muli %1083, %c8_i32_249 : i32
    %1087 = tpu.assume_multiple %1086, 8 : i32
    %1088 = arith.index_cast %1085 : i32 to index
    %c0_250 = arith.constant 0 : index
    %1089 = vector.load %arg18[%1088, %c0_250] : memref<128x96xf32, #tpu.memory_space<vmem>>, vector<8x96xf32>
    %1090 = arith.index_cast %1087 : i32 to index
    %c0_251 = arith.constant 0 : index
    %1091 = vector.load %arg19[%1090, %c0_251] : memref<128x96xf32, #tpu.memory_space<vmem>>, vector<8x96xf32>
    %cst_252 = arith.constant dense<0.000000e+00> : vector<8x96xf32>
    %1092 = tpu.matmul %1050, %10, %cst_252 {dimension_numbers = #tpu.dot_dimension_numbers<[1], [0], [0], [1], [0, 0, 1, 1], [], []>} : vector<8x32xf32>, vector<32x96xf32>, vector<8x96xf32> -> vector<8x96xf32>
    %cst_253 = arith.constant dense<0.000000e+00> : vector<8x96xf32>
    %1093 = tpu.matmul %1078, %11, %cst_253 {dimension_numbers = #tpu.dot_dimension_numbers<[1], [0], [0], [1], [0, 0, 1, 1], [], []>} : vector<8x32xf32>, vector<32x96xf32>, vector<8x96xf32> -> vector<8x96xf32>
    %1094 = vector.extract_strided_slice %1089 {offsets = [0, 0], sizes = [8, 32], strides = [1, 1]} : vector<8x96xf32> to vector<8x32xf32>
    %1095 = vector.extract_strided_slice %1092 {offsets = [0, 0], sizes = [8, 32], strides = [1, 1]} : vector<8x96xf32> to vector<8x32xf32>
    %1096 = arith.addf %1094, %1095 : vector<8x32xf32>
    %1097 = arith.negf %1096 : vector<8x32xf32>
    %1098 = math.exp %1097 : vector<8x32xf32>
    %cst_254 = arith.constant 1.000000e+00 : f32
    %1099 = vector.broadcast %cst_254 : f32 to vector<8x32xf32>
    %1100 = arith.addf %1099, %1098 : vector<8x32xf32>
    %1101 = arith.divf %1099, %1100 : vector<8x32xf32>
    %1102 = vector.extract_strided_slice %1089 {offsets = [0, 32], sizes = [8, 32], strides = [1, 1]} : vector<8x96xf32> to vector<8x32xf32>
    %1103 = vector.extract_strided_slice %1092 {offsets = [0, 32], sizes = [8, 32], strides = [1, 1]} : vector<8x96xf32> to vector<8x32xf32>
    %1104 = arith.addf %1102, %1103 : vector<8x32xf32>
    %1105 = arith.negf %1104 : vector<8x32xf32>
    %1106 = math.exp %1105 : vector<8x32xf32>
    %cst_255 = arith.constant 1.000000e+00 : f32
    %1107 = vector.broadcast %cst_255 : f32 to vector<8x32xf32>
    %1108 = arith.addf %1107, %1106 : vector<8x32xf32>
    %1109 = arith.divf %1107, %1108 : vector<8x32xf32>
    %1110 = vector.extract_strided_slice %1089 {offsets = [0, 64], sizes = [8, 32], strides = [1, 1]} : vector<8x96xf32> to vector<8x32xf32>
    %1111 = vector.extract_strided_slice %1092 {offsets = [0, 64], sizes = [8, 32], strides = [1, 1]} : vector<8x96xf32> to vector<8x32xf32>
    %1112 = vector.broadcast %12 : vector<1x32xf32> to vector<8x32xf32>
    %1113 = arith.addf %1111, %1112 : vector<8x32xf32>
    %1114 = arith.mulf %1101, %1113 : vector<8x32xf32>
    %1115 = arith.addf %1110, %1114 : vector<8x32xf32>
    %1116 = math.tanh %1115 : vector<8x32xf32>
    %cst_256 = arith.constant 1.000000e+00 : f32
    %1117 = vector.broadcast %cst_256 : f32 to vector<8x32xf32>
    %1118 = arith.subf %1117, %1109 : vector<8x32xf32>
    %1119 = arith.mulf %1118, %1116 : vector<8x32xf32>
    %1120 = arith.mulf %1109, %1050 : vector<8x32xf32>
    %1121 = arith.addf %1119, %1120 : vector<8x32xf32>
    %1122 = vector.extract_strided_slice %1091 {offsets = [0, 0], sizes = [8, 32], strides = [1, 1]} : vector<8x96xf32> to vector<8x32xf32>
    %1123 = vector.extract_strided_slice %1093 {offsets = [0, 0], sizes = [8, 32], strides = [1, 1]} : vector<8x96xf32> to vector<8x32xf32>
    %1124 = arith.addf %1122, %1123 : vector<8x32xf32>
    %1125 = arith.negf %1124 : vector<8x32xf32>
    %1126 = math.exp %1125 : vector<8x32xf32>
    %cst_257 = arith.constant 1.000000e+00 : f32
    %1127 = vector.broadcast %cst_257 : f32 to vector<8x32xf32>
    %1128 = arith.addf %1127, %1126 : vector<8x32xf32>
    %1129 = arith.divf %1127, %1128 : vector<8x32xf32>
    %1130 = vector.extract_strided_slice %1091 {offsets = [0, 32], sizes = [8, 32], strides = [1, 1]} : vector<8x96xf32> to vector<8x32xf32>
    %1131 = vector.extract_strided_slice %1093 {offsets = [0, 32], sizes = [8, 32], strides = [1, 1]} : vector<8x96xf32> to vector<8x32xf32>
    %1132 = arith.addf %1130, %1131 : vector<8x32xf32>
    %1133 = arith.negf %1132 : vector<8x32xf32>
    %1134 = math.exp %1133 : vector<8x32xf32>
    %cst_258 = arith.constant 1.000000e+00 : f32
    %1135 = vector.broadcast %cst_258 : f32 to vector<8x32xf32>
    %1136 = arith.addf %1135, %1134 : vector<8x32xf32>
    %1137 = arith.divf %1135, %1136 : vector<8x32xf32>
    %1138 = vector.extract_strided_slice %1091 {offsets = [0, 64], sizes = [8, 32], strides = [1, 1]} : vector<8x96xf32> to vector<8x32xf32>
    %1139 = vector.extract_strided_slice %1093 {offsets = [0, 64], sizes = [8, 32], strides = [1, 1]} : vector<8x96xf32> to vector<8x32xf32>
    %1140 = vector.broadcast %13 : vector<1x32xf32> to vector<8x32xf32>
    %1141 = arith.addf %1139, %1140 : vector<8x32xf32>
    %1142 = arith.mulf %1129, %1141 : vector<8x32xf32>
    %1143 = arith.addf %1138, %1142 : vector<8x32xf32>
    %1144 = math.tanh %1143 : vector<8x32xf32>
    %cst_259 = arith.constant 1.000000e+00 : f32
    %1145 = vector.broadcast %cst_259 : f32 to vector<8x32xf32>
    %1146 = arith.subf %1145, %1137 : vector<8x32xf32>
    %1147 = arith.mulf %1146, %1144 : vector<8x32xf32>
    %1148 = arith.mulf %1137, %1078 : vector<8x32xf32>
    %1149 = arith.addf %1147, %1148 : vector<8x32xf32>
    %1150 = arith.index_cast %1085 : i32 to index
    %c0_260 = arith.constant 0 : index
    %1151 = vector.load %arg20[%1150, %c0_260] : memref<128x32xf32, #tpu.memory_space<vmem>>, vector<8x32xf32>
    tpu.vector_store %arg20[%1150, %c0_260], %1121 {strides = array<i32>} : memref<128x32xf32, #tpu.memory_space<vmem>>, vector<8x32xf32>,
    %1152 = arith.index_cast %1087 : i32 to index
    %c0_261 = arith.constant 0 : index
    %1153 = vector.load %arg21[%1152, %c0_261] : memref<128x32xf32, #tpu.memory_space<vmem>>, vector<8x32xf32>
    tpu.vector_store %arg21[%1152, %c0_261], %1149 {strides = array<i32>} : memref<128x32xf32, #tpu.memory_space<vmem>>, vector<8x32xf32>,
    %c16_i32 = arith.constant 16 : i32
    %c0_262 = arith.constant 0 : index
    %c0_263 = arith.constant 0 : index
    %1154 = vector.load %arg20[%c0_262, %c0_263] : memref<128x32xf32, #tpu.memory_space<vmem>>, vector<128x32xf32>
    %c0_264 = arith.constant 0 : index
    %c0_265 = arith.constant 0 : index
    %1155 = vector.load %arg21[%c0_264, %c0_265] : memref<128x32xf32, #tpu.memory_space<vmem>>, vector<128x32xf32>
    %1156 = arith.addf %1154, %1155 : vector<128x32xf32>
    %1157 = tpu.transpose %1156, [1, 0] : vector<128x32xf32> -> vector<32x128xf32>
    %cst_266 = arith.constant 0.000000e+00 : f32
    %1158 = vector.broadcast %cst_266 : f32 to vector<32x8xf32>
    %c0_267 = arith.constant 0 : index
    %c0_268 = arith.constant 0 : index
    %1159 = vector.load %arg22[%c0_267, %c0_268] : memref<32x144xf32, #tpu.memory_space<vmem>>, vector<32x8xf32>
    tpu.vector_store %arg22[%c0_267, %c0_268], %1158 {strides = array<i32>} : memref<32x144xf32, #tpu.memory_space<vmem>>, vector<32x8xf32>,
    %cst_269 = arith.constant 0.000000e+00 : f32
    %1160 = vector.broadcast %cst_269 : f32 to vector<32x8xf32>
    %c0_270 = arith.constant 0 : index
    %c136 = arith.constant 136 : index
    %1161 = vector.load %arg22[%c0_270, %c136] : memref<32x144xf32, #tpu.memory_space<vmem>>, vector<32x8xf32>
    tpu.vector_store %arg22[%c0_270, %c136], %1160 {strides = array<i32>} : memref<32x144xf32, #tpu.memory_space<vmem>>, vector<32x8xf32>,
    %c0_271 = arith.constant 0 : index
    %c8 = arith.constant 8 : index
    %1162 = vector.load %arg22[%c0_271, %c8] : memref<32x144xf32, #tpu.memory_space<vmem>>, vector<32x128xf32>
    tpu.vector_store %arg22[%c0_271, %c8], %1157 {strides = array<i32>} : memref<32x144xf32, #tpu.memory_space<vmem>>, vector<32x128xf32>,
    %c0_272 = arith.constant 0 : index
    %c0_273 = arith.constant 0 : index
    %c0_274 = arith.constant 0 : index
    %1163 = vector.load %arg9[%c0_272, %c0_273, %c0_274] : memref<3x32x32xf32, #tpu.memory_space<vmem>>, vector<1x32x32xf32>
    %1164 = vector.shape_cast %1163 : vector<1x32x32xf32> to vector<32x32xf32>
    %c0_275 = arith.constant 0 : index
    %c0_276 = arith.constant 0 : index
    %1165 = vector.load %arg22[%c0_275, %c0_276] : memref<32x144xf32, #tpu.memory_space<vmem>>, vector<32x128xf32>
    %cst_277 = arith.constant dense<0.000000e+00> : vector<32x128xf32>
    %1166 = tpu.matmul %1164, %1165, %cst_277 {dimension_numbers = #tpu.dot_dimension_numbers<[1], [0], [0], [1], [0, 0, 1, 1], [], []>} : vector<32x32xf32>, vector<32x128xf32>, vector<32x128xf32> -> vector<32x128xf32>
    %c1_278 = arith.constant 1 : index
    %c0_279 = arith.constant 0 : index
    %c0_280 = arith.constant 0 : index
    %1167 = vector.load %arg9[%c1_278, %c0_279, %c0_280] : memref<3x32x32xf32, #tpu.memory_space<vmem>>, vector<1x32x32xf32>
    %1168 = vector.shape_cast %1167 : vector<1x32x32xf32> to vector<32x32xf32>
    %c0_281 = arith.constant 0 : index
    %c8_282 = arith.constant 8 : index
    %1169 = vector.load %arg22[%c0_281, %c8_282] : memref<32x144xf32, #tpu.memory_space<vmem>>, vector<32x128xf32>
    %cst_283 = arith.constant dense<0.000000e+00> : vector<32x128xf32>
    %1170 = tpu.matmul %1168, %1169, %cst_283 {dimension_numbers = #tpu.dot_dimension_numbers<[1], [0], [0], [1], [0, 0, 1, 1], [], []>} : vector<32x32xf32>, vector<32x128xf32>, vector<32x128xf32> -> vector<32x128xf32>
    %1171 = arith.addf %1166, %1170 : vector<32x128xf32>
    %c2 = arith.constant 2 : index
    %c0_284 = arith.constant 0 : index
    %c0_285 = arith.constant 0 : index
    %1172 = vector.load %arg9[%c2, %c0_284, %c0_285] : memref<3x32x32xf32, #tpu.memory_space<vmem>>, vector<1x32x32xf32>
    %1173 = vector.shape_cast %1172 : vector<1x32x32xf32> to vector<32x32xf32>
    %c0_286 = arith.constant 0 : index
    %c16 = arith.constant 16 : index
    %1174 = vector.load %arg22[%c0_286, %c16] : memref<32x144xf32, #tpu.memory_space<vmem>>, vector<32x128xf32>
    %cst_287 = arith.constant dense<0.000000e+00> : vector<32x128xf32>
    %1175 = tpu.matmul %1173, %1174, %cst_287 {dimension_numbers = #tpu.dot_dimension_numbers<[1], [0], [0], [1], [0, 0, 1, 1], [], []>} : vector<32x32xf32>, vector<32x128xf32>, vector<32x128xf32> -> vector<32x128xf32>
    %1176 = arith.addf %1171, %1175 : vector<32x128xf32>
    %c0_288 = arith.constant 0 : index
    %c0_289 = arith.constant 0 : index
    %1177 = vector.load %arg10[%c0_288, %c0_289] : memref<32x1xf32, #tpu.memory_space<vmem>>, vector<32x1xf32>
    %1178 = vector.broadcast %1177 : vector<32x1xf32> to vector<32x128xf32>
    %1179 = arith.addf %1176, %1178 : vector<32x128xf32>
    %c0_290 = arith.constant 0 : index
    %c0_291 = arith.constant 0 : index
    %1180 = vector.load %arg13[%c0_290, %c0_291] : memref<4x32xf32, #tpu.memory_space<vmem>>, vector<4x32xf32>
    %c0_292 = arith.constant 0 : index
    %c0_293 = arith.constant 0 : index
    %1181 = vector.load %arg14[%c0_292, %c0_293] : memref<32x4xf32, #tpu.memory_space<vmem>>, vector<32x4xf32>
    %c0_294 = arith.constant 0 : index
    %c0_295 = arith.constant 0 : index
    %1182 = vector.load %arg15[%c0_294, %c0_295] : memref<128x2xf32, #tpu.memory_space<vmem>>, vector<128x2xf32>
    %c0_296 = arith.constant 0 : index
    %c0_297 = arith.constant 0 : index
    %1183 = vector.load %arg16[%c0_296, %c0_297] : memref<2x128xf32, #tpu.memory_space<vmem>>, vector<2x128xf32>
    %cst_298 = arith.constant dense<0.000000e+00> : vector<4x128xf32>
    %1184 = tpu.matmul %1180, %1179, %cst_298 {dimension_numbers = #tpu.dot_dimension_numbers<[1], [0], [0], [1], [0, 0, 1, 1], [], []>} : vector<4x32xf32>, vector<32x128xf32>, vector<4x128xf32> -> vector<4x128xf32>
    %cst_299 = arith.constant dense<0.000000e+00> : vector<4x2xf32>
    %1185 = tpu.matmul %1184, %1182, %cst_299 {dimension_numbers = #tpu.dot_dimension_numbers<[1], [0], [0], [1], [0, 0, 1, 1], [], []>} : vector<4x128xf32>, vector<128x2xf32>, vector<4x2xf32> -> vector<4x2xf32>
    %1186 = arith.mulf %1179, %1179 : vector<32x128xf32>
    %cst_300 = arith.constant dense<0.000000e+00> : vector<4x128xf32>
    %1187 = tpu.matmul %1180, %1186, %cst_300 {dimension_numbers = #tpu.dot_dimension_numbers<[1], [0], [0], [1], [0, 0, 1, 1], [], []>} : vector<4x32xf32>, vector<32x128xf32>, vector<4x128xf32> -> vector<4x128xf32>
    %cst_301 = arith.constant dense<0.000000e+00> : vector<4x2xf32>
    %1188 = tpu.matmul %1187, %1182, %cst_301 {dimension_numbers = #tpu.dot_dimension_numbers<[1], [0], [0], [1], [0, 0, 1, 1], [], []>} : vector<4x128xf32>, vector<128x2xf32>, vector<4x2xf32> -> vector<4x2xf32>
    %cst_302 = arith.constant 7.812500e-03 : f32
    %1189 = vector.broadcast %cst_302 : f32 to vector<4x2xf32>
    %1190 = arith.mulf %1185, %1189 : vector<4x2xf32>
    %cst_303 = arith.constant 7.812500e-03 : f32
    %1191 = vector.broadcast %cst_303 : f32 to vector<4x2xf32>
    %1192 = arith.mulf %1188, %1191 : vector<4x2xf32>
    %1193 = arith.mulf %1190, %1190 : vector<4x2xf32>
    %1194 = arith.subf %1192, %1193 : vector<4x2xf32>
    %cst_304 = arith.constant 9.99999974E-6 : f32
    %1195 = vector.broadcast %cst_304 : f32 to vector<4x2xf32>
    %1196 = arith.addf %1194, %1195 : vector<4x2xf32>
    %1197 = math.rsqrt %1196 : vector<4x2xf32>
    %cst_305 = arith.constant 0.000000e+00 : f32
    %1198 = vector.broadcast %cst_305 : f32 to vector<4x2xf32>
    %1199 = arith.subf %1198, %1190 : vector<4x2xf32>
    %1200 = arith.mulf %1199, %1197 : vector<4x2xf32>
    %cst_306 = arith.constant dense<0.000000e+00> : vector<32x2xf32>
    %1201 = tpu.matmul %1181, %1197, %cst_306 {dimension_numbers = #tpu.dot_dimension_numbers<[1], [0], [0], [1], [0, 0, 1, 1], [], []>} : vector<32x4xf32>, vector<4x2xf32>, vector<32x2xf32> -> vector<32x2xf32>
    %cst_307 = arith.constant dense<0.000000e+00> : vector<32x128xf32>
    %1202 = tpu.matmul %1201, %1183, %cst_307 {dimension_numbers = #tpu.dot_dimension_numbers<[1], [0], [0], [1], [0, 0, 1, 1], [], []>} : vector<32x2xf32>, vector<2x128xf32>, vector<32x128xf32> -> vector<32x128xf32>
    %cst_308 = arith.constant dense<0.000000e+00> : vector<32x2xf32>
    %1203 = tpu.matmul %1181, %1200, %cst_308 {dimension_numbers = #tpu.dot_dimension_numbers<[1], [0], [0], [1], [0, 0, 1, 1], [], []>} : vector<32x4xf32>, vector<4x2xf32>, vector<32x2xf32> -> vector<32x2xf32>
    %cst_309 = arith.constant dense<0.000000e+00> : vector<32x128xf32>
    %1204 = tpu.matmul %1203, %1183, %cst_309 {dimension_numbers = #tpu.dot_dimension_numbers<[1], [0], [0], [1], [0, 0, 1, 1], [], []>} : vector<32x2xf32>, vector<2x128xf32>, vector<32x128xf32> -> vector<32x128xf32>
    %1205 = arith.mulf %1179, %1202 : vector<32x128xf32>
    %1206 = arith.addf %1205, %1204 : vector<32x128xf32>
    %c0_310 = arith.constant 0 : index
    %c0_311 = arith.constant 0 : index
    %1207 = vector.load %arg11[%c0_310, %c0_311] : memref<32x1xf32, #tpu.memory_space<vmem>>, vector<32x1xf32>
    %1208 = vector.broadcast %1207 : vector<32x1xf32> to vector<32x128xf32>
    %1209 = arith.mulf %1206, %1208 : vector<32x128xf32>
    %c0_312 = arith.constant 0 : index
    %c0_313 = arith.constant 0 : index
    %1210 = vector.load %arg12[%c0_312, %c0_313] : memref<32x1xf32, #tpu.memory_space<vmem>>, vector<32x1xf32>
    %1211 = vector.broadcast %1210 : vector<32x1xf32> to vector<32x128xf32>
    %1212 = arith.addf %1209, %1211 : vector<32x128xf32>
    %cst_314 = arith.constant 0.000000e+00 : f32
    %1213 = vector.broadcast %cst_314 : f32 to vector<32x128xf32>
    %1214 = arith.cmpf oge, %1212, %1213 : vector<32x128xf32>
    %cst_315 = arith.constant 0.00999999977 : f32
    %1215 = vector.broadcast %cst_315 : f32 to vector<32x128xf32>
    %1216 = arith.mulf %1215, %1212 : vector<32x128xf32>
    %1217 = arith.select %1214, %1212, %1216 : vector<32x128xi1>, vector<32x128xf32>
    %1218 = tpu.transpose %0, [1, 0] : vector<128x32xf32> -> vector<32x128xf32>
    %1219 = arith.addf %1218, %1157 : vector<32x128xf32>
    %1220 = arith.addf %1219, %1217 : vector<32x128xf32>
    %c0_316 = arith.constant 0 : index
    %c0_317 = arith.constant 0 : index
    %1221 = vector.load %arg17[%c0_316, %c0_317] : memref<32x128xf32, #tpu.memory_space<vmem>>, vector<32x128xf32>
    tpu.vector_store %arg17[%c0_316, %c0_317], %1220 {strides = array<i32>} : memref<32x128xf32, #tpu.memory_space<vmem>>, vector<32x128xf32>,
    return
  }
  func.func @transform_0(%arg0: i32) -> (i32, i32) {
    %c0_i32 = arith.constant 0 : i32
    %c0_i32_0 = arith.constant 0 : i32
    %c0_i32_1 = arith.constant 0 : i32
    return %c0_i32, %c0_i32_0 : i32, i32
  }
  func.func @transform_1(%arg0: i32) -> (i32, i32, i32) {
    %c0_i32 = arith.constant 0 : i32
    %c0_i32_0 = arith.constant 0 : i32
    %c0_i32_1 = arith.constant 0 : i32
    %c0_i32_2 = arith.constant 0 : i32
    return %c0_i32, %c0_i32_0, %c0_i32_1 : i32, i32, i32
  }
  func.func @transform_2(%arg0: i32) -> (i32, i32) {
    %c0_i32 = arith.constant 0 : i32
    %c0_i32_0 = arith.constant 0 : i32
    %c0_i32_1 = arith.constant 0 : i32
    return %c0_i32, %c0_i32_0 : i32, i32
  }
  func.func @transform_3(%arg0: i32) -> (i32, i32) {
    %c0_i32 = arith.constant 0 : i32
    %c0_i32_0 = arith.constant 0 : i32
    %c0_i32_1 = arith.constant 0 : i32
    return %c0_i32, %c0_i32_0 : i32, i32
  }
  func.func @transform_4(%arg0: i32) -> (i32, i32) {
    %c0_i32 = arith.constant 0 : i32
    %c0_i32_0 = arith.constant 0 : i32
    %c0_i32_1 = arith.constant 0 : i32
    return %c0_i32, %c0_i32_0 : i32, i32
  }
  func.func @transform_5(%arg0: i32) -> (i32, i32) {
    %c0_i32 = arith.constant 0 : i32
    %c0_i32_0 = arith.constant 0 : i32
    %c0_i32_1 = arith.constant 0 : i32
    return %c0_i32, %c0_i32_0 : i32, i32
  }
  func.func @transform_6(%arg0: i32) -> (i32, i32) {
    %c0_i32 = arith.constant 0 : i32
    %c0_i32_0 = arith.constant 0 : i32
    %c0_i32_1 = arith.constant 0 : i32
    return %c0_i32, %c0_i32_0 : i32, i32
  }
  func.func @transform_7(%arg0: i32) -> (i32, i32) {
    %c0_i32 = arith.constant 0 : i32
    %c0_i32_0 = arith.constant 0 : i32
    %c0_i32_1 = arith.constant 0 : i32
    return %c0_i32, %c0_i32_0 : i32, i32
  }
  func.func @transform_8(%arg0: i32) -> (i32, i32, i32) {
    %c0_i32 = arith.constant 0 : i32
    %c0_i32_0 = arith.constant 0 : i32
    %c0_i32_1 = arith.constant 0 : i32
    %c0_i32_2 = arith.constant 0 : i32
    return %c0_i32, %c0_i32_0, %c0_i32_1 : i32, i32, i32
  }
  func.func @transform_9(%arg0: i32) -> (i32, i32) {
    %c0_i32 = arith.constant 0 : i32
    %c0_i32_0 = arith.constant 0 : i32
    %c0_i32_1 = arith.constant 0 : i32
    return %c0_i32, %c0_i32_0 : i32, i32
  }
  func.func @transform_10(%arg0: i32) -> (i32, i32) {
    %c0_i32 = arith.constant 0 : i32
    %c0_i32_0 = arith.constant 0 : i32
    %c0_i32_1 = arith.constant 0 : i32
    return %c0_i32, %c0_i32_0 : i32, i32
  }
  func.func @transform_11(%arg0: i32) -> (i32, i32) {
    %c0_i32 = arith.constant 0 : i32
    %c0_i32_0 = arith.constant 0 : i32
    %c0_i32_1 = arith.constant 0 : i32
    return %c0_i32, %c0_i32_0 : i32, i32
  }
  func.func @transform_12(%arg0: i32) -> (i32, i32) {
    %c0_i32 = arith.constant 0 : i32
    %c0_i32_0 = arith.constant 0 : i32
    %c0_i32_1 = arith.constant 0 : i32
    return %c0_i32, %c0_i32_0 : i32, i32
  }
  func.func @transform_13(%arg0: i32) -> (i32, i32) {
    %c0_i32 = arith.constant 0 : i32
    %c0_i32_0 = arith.constant 0 : i32
    %c0_i32_1 = arith.constant 0 : i32
    return %c0_i32, %c0_i32_0 : i32, i32
  }
  func.func @transform_14(%arg0: i32) -> (i32, i32) {
    %c0_i32 = arith.constant 0 : i32
    %c0_i32_0 = arith.constant 0 : i32
    %c0_i32_1 = arith.constant 0 : i32
    return %c0_i32, %c0_i32_0 : i32, i32
  }
  func.func @transform_15(%arg0: i32) -> (i32, i32) {
    %c0_i32 = arith.constant 0 : i32
    %c0_i32_0 = arith.constant 0 : i32
    %c0_i32_1 = arith.constant 0 : i32
    return %c0_i32, %c0_i32_0 : i32, i32
  }
  func.func @transform_16(%arg0: i32) -> (i32, i32) {
    %c0_i32 = arith.constant 0 : i32
    %c0_i32_0 = arith.constant 0 : i32
    %c0_i32_1 = arith.constant 0 : i32
    return %c0_i32, %c0_i32_0 : i32, i32
  }
}

</mosaic_0001>

<bundles_post_ra>
// kernel: tpu_custom_call.1
= control target key start
LH: loop header
LB: loop body
LE: loop exit
PB: predicated region body
PF: predicated region fallthrough
CT: control target
= control target key end

     0   :  { %s8056_s0 = inlined_call_operand.vmem [shape: f32[128,32], index: 0, kind: input, shape index: {}]   ;;  %s8057_s1 = inlined_call_operand.vmem [shape: f32[2,8,32], index: 1, kind: input, shape index: {}]   ;;  %s8058_s2 = inlined_call_operand.vmem [shape: f32[32,192], index: 2, kind: input, shape index: {}]   ;;  %s8059_s3 = inlined_call_operand.vmem [shape: f32[1,192], index: 3, kind: input, shape index: {}]   ;;  %s8060_s4 = inlined_call_operand.vmem [shape: f32[32,96], index: 4, kind: input, shape index: {}]   ;;  %s8061_s5 = inlined_call_operand.vmem [shape: f32[32,96], index: 5, kind: input, shape index: {}]   ;;  %s8062_s6 = inlined_call_operand.vmem [shape: f32[1,32], index: 6, kind: input, shape index: {}]   ;;  %s8063_s7 = inlined_call_operand.vmem [shape: f32[1,32], index: 7, kind: input, shape index: {}]   ;;  %s8064_s8 = inlined_call_operand.vmem [shape: f32[3,32,32], index: 8, kind: input, shape index: {}]   ;;  %s8065_s9 = inlined_call_operand.vmem [shape: f32[32,1], index: 9, kind: input, shape index: {}]   ;;  %s8066_s10 = inlined_call_operand.vmem [shape: f32[32,1], index: 10, kind: input, shape index: {}]   ;;  %s8067_s11 = inlined_call_operand.vmem [shape: f32[32,1], index: 11, kind: input, shape index: {}]   ;;  %s8068_s12 = inlined_call_operand.vmem [shape: f32[4,32], index: 12, kind: input, shape index: {}]   ;;  %s8069_s13 = inlined_call_operand.vmem [shape: f32[32,4], index: 13, kind: input, shape index: {}]   ;;  %s8070_s14 = inlined_call_operand.vmem [shape: f32[128,2], index: 14, kind: input, shape index: {}]   ;;  %s8071_s15 = inlined_call_operand.vmem [shape: f32[2,128], index: 15, kind: input, shape index: {}]   ;;  %s8072_s16 = inlined_call_operand.hbm [shape: f32[32,128], index: 16, kind: output, shape index: {}]  }
   0x1   :  { %8074 = sst [smem:[#allocation10_spill]] %s8056_s0 }
   0x2   :  { %v77_v0 = vld [vmem:[%s8058_s2 + $0x38] sm:$0xff]  ;;  %v76_v1 = vld [vmem:[%s8058_s2 + $0x30] sm:$0xff]  ;;  %v6432_v3 = vmov 0.0   ;;  %v75_v4 = vld [vmem:[%s8058_s2 + $0x28] sm:$0xff]  ;;  %s8075_s17 = sld [smem:[#allocation10_spill]]  ;;  %vm90_vm0 = vcmask 261120  }
   0x3   :  { %v6537_v2 = vld [vmem:[%s8060_s4 + $0x18] sm:$0xff]  ;;  %163 = vmatprep.subr.mxu0 %v77_v0  ;;  %5651 = vmatprep.subr.mxu1 %v6432_v3  ;;  %v74_v5 = vld [vmem:[%s8058_s2 + $0x20] sm:$0xff]  ;;  %v6549_v6 = vld [vmem:[%s8060_s4 + $0x10] sm:$0xff]  ;;  %vm6433_vm1 = vmmov 0   ;;  %s6434_s25 = smov 64  }
   0x4   :  { %164 = vmatpush1.msra.mxu0 %v76_v1  ;;  %5652 = vmatpush3.msra.mxu1 %v6537_v2  ;;  %v73_v7 = vld [vmem:[%s8058_s2 + $0x18] sm:$0xff]  ;;  %v72_v8 = vld [vmem:[%s8058_s2 + $0x10] sm:$0xff]  ;;  %v6562_v9 = vld [vmem:[%s8060_s4 + $0x8] sm:$0xff] }
   0x5   :  { %165 = vmatprep.subr.mxu0 %v75_v4  ;;  %5653 = vmatprep.subr.mxu1 %v6432_v3  ;;  %v71_v10 = vld [vmem:[%s8058_s2 + $0x8] sm:$0xff]  ;;  %v70_v11 = vld [vmem:[%s8058_s2] sm:$0xff]  ;;  %v6600_v16 = vld [vmem:[%s8061_s5 + $0x18] sm:$0xff] }
   0x6   :  { %166 = vmatpush1.msra.mxu0 %v74_v5  ;;  %5654 = vmatpush3.msra.mxu1 %v6549_v6  ;;  %v6576_v12 = vld [vmem:[%s8060_s4] sm:$0xff]  ;;  %v6611_v18 = vld [vmem:[%s8061_s5 + $0x10] sm:$0xff] }
   0x7   :  { %167 = vmatprep.subr.mxu0 %v73_v7  ;;  %5655 = vmatprep.subr.mxu1 %v6432_v3  ;;  %v6585_v14 = vld [vmem:[%s8057_s1] sm:$0xff] }
   0x8   :  { %168 = vmatpush1.msra.mxu0 %v72_v8  ;;  %5656 = vmatpush3.msra.mxu1 %v6562_v9  ;;  %v54_v13 = vld [vmem:[%s8075_s17] sm:$0xff]  ;;  %v55_v17 = vld [vmem:[%s8075_s17 + $0x8] sm:$0xff] }
   0x9   :  { %169 = vmatprep.subr.mxu0 %v71_v10  ;;  %5657 = vmatprep.subr.mxu1 %v6432_v3  ;;  %v5298_v15 = vld [vmem:[%s8062_s6] ss:$0 sm:$0xff] }
   0xa   :  { %170 = vmatpush1.msra.mxu0 %v70_v11  ;;  %203 = vmatprep.mubr.f32.mxu0 %v6432_v3 }
   0xb   :  { %5658 = vmatpush3.msra.mxu1 %v6576_v12  ;;  %5659 = vmatprep.mubr.msk.f32.mxu1 %vm6433_vm1, %v6432_v3 }
   0xc   :  { %5278 = vmatmul.mubr.msk.f32.vlgmr.msra.gmra.mxu0 %vm90_vm0, %v54_v13  ;;  %5660 = vmatmul.mubr.msk.f32.vlgmr.msra.gmra.mxu1 %vm90_vm0, %v6585_v14 }
   0xd   :  { %209 = vmatprep.mubr.f32.mxu0 %v6432_v3  ;;  %635 = vrot.lane.b32.xlu0 %v5298_v15, %s6434_s25 }
   0xe   :  { %5662 = vmatprep.subr.mxu1 %v6432_v3  ;;  %5670 = vmatprep.mubr.msk.f32.mxu1 %vm6433_vm1, %v6432_v3 }
   0xf   :  { %21 = vsyncpa [#allocation8], 0  ;;  %5663 = vmatpush3.msra.mxu1 %v6600_v16  ;;  %v5300_v19 = vld [vmem:[%s8063_s7] ss:$0 sm:$0xff]  ;;  %5739 = vmatprep.subr.mxu0 %v6432_v3  ;;  %v6625_v20 = vld [vmem:[%s8061_s5 + $0x8] sm:$0xff]  ;;  %v80_v37 = vlaneseq  ;;  %vm300_vm2 = vcmask 785408  }
  0x10   :  { %5279 = vmatmul.mubr.msk.f32.gmra.mxu0 %vm90_vm0, %v55_v17  ;;  %5664 = vmatprep.subr.mxu1 %v6432_v3  ;;  %v56_v21 = vld [vmem:[%s8075_s17 + $0x10] sm:$0xff]  ;;  %v6636_v22 = vld [vmem:[%s8061_s5] sm:$0xff]  ;;  %v6643_v23 = vld [vmem:[%s8057_s1 + $0x8] sm:$0xff]  ;;  %s6436_s0 = smov 96   ;;  %vm3998_vm3 = vcmask 64512   ;;  %vm4003_vm4 = vcmask 130112  }
  0x11   :  { %215 = vmatprep.mubr.f32.mxu0 %v6432_v3  ;;  %5665 = vmatpush3.msra.mxu1 %v6611_v18  ;;  %v57_v24 = vld [vmem:[%s8075_s17 + $0x18] sm:$0xff]  ;;  %v58_v25 = vld [vmem:[%s8075_s17 + $0x20] sm:$0xff]  ;;  %v59_v26 = vld [vmem:[%s8075_s17 + $0x28] sm:$0xff]  ;;  %v81_v38 = vshrl.u32 %v80_v37, 7  ;;  %4001 = vst.msk [vmem:[#allocation6 + $0x20] sm:$0xff] %vm3998_vm3, %v6432_v3  ;;  %vm4024_vm5 = vcmask 1047616  }
  0x12   :  { %5666 = vmatprep.subr.mxu1 %v6432_v3  ;;  %673 = vrot.lane.b32.xlu0 %v5300_v19, %s6434_s25  ;;  %v60_v27 = vld [vmem:[%s8075_s17 + $0x30] sm:$0xff]  ;;  %v61_v28 = vld [vmem:[%s8075_s17 + $0x38] sm:$0xff]  ;;  %v62_v29 = vld [vmem:[%s8075_s17 + $0x40] sm:$0xff]  ;;  %4006 = vst.msk [vmem:[#allocation6 + $0x28] sm:$0xff] %vm4003_vm4, %v6432_v3  ;;  %vm4074_vm6 = vcmask 982016   ;;  %vm4298_vm7 = vcmask 916480  }
  0x13   :  { %5667 = vmatpush3.msra.mxu1 %v6625_v20  ;;  %5740 = vmatpush3.msra.mxu0 %v6537_v2  ;;  %v63_v30 = vld [vmem:[%s8075_s17 + $0x48] sm:$0xff]  ;;  %v64_v31 = vld [vmem:[%s8075_s17 + $0x50] sm:$0xff]  ;;  %v65_v32 = vld [vmem:[%s8075_s17 + $0x58] sm:$0xff]  ;;  %v86_v39 = vsub.s32 1, %v81_v38  ;;  %v82_v42 = vsub.s32 0, %v81_v38  ;;  %3999 = vst.msk [vmem:[#allocation6] sm:$0xff] %vm3998_vm3, %v6432_v3 }
  0x14   :  { %5280 = vmatmul.mubr.msk.f32.gmra.mxu0 %vm90_vm0, %v56_v21  ;;  %5668 = vmatprep.subr.mxu1 %v6432_v3  ;;  %v66_v33 = vld [vmem:[%s8075_s17 + $0x60] sm:$0xff]  ;;  %v67_v34 = vld [vmem:[%s8075_s17 + $0x68] sm:$0xff]  ;;  %v68_v35 = vld [vmem:[%s8075_s17 + $0x70] sm:$0xff]  ;;  %4000 = vst.msk [vmem:[#allocation6 + $0x10] sm:$0xff] %vm3998_vm3, %v6432_v3  ;;  %vm4753_vm8 = vcmask 31744   ;;  %vm4766_vm9 = vcmask 1043456  }
  0x15   :  { %221 = vmatprep.mubr.f32.mxu0 %v6432_v3  ;;  %5669 = vmatpush3.msra.mxu1 %v6636_v22  ;;  %v69_v36 = vld [vmem:[%s8075_s17 + $0x78] sm:$0xff]  ;;  %v78_v40 = vld [vmem:[%s8059_s3] sm:$0x3]  ;;  %s6435_s3 = smov 32   ;;  %4002 = vst.msk [vmem:[#allocation6 + $0x30] sm:$0xff] %vm3998_vm3, %v6432_v3  ;;  %vm4868_vm10 = vcmask 1041408  }
  0x16   :  { %5671 = vmatmul.mubr.msk.f32.vlgmr.msra.gmra.mxu1 %vm90_vm0, %v6643_v23  ;;  %5673 = vmatprep.subr.mxu1 %v6432_v3  ;;  %v6739_v41 = vrot.slane %v78_v40, %v86_v39  ;;  %v6741_v43 = vrot.slane %v78_v40, %v82_v42  ;;  %4004 = vst.msk [vmem:[#allocation6 + $0x8] sm:$0xff] %vm4003_vm4, %v6432_v3  ;;  %4005 = vst.msk [vmem:[#allocation6 + $0x18] sm:$0xff] %vm4003_vm4, %v6432_v3  ;;  %vm4855_vm11 = vcmask 15360  }
  0x17   :  { %5674 = vmatpush3.msra.mxu1 %v6537_v2  ;;  %5681 = vmatprep.mubr.msk.f32.mxu1 %vm6433_vm1, %v6432_v3  ;;  %4007 = vst.msk [vmem:[#allocation6 + $0x38] sm:$0xff] %vm4003_vm4, %v6432_v3 }
  0x18   :  { %5281 = vmatmul.mubr.msk.f32.gmra.mxu0 %vm90_vm0, %v57_v24  ;;  %5675 = vmatprep.subr.mxu1 %v6432_v3 }
  0x19   :  { %227 = vmatprep.mubr.f32.mxu0 %v6432_v3  ;;  %5676 = vmatpush3.msra.mxu1 %v6549_v6 }
  0x1a   :  { %5677 = vmatprep.subr.mxu1 %v6432_v3  ;;  %5741 = vmatprep.subr.mxu0 %v6432_v3 }
  0x1b   :  { %5678 = vmatpush3.msra.mxu1 %v6562_v9  ;;  %5742 = vmatpush3.msra.mxu0 %v6549_v6 }
  0x1c   :  { %5282 = vmatmul.mubr.msk.f32.gmra.mxu0 %vm90_vm0, %v58_v25  ;;  %5679 = vmatprep.subr.mxu1 %v6432_v3 }
  0x1d   :  { %233 = vmatprep.mubr.f32.mxu0 %v6432_v3  ;;  %5680 = vmatpush3.msra.mxu1 %v6576_v12 }
  0x1e   :  { %5684 = vmatprep.subr.mxu1 %v6432_v3  ;;  %5743 = vmatprep.subr.mxu0 %v6432_v3 }
  0x1f   :  { %5744 = vmatpush3.msra.mxu0 %v6562_v9 }
  0x20   :  { %5283 = vmatmul.mubr.msk.f32.gmra.mxu0 %vm90_vm0, %v59_v26  ;;  %5745 = vmatprep.subr.mxu0 %v6432_v3 }
  0x21   :  { %239 = vmatprep.mubr.f32.mxu0 %v6432_v3  ;;  %5746 = vmatpush3.msra.mxu0 %v6576_v12 }
  0x22   :  { %5761 = vmatprep.subr.mxu0 %v6432_v3 }
  0x24   :  { %5284 = vmatmul.mubr.msk.f32.gmra.mxu0 %vm90_vm0, %v60_v27 }
  0x25   :  { %245 = vmatprep.mubr.f32.mxu0 %v6432_v3 }
  0x28   :  { %5285 = vmatmul.mubr.msk.f32.gmra.mxu0 %vm90_vm0, %v61_v28 }
  0x29   :  { %251 = vmatprep.mubr.f32.mxu0 %v6432_v3 }
  0x2c   :  { %5286 = vmatmul.mubr.msk.f32.gmra.mxu0 %vm90_vm0, %v62_v29 }
  0x2d   :  { %257 = vmatprep.mubr.f32.mxu0 %v6432_v3 }
  0x30   :  { %5287 = vmatmul.mubr.msk.f32.gmra.mxu0 %vm90_vm0, %v63_v30 }
  0x31   :  { %263 = vmatprep.mubr.f32.mxu0 %v6432_v3 }
  0x34   :  { %5288 = vmatmul.mubr.msk.f32.gmra.mxu0 %vm90_vm0, %v64_v31 }
  0x35   :  { %269 = vmatprep.mubr.f32.mxu0 %v6432_v3 }
  0x38   :  { %5289 = vmatmul.mubr.msk.f32.gmra.mxu0 %vm90_vm0, %v65_v32 }
  0x39   :  { %275 = vmatprep.mubr.f32.mxu0 %v6432_v3 }
  0x3c   :  { %5290 = vmatmul.mubr.msk.f32.gmra.mxu0 %vm90_vm0, %v66_v33 }
  0x3d   :  { %281 = vmatprep.mubr.f32.mxu0 %v6432_v3 }
  0x40   :  { %5291 = vmatmul.mubr.msk.f32.gmra.mxu0 %vm90_vm0, %v67_v34 }
  0x41   :  { %287 = vmatprep.mubr.f32.mxu0 %v6432_v3 }
  0x44   :  { %5292 = vmatmul.mubr.msk.f32.gmra.mxu0 %vm90_vm0, %v68_v35 }
  0x45   :  { %293 = vmatprep.mubr.f32.mxu0 %v6432_v3 }
  0x48   :  { %5293 = vmatmul.mubr.msk.f32.gmra.mxu0 %vm90_vm0, %v69_v36 }
  0x49   :  { %5747 = vmatprep.mubr.msk.f32.mxu0 %vm6433_vm1, %v6432_v3 }
  0x7f   :  { %v6743_v44 = vpop.permute.xlu0 %635 }
  0xcc   :  { %v205_v45 = vpop.f32.mrf.mxu0  ;;  %v6745_v46 = vpop.f32.mrf.mxu1 }
  0xcd   :  { %v6748_v47 = vadd.f32 %v205_v45, %v6741_v43  ;;  %v638_v48 = vadd.f32 %v6743_v44, %v6745_v46 }
  0xce   :  { %v207_v49 = vpop.f32.mrf.mxu0  ;;  %v5661_v50 = vpop.f32.mrf.mxu1 }
  0xcf   :  { %301 = vst.msk [vmem:[#allocation2] sm:$0xff] %vm300_vm2, %v6748_v47  ;;  %v6755_v51 = vadd.f32 %v207_v49, %v6739_v41  ;;  %640 = vrot.lane.b32.xlu0 %v638_v48, %s6434_s25 }
  0xd0   :  { %v211_v52 = vpop.f32.mrf.mxu0 }
  0xd1   :  { %v6759_v53 = vadd.f32 %v211_v52, %v6741_v43 }
  0xd2   :  { %v213_v54 = vpop.f32.mrf.mxu0 }
  0xd3   :  { %302 = vst.msk [vmem:[#allocation2 + $0x8] sm:$0xff] %vm300_vm2, %v6759_v53  ;;  %v6764_v55 = vadd.f32 %v213_v54, %v6739_v41 }
  0xd4   :  { %v217_v56 = vpop.f32.mrf.mxu0 }
  0xd5   :  { %v6767_v57 = vadd.f32 %v217_v56, %v6741_v43 }
  0xd6   :  { %v219_v58 = vpop.f32.mrf.mxu0  ;;  %v6769_v59 = vpop.f32.mrf.mxu1 }
  0xd7   :  { %303 = vst.msk [vmem:[#allocation2 + $0x10] sm:$0xff] %vm300_vm2, %v6767_v57  ;;  %v6774_v60 = vadd.f32 %v219_v58, %v6739_v41 }
  0xd8   :  { %v223_v61 = vpop.f32.mrf.mxu0  ;;  %v5672_v62 = vpop.f32.mrf.mxu1 }
  0xd9   :  { %v6777_v63 = vadd.f32 %v223_v61, %v6741_v43 }
  0xda   :  { %v225_v0 = vpop.f32.mrf.mxu0 }
  0xdb   :  { %304 = vst.msk [vmem:[#allocation2 + $0x18] sm:$0xff] %vm300_vm2, %v6777_v63  ;;  %v6782_v1 = vadd.f32 %v225_v0, %v6739_v41 }
  0xdc   :  { %v229_v4 = vpop.f32.mrf.mxu0 }
  0xdd   :  { %v6785_v5 = vadd.f32 %v229_v4, %v6741_v43 }
  0xde   :  { %v231_v7 = vpop.f32.mrf.mxu0 }
  0xdf   :  { %305 = vst.msk [vmem:[#allocation2 + $0x20] sm:$0xff] %vm300_vm2, %v6785_v5  ;;  %v6790_v8 = vadd.f32 %v231_v7, %v6739_v41 }
  0xe0   :  { %v235_v10 = vpop.f32.mrf.mxu0 }
  0xe1   :  { %v6793_v11 = vadd.f32 %v235_v10, %v6741_v43 }
  0xe2   :  { %v237_v13 = vpop.f32.mrf.mxu0 }
  0xe3   :  { %306 = vst.msk [vmem:[#allocation2 + $0x28] sm:$0xff] %vm300_vm2, %v6793_v11  ;;  %v6798_v15 = vadd.f32 %v237_v13, %v6739_v41 }
  0xe4   :  { %v241_v17 = vpop.f32.mrf.mxu0 }
  0xe5   :  { %v6801_v19 = vadd.f32 %v241_v17, %v6741_v43 }
  0xe6   :  { %v243_v21 = vpop.f32.mrf.mxu0 }
  0xe7   :  { %307 = vst.msk [vmem:[#allocation2 + $0x30] sm:$0xff] %vm300_vm2, %v6801_v19  ;;  %v6806_v24 = vadd.f32 %v243_v21, %v6739_v41 }
  0xe8   :  { %v247_v25 = vpop.f32.mrf.mxu0 }
  0xe9   :  { %v6809_v26 = vadd.f32 %v247_v25, %v6741_v43 }
  0xea   :  { %v249_v27 = vpop.f32.mrf.mxu0 }
  0xeb   :  { %308 = vst.msk [vmem:[#allocation2 + $0x38] sm:$0xff] %vm300_vm2, %v6809_v26  ;;  %v6814_v28 = vadd.f32 %v249_v27, %v6739_v41  ;;  %v6872_v27 = vpop.permute.xlu0 %673 }
  0xec   :  { %v253_v29 = vpop.f32.mrf.mxu0 }
  0xed   :  { %v6817_v30 = vadd.f32 %v253_v29, %v6741_v43 }
  0xee   :  { %v255_v31 = vpop.f32.mrf.mxu0 }
  0xef   :  { %309 = vst.msk [vmem:[#allocation2 + $0x40] sm:$0xff] %vm300_vm2, %v6817_v30  ;;  %v6822_v32 = vadd.f32 %v255_v31, %v6739_v41  ;;  %v676_v31 = vadd.f32 %v6872_v27, %v6769_v59 }
  0xf0   :  { %v259_v33 = vpop.f32.mrf.mxu0 }
  0xf1   :  { %v6825_v34 = vadd.f32 %v259_v33, %v6741_v43  ;;  %v474_v33 = vld [vmem:[#allocation2] sm:$0xff] }
  0xf2   :  { %v261_v35 = vpop.f32.mrf.mxu0 }
  0xf3   :  { %310 = vst.msk [vmem:[#allocation2 + $0x48] sm:$0xff] %vm300_vm2, %v6825_v34  ;;  %v6830_v36 = vadd.f32 %v261_v35, %v6739_v41 }
  0xf4   :  { %v265_v37 = vpop.f32.mrf.mxu0 }
  0xf5   :  { %v6833_v38 = vadd.f32 %v265_v37, %v6741_v43 }
  0xf6   :  { %v267_v39 = vpop.f32.mrf.mxu0 }
  0xf7   :  { %311 = vst.msk [vmem:[#allocation2 + $0x50] sm:$0xff] %vm300_vm2, %v6833_v38  ;;  %v6838_v40 = vadd.f32 %v267_v39, %v6739_v41 }
  0xf8   :  { %v271_v42 = vpop.f32.mrf.mxu0 }
  0xf9   :  { %v6841_v45 = vadd.f32 %v271_v42, %v6741_v43 }
  0xfa   :  { %v273_v48 = vpop.f32.mrf.mxu0 }
  0xfb   :  { %312 = vst.msk [vmem:[#allocation2 + $0x58] sm:$0xff] %vm300_vm2, %v6841_v45  ;;  %v6846_v49 = vadd.f32 %v273_v48, %v6739_v41 }
  0xfc   :  { %v277_v50 = vpop.f32.mrf.mxu0 }
  0xfd   :  { %v6849_v52 = vadd.f32 %v277_v50, %v6741_v43 }
  0xfe   :  { %v279_v54 = vpop.f32.mrf.mxu0 }
  0xff   :  { %313 = vst.msk [vmem:[#allocation2 + $0x60] sm:$0xff] %vm300_vm2, %v6849_v52  ;;  %v6854_v56 = vadd.f32 %v279_v54, %v6739_v41 }
 0x100   :  { %v283_v58 = vpop.f32.mrf.mxu0 }
 0x101   :  { %v6857_v61 = vadd.f32 %v283_v58, %v6741_v43 }
 0x102   :  { %v285_v62 = vpop.f32.mrf.mxu0 }
 0x103   :  { %314 = vst.msk [vmem:[#allocation2 + $0x68] sm:$0xff] %vm300_vm2, %v6857_v61  ;;  %v6862_v0 = vadd.f32 %v285_v62, %v6739_v41 }
 0x104   :  { %v289_v4 = vpop.f32.mrf.mxu0 }
 0x105   :  { %v290_v7 = vadd.f32 %v289_v4, %v6741_v43 }
 0x106   :  { %v291_v10 = vpop.f32.mrf.mxu0 }
 0x107   :  { %315 = vst.msk [vmem:[#allocation2 + $0x70] sm:$0xff] %vm300_vm2, %v290_v7  ;;  %v6867_v13 = vadd.f32 %v291_v10, %v6739_v41 }
 0x108   :  { %v295_v17 = vpop.f32.mrf.mxu0 }
 0x109   :  { %v296_v21 = vadd.f32 %v295_v17, %v6741_v43  ;;  %v623_v43 = vadd.f32 %v6745_v46, %v474_v33 }
 0x10a   :  { %v297_v25 = vpop.f32.mrf.mxu0 }
 0x10b   :  { %316 = vst.msk [vmem:[#allocation2 + $0x78] sm:$0xff] %vm300_vm2, %v296_v21  ;;  %409 = vrot.lane.b32.xlu1 %v296_v21, %s6435_s3  ;;  %v298_v29 = vadd.f32 %v297_v25, %v6739_v41  ;;  %v5297_v35 = vmul.f32 -1.442695, %v623_v43 }
 0x10d   :  { %6184 = vpow2.f32 %v5297_v35 }
 0x10f   :  { %411 = vrot.lane.b32.xlu1 %v298_v29, %s6435_s3 }
 0x113   :  { %678 = vrot.lane.b32.xlu1 %v676_v31, %s6434_s25 }
 0x11a   :  { %v6185_v37 = vpop.eup %6184 }
 0x11b   :  { %v627_v39 = vadd.f32 1.0, %v6185_v37 }
 0x11d   :  { %6186 = vrcp.f32 %v627_v39 }
 0x12a   :  { %v6187_v42 = vpop.eup %6186 }
 0x141   :  { %v641_v48 = vpop.permute.xlu0 %640 }
 0x142   :  { %v643_v50 = vmul.f32 %v6187_v42, %v641_v48 }
 0x144   :  { %645 = vrot.lane.b32.xlu0 %v643_v50, %s6434_s25  ;;  %v650_v50 = vsub.f32 1.0, %v6187_v42 }
 0x17d   :  { %v410_v41 = vpop.permute.xlu1 %409 }
 0x181   :  { %v412_v54 = vpop.permute.xlu1 %411 }
 0x182   :  { %v428_v58 = vsel %vm90_vm0, %v410_v41, %v412_v54 }
 0x183   :  { %460 = vst.msk [vmem:[#allocation3 + $0x78] sm:$0xff] %vm300_vm2, %v428_v58 }
 0x185   :  { %v679_v21 = vpop.permute.xlu1 %678 }
 0x18a   :  { %v476_v62 = vld [vmem:[#allocation3 + $0x78] sm:$0xff] }
 0x18b   :  { %v661_v4 = vadd.f32 %v6769_v59, %v476_v62 }
 0x18d   :  { %v5299_v46 = vmul.f32 -1.442695, %v661_v4 }
 0x18f   :  { %6188 = vpow2.f32 %v5299_v46 }
 0x19c   :  { %v6189_v10 = vpop.eup %6188 }
 0x19d   :  { %v665_v17 = vadd.f32 1.0, %v6189_v10 }
 0x19f   :  { %6190 = vrcp.f32 %v665_v17 }
 0x1ac   :  { %v6191_v25 = vpop.eup %6190 }
 0x1ad   :  { %v681_v29 = vmul.f32 %v6191_v25, %v679_v21  ;;  %v688_v58 = vsub.f32 1.0, %v6191_v25 }
 0x1af   :  { %683 = vrot.lane.b32.xlu1 %v681_v29, %s6434_s25 }
 0x1b3   :  { %656 = vrot.lane.b32.xlu1 %v6585_v14, %s6435_s3 }
 0x1b6   :  { %v646_v31 = vpop.permute.xlu0 %645 }
 0x1b7   :  { %v648_v43 = vadd.f32 %v646_v31, %v474_v33  ;;  %694 = vrot.lane.b32.xlu1 %v6643_v23, %s6435_s3 }
 0x1b9   :  { %6192 = vtanh.f32 %v648_v43  ;;  %v711_v43 = vld [vmem:[#allocation2 + $0x8] sm:$0xff] }
 0x1c6   :  { %v6193_v59 = vpop.eup %6192 }
 0x1c7   :  { %652 = vrot.lane.b32.xlu0 %v6193_v59, %s6436_s0 }
 0x221   :  { %v684_v35 = vpop.permute.xlu1 %683 }
 0x222   :  { %v686_v37 = vadd.f32 %v684_v35, %v476_v62 }
 0x224   :  { %6194 = vtanh.f32 %v686_v37 }
 0x225   :  { %v657_v48 = vpop.permute.xlu1 %656 }
 0x226   :  { %v659_v14 = vmul.f32 %v6187_v42, %v657_v48 }
 0x229   :  { %v695_v23 = vpop.permute.xlu1 %694 }
 0x22a   :  { %v697_v62 = vmul.f32 %v6191_v25, %v695_v23 }
 0x231   :  { %v6195_v39 = vpop.eup %6194 }
 0x232   :  { %690 = vrot.lane.b32.xlu0 %v6195_v39, %s6436_s0 }
 0x239   :  { %v653_v41 = vpop.permute.xlu0 %652 }
 0x23a   :  { %v655_v54 = vmul.f32 %v653_v41, %v650_v50 }
 0x23c   :  { %v6891_v33 = vadd.f32 %v659_v14, %v655_v54 }
 0x23e   :  { %700 = vrot.lane.b32.xlu0 %v6891_v33, %s6436_s0 }
 0x242   :  { %405 = vrot.lane.b32.xlu0 %v290_v7, %s6435_s3 }
 0x2a4   :  { %v691_v4 = vpop.permute.xlu0 %690 }
 0x2a5   :  { %v693_v46 = vmul.f32 %v691_v4, %v688_v58 }
 0x2a7   :  { %v6896_v10 = vadd.f32 %v697_v62, %v693_v46 }
 0x2a9   :  { %705 = vrot.lane.b32.xlu1 %v6896_v10, %s6436_s0 }
 0x2ad   :  { %407 = vrot.lane.b32.xlu1 %v6867_v13, %s6435_s3 }
 0x2b0   :  { %v701_v42 = vpop.permute.xlu0 %700 }
 0x2b1   :  { %703 = vst.msk [vmem:[#allocation4] sm:$0xff] %vm90_vm0, %v701_v42  ;;  %5682 = vmatmul.mubr.msk.f32.vlgmr.msra.gmra.mxu1 %vm90_vm0, %v701_v42 }
 0x2b2   :  { %5685 = vmatpush3.msra.mxu1 %v6600_v16  ;;  %5692 = vmatprep.mubr.msk.f32.mxu1 %vm6433_vm1, %v6432_v3 }
 0x2b3   :  { %5686 = vmatprep.subr.mxu1 %v6432_v3 }
 0x2b4   :  { %5687 = vmatpush3.msra.mxu1 %v6611_v18  ;;  %v406_v13 = vpop.permute.xlu0 %405 }
 0x2b5   :  { %5688 = vmatprep.subr.mxu1 %v6432_v3 }
 0x2b6   :  { %5689 = vmatpush3.msra.mxu1 %v6625_v20 }
 0x2b7   :  { %5690 = vmatprep.subr.mxu1 %v6432_v3 }
 0x2b8   :  { %5691 = vmatpush3.msra.mxu1 %v6636_v22 }
 0x2b9   :  { %5695 = vmatprep.subr.mxu1 %v6432_v3 }
 0x31b   :  { %v706_v7 = vpop.permute.xlu1 %705 }
 0x31c   :  { %709 = vst.msk [vmem:[#allocation5 + $0x78] sm:$0xff] %vm90_vm0, %v706_v7  ;;  %5693 = vmatmul.mubr.msk.f32.vlgmr.msra.gmra.mxu1 %vm90_vm0, %v706_v7 }
 0x31d   :  { %5696 = vmatpush3.msra.mxu1 %v6537_v2  ;;  %5703 = vmatprep.mubr.msk.f32.mxu1 %vm6433_vm1, %v6432_v3 }
 0x31e   :  { %5697 = vmatprep.subr.mxu1 %v6432_v3 }
 0x31f   :  { %v408_v17 = vpop.permute.xlu1 %407  ;;  %5698 = vmatpush3.msra.mxu1 %v6549_v6 }
 0x320   :  { %v427_v21 = vsel %vm90_vm0, %v406_v13, %v408_v17  ;;  %5699 = vmatprep.subr.mxu1 %v6432_v3 }
 0x321   :  { %459 = vst.msk [vmem:[#allocation3 + $0x70] sm:$0xff] %vm300_vm2, %v427_v21  ;;  %5700 = vmatpush3.msra.mxu1 %v6562_v9 }
 0x322   :  { %5701 = vmatprep.subr.mxu1 %v6432_v3 }
 0x323   :  { %5702 = vmatpush3.msra.mxu1 %v6576_v12 }
 0x324   :  { %5706 = vmatprep.subr.mxu1 %v6432_v3 }
 0x328   :  { %v713_v58 = vld [vmem:[#allocation3 + $0x70] sm:$0xff] }
 0x371   :  { %v782_v25 = vpop.f32.mrf.mxu1 }
 0x372   :  { %v865_v29 = vadd.f32 %v782_v25, %v6743_v44  ;;  %v858_v59 = vadd.f32 %v782_v25, %v711_v43 }
 0x373   :  { %v5683_v31 = vpop.f32.mrf.mxu1 }
 0x374   :  { %867 = vrot.lane.b32.xlu0 %v865_v29, %s6434_s25  ;;  %v5303_v35 = vmul.f32 -1.442695, %v858_v59 }
 0x376   :  { %6196 = vpow2.f32 %v5303_v35 }
 0x383   :  { %v6197_v37 = vpop.eup %6196 }
 0x384   :  { %v862_v39 = vadd.f32 1.0, %v6197_v37 }
 0x386   :  { %6198 = vrcp.f32 %v862_v39 }
 0x393   :  { %v6199_v14 = vpop.eup %6198 }
 0x394   :  { %v877_v37 = vsub.f32 1.0, %v6199_v14 }
 0x3dc   :  { %v854_v48 = vpop.f32.mrf.mxu1 }
 0x3dd   :  { %v892_v50 = vadd.f32 %v854_v48, %v6872_v27  ;;  %v885_v4 = vadd.f32 %v854_v48, %v713_v58  ;;  %v883_v48 = vmul.f32 %v6199_v14, %v6891_v33 }
 0x3de   :  { %v5694_v41 = vpop.f32.mrf.mxu1 }
 0x3df   :  { %894 = vrot.lane.b32.xlu1 %v892_v50, %s6434_s25  ;;  %v5304_v62 = vmul.f32 -1.442695, %v885_v4 }
 0x3e1   :  { %6200 = vpow2.f32 %v5304_v62 }
 0x3e6   :  { %v868_v54 = vpop.permute.xlu0 %867 }
 0x3e7   :  { %v870_v23 = vmul.f32 %v6199_v14, %v868_v54 }
 0x3e9   :  { %872 = vrot.lane.b32.xlu0 %v870_v23, %s6434_s25 }
 0x3ee   :  { %v6201_v46 = vpop.eup %6200 }
 0x3ef   :  { %v889_v42 = vadd.f32 1.0, %v6201_v46 }
 0x3f1   :  { %6202 = vrcp.f32 %v889_v42 }
 0x3fe   :  { %v6203_v7 = vpop.eup %6202 }
 0x3ff   :  { %v910_v23 = vmul.f32 %v6203_v7, %v6896_v10 }
 0x451   :  { %v895_v13 = vpop.permute.xlu1 %894 }
 0x452   :  { %v897_v17 = vmul.f32 %v6203_v7, %v895_v13 }
 0x454   :  { %899 = vrot.lane.b32.xlu1 %v897_v17, %s6434_s25 }
 0x45b   :  { %v873_v21 = vpop.permute.xlu0 %872 }
 0x45c   :  { %v875_v25 = vadd.f32 %v873_v21, %v711_v43  ;;  %v904_v43 = vsub.f32 1.0, %v6203_v7 }
 0x45e   :  { %6204 = vtanh.f32 %v875_v25 }
 0x46b   :  { %v6205_v29 = vpop.eup %6204 }
 0x46c   :  { %879 = vrot.lane.b32.xlu0 %v6205_v29, %s6436_s0 }
 0x4c6   :  { %v900_v31 = vpop.permute.xlu1 %899 }
 0x4c7   :  { %v902_v59 = vadd.f32 %v900_v31, %v713_v58 }
 0x4c9   :  { %6206 = vtanh.f32 %v902_v59 }
 0x4d6   :  { %v6207_v35 = vpop.eup %6206 }
 0x4d7   :  { %906 = vrot.lane.b32.xlu1 %v6207_v35, %s6436_s0 }
 0x4de   :  { %v880_v39 = vpop.permute.xlu0 %879 }
 0x4df   :  { %v882_v50 = vmul.f32 %v880_v39, %v877_v37 }
 0x4e1   :  { %v6937_v41 = vadd.f32 %v883_v48, %v882_v50 }
 0x4e3   :  { %913 = vrot.lane.b32.xlu0 %v6937_v41, %s6436_s0 }
 0x4e7   :  { %401 = vrot.lane.b32.xlu0 %v6857_v61, %s6435_s3 }
 0x549   :  { %v907_v54 = vpop.permute.xlu1 %906 }
 0x54a   :  { %v909_v58 = vmul.f32 %v907_v54, %v904_v43 }
 0x54c   :  { %v6944_v4 = vadd.f32 %v910_v23, %v909_v58 }
 0x54e   :  { %919 = vrot.lane.b32.xlu1 %v6944_v4, %s6436_s0 }
 0x552   :  { %403 = vrot.lane.b32.xlu1 %v6862_v0, %s6435_s3 }
 0x555   :  { %v914_v33 = vpop.permute.xlu0 %913 }
 0x556   :  { %917 = vst.msk [vmem:[#allocation4 + $0x8] sm:$0xff] %vm90_vm0, %v914_v33  ;;  %5704 = vmatmul.mubr.msk.f32.vlgmr.msra.gmra.mxu1 %vm90_vm0, %v914_v33 }
 0x557   :  { %5707 = vmatpush3.msra.mxu1 %v6600_v16  ;;  %5714 = vmatprep.mubr.msk.f32.mxu1 %vm6433_vm1, %v6432_v3 }
 0x558   :  { %5708 = vmatprep.subr.mxu1 %v6432_v3 }
 0x559   :  { %5709 = vmatpush3.msra.mxu1 %v6611_v18  ;;  %v402_v0 = vpop.permute.xlu0 %401 }
 0x55a   :  { %5710 = vmatprep.subr.mxu1 %v6432_v3 }
 0x55b   :  { %5711 = vmatpush3.msra.mxu1 %v6625_v20 }
 0x55c   :  { %5712 = vmatprep.subr.mxu1 %v6432_v3 }
 0x55d   :  { %5713 = vmatpush3.msra.mxu1 %v6636_v22 }
 0x55e   :  { %5717 = vmatprep.subr.mxu1 %v6432_v3 }
 0x5c0   :  { %v920_v61 = vpop.permute.xlu1 %919 }
 0x5c1   :  { %923 = vst.msk [vmem:[#allocation5 + $0x70] sm:$0xff] %vm90_vm0, %v920_v61  ;;  %5715 = vmatmul.mubr.msk.f32.vlgmr.msra.gmra.mxu1 %vm90_vm0, %v920_v61 }
 0x5c2   :  { %5718 = vmatpush3.msra.mxu1 %v6537_v2  ;;  %5725 = vmatprep.mubr.msk.f32.mxu1 %vm6433_vm1, %v6432_v3 }
 0x5c3   :  { %5719 = vmatprep.subr.mxu1 %v6432_v3 }
 0x5c4   :  { %v404_v10 = vpop.permute.xlu1 %403  ;;  %5720 = vmatpush3.msra.mxu1 %v6549_v6  ;;  %v925_v6 = vld [vmem:[#allocation2 + $0x10] sm:$0xff] }
 0x5c5   :  { %v426_v14 = vsel %vm90_vm0, %v402_v0, %v404_v10  ;;  %5721 = vmatprep.subr.mxu1 %v6432_v3 }
 0x5c6   :  { %458 = vst.msk [vmem:[#allocation3 + $0x68] sm:$0xff] %vm300_vm2, %v426_v14  ;;  %5722 = vmatpush3.msra.mxu1 %v6562_v9 }
 0x5c7   :  { %5723 = vmatprep.subr.mxu1 %v6432_v3 }
 0x5c8   :  { %5724 = vmatpush3.msra.mxu1 %v6576_v12 }
 0x5c9   :  { %5728 = vmatprep.subr.mxu1 %v6432_v3 }
 0x5cd   :  { %v927_v35 = vld [vmem:[#allocation3 + $0x68] sm:$0xff] }
 0x616   :  { %v996_v2 = vpop.f32.mrf.mxu1 }
 0x617   :  { %v1079_v62 = vadd.f32 %v996_v2, %v6743_v44  ;;  %v1072_v42 = vadd.f32 %v996_v2, %v925_v6 }
 0x618   :  { %v5705_v46 = vpop.f32.mrf.mxu1 }
 0x619   :  { %1081 = vrot.lane.b32.xlu0 %v1079_v62, %s6434_s25  ;;  %v5307_v7 = vmul.f32 -1.442695, %v1072_v42 }
 0x61b   :  { %6208 = vpow2.f32 %v5307_v7 }
 0x628   :  { %v6209_v13 = vpop.eup %6208 }
 0x629   :  { %v1076_v17 = vadd.f32 1.0, %v6209_v13 }
 0x62b   :  { %6210 = vrcp.f32 %v1076_v17 }
 0x638   :  { %v6211_v29 = vpop.eup %6210 }
 0x639   :  { %v1091_v2 = vsub.f32 1.0, %v6211_v29  ;;  %v1097_v46 = vmul.f32 %v6211_v29, %v6937_v41 }
 0x681   :  { %v1068_v9 = vpop.f32.mrf.mxu1 }
 0x682   :  { %v1106_v21 = vadd.f32 %v1068_v9, %v6872_v27  ;;  %v1099_v37 = vadd.f32 %v1068_v9, %v927_v35 }
 0x683   :  { %v5716_v25 = vpop.f32.mrf.mxu1 }
 0x684   :  { %1108 = vrot.lane.b32.xlu1 %v1106_v21, %s6434_s25  ;;  %v5308_v39 = vmul.f32 -1.442695, %v1099_v37 }
 0x686   :  { %6212 = vpow2.f32 %v5308_v39 }
 0x68b   :  { %v1082_v31 = vpop.permute.xlu0 %1081 }
 0x68c   :  { %v1084_v59 = vmul.f32 %v6211_v29, %v1082_v31 }
 0x68e   :  { %1086 = vrot.lane.b32.xlu0 %v1084_v59, %s6434_s25 }
 0x693   :  { %v6213_v48 = vpop.eup %6212 }
 0x694   :  { %v1103_v50 = vadd.f32 1.0, %v6213_v48 }
 0x696   :  { %6214 = vrcp.f32 %v1103_v50 }
 0x6a3   :  { %v6215_v43 = vpop.eup %6214 }
 0x6a4   :  { %v1124_v17 = vmul.f32 %v6215_v43, %v6944_v4 }
 0x6f6   :  { %v1109_v54 = vpop.permute.xlu1 %1108 }
 0x6f7   :  { %v1111_v23 = vmul.f32 %v6215_v43, %v1109_v54 }
 0x6f9   :  { %1113 = vrot.lane.b32.xlu1 %v1111_v23, %s6434_s25 }
 0x700   :  { %v1087_v58 = vpop.permute.xlu0 %1086 }
 0x701   :  { %v1089_v33 = vadd.f32 %v1087_v58, %v925_v6  ;;  %v1118_v6 = vsub.f32 1.0, %v6215_v43 }
 0x703   :  { %6216 = vtanh.f32 %v1089_v33 }
 0x710   :  { %v6217_v61 = vpop.eup %6216 }
 0x711   :  { %1093 = vrot.lane.b32.xlu0 %v6217_v61, %s6436_s0 }
 0x76b   :  { %v1114_v0 = vpop.permute.xlu1 %1113 }
 0x76c   :  { %v1116_v10 = vadd.f32 %v1114_v0, %v927_v35  ;;  %v1139_v35 = vld [vmem:[#allocation2 + $0x18] sm:$0xff] }
 0x76e   :  { %6218 = vtanh.f32 %v1116_v10 }
 0x77b   :  { %v6219_v14 = vpop.eup %6218 }
 0x77c   :  { %1120 = vrot.lane.b32.xlu1 %v6219_v14, %s6436_s0 }
 0x783   :  { %v1094_v62 = vpop.permute.xlu0 %1093 }
 0x784   :  { %v1096_v42 = vmul.f32 %v1094_v62, %v1091_v2 }
 0x786   :  { %v6985_v7 = vadd.f32 %v1097_v46, %v1096_v42 }
 0x788   :  { %1127 = vrot.lane.b32.xlu0 %v6985_v7, %s6436_s0 }
 0x78c   :  { %397 = vrot.lane.b32.xlu0 %v6849_v52, %s6435_s3 }
 0x7ee   :  { %v1121_v13 = vpop.permute.xlu1 %1120 }
 0x7ef   :  { %v1123_v9 = vmul.f32 %v1121_v13, %v1118_v6 }
 0x7f1   :  { %v6992_v21 = vadd.f32 %v1124_v17, %v1123_v9 }
 0x7f3   :  { %1133 = vrot.lane.b32.xlu1 %v6992_v21, %s6436_s0 }
 0x7f7   :  { %399 = vrot.lane.b32.xlu1 %v6854_v56, %s6435_s3 }
 0x7fa   :  { %v1128_v41 = vpop.permute.xlu0 %1127 }
 0x7fb   :  { %1131 = vst.msk [vmem:[#allocation4 + $0x10] sm:$0xff] %vm90_vm0, %v1128_v41  ;;  %5726 = vmatmul.mubr.msk.f32.vlgmr.msra.gmra.mxu1 %vm90_vm0, %v1128_v41 }
 0x7fc   :  { %5729 = vmatpush3.msra.mxu1 %v6600_v16  ;;  %5736 = vmatprep.mubr.msk.f32.mxu1 %vm6433_vm1, %v6432_v3 }
 0x7fd   :  { %5730 = vmatprep.subr.mxu1 %v6432_v3 }
 0x7fe   :  { %5731 = vmatpush3.msra.mxu1 %v6611_v18  ;;  %v398_v56 = vpop.permute.xlu0 %397 }
 0x7ff   :  { %5732 = vmatprep.subr.mxu1 %v6432_v3 }
 0x800   :  { %5733 = vmatpush3.msra.mxu1 %v6625_v20 }
 0x801   :  { %5734 = vmatprep.subr.mxu1 %v6432_v3 }
 0x802   :  { %5735 = vmatpush3.msra.mxu1 %v6636_v22 }
 0x803   :  { %5750 = vmatprep.subr.mxu1 %v6432_v3 }
 0x865   :  { %v1134_v52 = vpop.permute.xlu1 %1133 }
 0x866   :  { %1137 = vst.msk [vmem:[#allocation5 + $0x68] sm:$0xff] %vm90_vm0, %v1134_v52  ;;  %5737 = vmatmul.mubr.msk.f32.vlgmr.msra.gmra.mxu1 %vm90_vm0, %v1134_v52 }
 0x867   :  { %5751 = vmatpush3.msra.mxu1 %v6600_v16  ;;  %5758 = vmatprep.mubr.msk.f32.mxu1 %vm6433_vm1, %v6432_v3 }
 0x868   :  { %5752 = vmatprep.subr.mxu1 %v6432_v3 }
 0x869   :  { %v400_v4 = vpop.permute.xlu1 %399  ;;  %5753 = vmatpush3.msra.mxu1 %v6611_v18 }
 0x86a   :  { %v425_v25 = vsel %vm90_vm0, %v398_v56, %v400_v4  ;;  %5754 = vmatprep.subr.mxu1 %v6432_v3 }
 0x86b   :  { %457 = vst.msk [vmem:[#allocation3 + $0x60] sm:$0xff] %vm300_vm2, %v425_v25  ;;  %5755 = vmatpush3.msra.mxu1 %v6625_v20 }
 0x86c   :  { %5756 = vmatprep.subr.mxu1 %v6432_v3 }
 0x86d   :  { %5757 = vmatpush3.msra.mxu1 %v6636_v22 }
 0x86e   :  { %5772 = vmatprep.subr.mxu1 %v6432_v3 }
 0x872   :  { %v1141_v0 = vld [vmem:[#allocation3 + $0x60] sm:$0xff] }
 0x8bb   :  { %v1210_v29 = vpop.f32.mrf.mxu1 }
 0x8bc   :  { %v1293_v31 = vadd.f32 %v1210_v29, %v6743_v44  ;;  %v1286_v37 = vadd.f32 %v1210_v29, %v1139_v35 }
 0x8bd   :  { %v5727_v59 = vpop.f32.mrf.mxu1 }
 0x8be   :  { %1295 = vrot.lane.b32.xlu1 %v1293_v31, %s6434_s25  ;;  %v5311_v39 = vmul.f32 -1.442695, %v1286_v37 }
 0x8c0   :  { %6220 = vpow2.f32 %v5311_v39 }
 0x8cd   :  { %v6221_v48 = vpop.eup %6220 }
 0x8ce   :  { %v1290_v50 = vadd.f32 1.0, %v6221_v48 }
 0x8d0   :  { %6222 = vrcp.f32 %v1290_v50 }
 0x8dd   :  { %v6223_v58 = vpop.eup %6222 }
 0x8de   :  { %v1305_v4 = vsub.f32 1.0, %v6223_v58  ;;  %v1311_v29 = vmul.f32 %v6223_v58, %v6985_v7 }
 0x926   :  { %v1282_v43 = vpop.f32.mrf.mxu1 }
 0x927   :  { %v1320_v54 = vadd.f32 %v1282_v43, %v6872_v27  ;;  %v1313_v10 = vadd.f32 %v1282_v43, %v1141_v0 }
 0x928   :  { %v5738_v23 = vpop.f32.mrf.mxu1 }
 0x929   :  { %1322 = vrot.lane.b32.xlu0 %v1320_v54, %s6434_s25  ;;  %v5312_v14 = vmul.f32 -1.442695, %v1313_v10 }
 0x92b   :  { %6224 = vpow2.f32 %v5312_v14 }
 0x930   :  { %v1296_v33 = vpop.permute.xlu1 %1295 }
 0x931   :  { %v1298_v61 = vmul.f32 %v6223_v58, %v1296_v33 }
 0x933   :  { %1300 = vrot.lane.b32.xlu1 %v1298_v61, %s6434_s25 }
 0x938   :  { %v6225_v2 = vpop.eup %6224 }
 0x939   :  { %v1317_v62 = vadd.f32 1.0, %v6225_v2 }
 0x93b   :  { %6226 = vrcp.f32 %v1317_v62 }
 0x948   :  { %v6227_v46 = vpop.eup %6226 }
 0x949   :  { %v1338_v39 = vmul.f32 %v6227_v46, %v6992_v21  ;;  %v7067_v21 = vld [vmem:[%s8060_s4 + $0x8] sm:$0xff] }
 0x99b   :  { %v1323_v42 = vpop.permute.xlu0 %1322 }
 0x99c   :  { %v1325_v6 = vmul.f32 %v6227_v46, %v1323_v42 }
 0x99e   :  { %1327 = vrot.lane.b32.xlu0 %v1325_v6, %s6434_s25 }
 0x9a5   :  { %v1301_v13 = vpop.permute.xlu1 %1300 }
 0x9a6   :  { %v1303_v17 = vadd.f32 %v1301_v13, %v1139_v35  ;;  %v1332_v35 = vsub.f32 1.0, %v6227_v46 }
 0x9a8   :  { %6228 = vtanh.f32 %v1303_v17 }
 0x9b5   :  { %v6229_v9 = vpop.eup %6228 }
 0x9b6   :  { %1307 = vrot.lane.b32.xlu1 %v6229_v9, %s6436_s0 }
 0xa10   :  { %v1328_v41 = vpop.permute.xlu0 %1327 }
 0xa11   :  { %v1330_v52 = vadd.f32 %v1328_v41, %v1141_v0 }
 0xa13   :  { %6230 = vtanh.f32 %v1330_v52 }
 0xa20   :  { %v6231_v56 = vpop.eup %6230 }
 0xa21   :  { %1334 = vrot.lane.b32.xlu0 %v6231_v56, %s6436_s0 }
 0xa28   :  { %v1308_v25 = vpop.permute.xlu1 %1307 }
 0xa29   :  { %v1310_v31 = vmul.f32 %v1308_v25, %v1305_v4 }
 0xa2b   :  { %v7033_v59 = vadd.f32 %v1311_v29, %v1310_v31 }
 0xa2d   :  { %1341 = vrot.lane.b32.xlu1 %v7033_v59, %s6436_s0 }
 0xa31   :  { %395 = vrot.lane.b32.xlu1 %v6846_v49, %s6435_s3  ;;  %v7051_v49 = vld [vmem:[%s8060_s4 + $0x18] sm:$0xff] }
 0xa93   :  { %v1335_v37 = vpop.permute.xlu0 %1334 }
 0xa94   :  { %v1337_v48 = vmul.f32 %v1335_v37, %v1332_v35 }
 0xa96   :  { %v7040_v50 = vadd.f32 %v1338_v39, %v1337_v48 }
 0xa98   :  { %1347 = vrot.lane.b32.xlu0 %v7040_v50, %s6436_s0 }
 0xa9c   :  { %393 = vrot.lane.b32.xlu0 %v6841_v45, %s6435_s3  ;;  %v7060_v45 = vld [vmem:[%s8060_s4 + $0x10] sm:$0xff] }
 0xa9f   :  { %v1342_v7 = vpop.permute.xlu1 %1341 }
 0xaa0   :  { %1345 = vst.msk [vmem:[#allocation4 + $0x18] sm:$0xff] %vm90_vm0, %v1342_v7  ;;  %5748 = vmatmul.mubr.msk.f32.vlgmr.msra.gmra.mxu0 %vm90_vm0, %v1342_v7 }
 0xaa1   :  { %5762 = vmatpush3.msra.mxu0 %v7051_v49  ;;  %5769 = vmatprep.mubr.msk.f32.mxu0 %vm6433_vm1, %v6432_v3 }
 0xaa2   :  { %5763 = vmatprep.subr.mxu0 %v6432_v3 }
 0xaa3   :  { %5764 = vmatpush3.msra.mxu0 %v7060_v45  ;;  %v396_v54 = vpop.permute.xlu1 %395 }
 0xaa4   :  { %5765 = vmatprep.subr.mxu0 %v6432_v3 }
 0xaa5   :  { %5766 = vmatpush3.msra.mxu0 %v7067_v21 }
 0xaa6   :  { %5767 = vmatprep.subr.mxu0 %v6432_v3 }
 0xaa7   :  { %5768 = vmatpush3.msra.mxu0 %v6576_v12 }
 0xaa8   :  { %5783 = vmatprep.subr.mxu0 %v6432_v3 }
 0xb0a   :  { %v1348_v43 = vpop.permute.xlu0 %1347 }
 0xb0b   :  { %1351 = vst.msk [vmem:[#allocation5 + $0x60] sm:$0xff] %vm90_vm0, %v1348_v43  ;;  %5759 = vmatmul.mubr.msk.f32.vlgmr.msra.gmra.mxu1 %vm90_vm0, %v1348_v43 }
 0xb0c   :  { %5773 = vmatpush3.msra.mxu1 %v6600_v16  ;;  %5780 = vmatprep.mubr.msk.f32.mxu1 %vm6433_vm1, %v6432_v3 }
 0xb0d   :  { %5774 = vmatprep.subr.mxu1 %v6432_v3 }
 0xb0e   :  { %v394_v23 = vpop.permute.xlu0 %393  ;;  %5775 = vmatpush3.msra.mxu1 %v6611_v18  ;;  %v1353_v18 = vld [vmem:[#allocation2 + $0x20] sm:$0xff] }
 0xb0f   :  { %v424_v12 = vsel %vm90_vm0, %v394_v23, %v396_v54  ;;  %5776 = vmatprep.subr.mxu1 %v6432_v3 }
 0xb10   :  { %456 = vst.msk [vmem:[#allocation3 + $0x58] sm:$0xff] %vm300_vm2, %v424_v12  ;;  %5777 = vmatpush3.msra.mxu1 %v6625_v20 }
 0xb11   :  { %5778 = vmatprep.subr.mxu1 %v6432_v3 }
 0xb12   :  { %5779 = vmatpush3.msra.mxu1 %v6636_v22 }
 0xb13   :  { %5794 = vmatprep.subr.mxu1 %v6432_v3 }
 0xb17   :  { %v1355_v6 = vld [vmem:[#allocation3 + $0x58] sm:$0xff] }
 0xb60   :  { %v1424_v16 = vpop.f32.mrf.mxu0 }
 0xb61   :  { %v1507_v58 = vadd.f32 %v1424_v16, %v6743_v44  ;;  %v1500_v61 = vadd.f32 %v1424_v16, %v1353_v18 }
 0xb62   :  { %v5749_v33 = vpop.f32.mrf.mxu0 }
 0xb63   :  { %1509 = vrot.lane.b32.xlu1 %v1507_v58, %s6434_s25  ;;  %v5315_v0 = vmul.f32 -1.442695, %v1500_v61 }
 0xb65   :  { %6232 = vpow2.f32 %v5315_v0 }
 0xb72   :  { %v6233_v10 = vpop.eup %6232 }
 0xb73   :  { %v1504_v14 = vadd.f32 1.0, %v6233_v10  ;;  %v7140_v10 = vld [vmem:[%s8061_s5 + $0x10] sm:$0xff] }
 0xb75   :  { %6234 = vrcp.f32 %v1504_v14 }
 0xb82   :  { %v6235_v22 = vpop.eup %6234 }
 0xb83   :  { %v1519_v48 = vsub.f32 1.0, %v6235_v22  ;;  %v1525_v43 = vmul.f32 %v6235_v22, %v7033_v59 }
 0xbcb   :  { %v1496_v20 = vpop.f32.mrf.mxu1 }
 0xbcc   :  { %v1534_v2 = vadd.f32 %v1496_v20, %v6872_v27  ;;  %v1527_v13 = vadd.f32 %v1496_v20, %v1355_v6  ;;  %v7149_v20 = vld [vmem:[%s8061_s5 + $0x8] sm:$0xff] }
 0xbcd   :  { %v5760_v62 = vpop.f32.mrf.mxu1 }
 0xbce   :  { %1536 = vrot.lane.b32.xlu0 %v1534_v2, %s6434_s25  ;;  %v5316_v17 = vmul.f32 -1.442695, %v1527_v13  ;;  %v7156_v2 = vld [vmem:[%s8061_s5] sm:$0xff] }
 0xbd0   :  { %6236 = vpow2.f32 %v5316_v17 }
 0xbd5   :  { %v1510_v46 = vpop.permute.xlu1 %1509 }
 0xbd6   :  { %v1512_v42 = vmul.f32 %v6235_v22, %v1510_v46 }
 0xbd8   :  { %1514 = vrot.lane.b32.xlu1 %v1512_v42, %s6434_s25  ;;  %v1567_v42 = vld [vmem:[#allocation2 + $0x28] sm:$0xff] }
 0xbdd   :  { %v6237_v9 = vpop.eup %6236 }
 0xbde   :  { %v1531_v41 = vadd.f32 1.0, %v6237_v9 }
 0xbe0   :  { %6238 = vrcp.f32 %v1531_v41 }
 0xbed   :  { %v6239_v52 = vpop.eup %6238 }
 0xbee   :  { %v1546_v12 = vsub.f32 1.0, %v6239_v52  ;;  %v1552_v58 = vmul.f32 %v6239_v52, %v7040_v50  ;;  %v7131_v50 = vld [vmem:[%s8061_s5 + $0x18] sm:$0xff] }
 0xc40   :  { %v1537_v56 = vpop.permute.xlu0 %1536 }
 0xc41   :  { %v1539_v4 = vmul.f32 %v6239_v52, %v1537_v56 }
 0xc43   :  { %1541 = vrot.lane.b32.xlu0 %v1539_v4, %s6434_s25 }
 0xc4a   :  { %v1515_v25 = vpop.permute.xlu1 %1514 }
 0xc4b   :  { %v1517_v29 = vadd.f32 %v1515_v25, %v1353_v18 }
 0xc4d   :  { %6240 = vtanh.f32 %v1517_v29 }
 0xc5a   :  { %v6241_v31 = vpop.eup %6240 }
 0xc5b   :  { %1521 = vrot.lane.b32.xlu1 %v6241_v31, %s6436_s0 }
 0xcb5   :  { %v1542_v35 = vpop.permute.xlu0 %1541 }
 0xcb6   :  { %v1544_v37 = vadd.f32 %v1542_v35, %v1355_v6 }
 0xcb8   :  { %6242 = vtanh.f32 %v1544_v37 }
 0xcc5   :  { %v6243_v39 = vpop.eup %6242 }
 0xcc6   :  { %1548 = vrot.lane.b32.xlu0 %v6243_v39, %s6436_s0 }
 0xccd   :  { %v1522_v7 = vpop.permute.xlu1 %1521 }
 0xcce   :  { %v1524_v54 = vmul.f32 %v1522_v7, %v1519_v48 }
 0xcd0   :  { %v7096_v23 = vadd.f32 %v1525_v43, %v1524_v54 }
 0xcd2   :  { %1555 = vrot.lane.b32.xlu1 %v7096_v23, %s6436_s0 }
 0xcd6   :  { %391 = vrot.lane.b32.xlu1 %v6838_v40, %s6435_s3 }
 0xd38   :  { %v1549_v16 = vpop.permute.xlu0 %1548 }
 0xd39   :  { %v1551_v33 = vmul.f32 %v1549_v16, %v1546_v12 }
 0xd3b   :  { %v7103_v18 = vadd.f32 %v1552_v58, %v1551_v33 }
 0xd3d   :  { %1561 = vrot.lane.b32.xlu0 %v7103_v18, %s6436_s0 }
 0xd41   :  { %389 = vrot.lane.b32.xlu0 %v6833_v38, %s6435_s3  ;;  %v7122_v38 = vld [vmem:[%s8060_s4] sm:$0xff] }
 0xd44   :  { %v1556_v59 = vpop.permute.xlu1 %1555 }
 0xd45   :  { %1559 = vst.msk [vmem:[#allocation4 + $0x20] sm:$0xff] %vm90_vm0, %v1556_v59  ;;  %5770 = vmatmul.mubr.msk.f32.vlgmr.msra.gmra.mxu0 %vm90_vm0, %v1556_v59 }
 0xd46   :  { %5784 = vmatpush3.msra.mxu0 %v7051_v49  ;;  %5791 = vmatprep.mubr.msk.f32.mxu0 %vm6433_vm1, %v6432_v3 }
 0xd47   :  { %5785 = vmatprep.subr.mxu0 %v6432_v3 }
 0xd48   :  { %5786 = vmatpush3.msra.mxu0 %v7060_v45  ;;  %v392_v61 = vpop.permute.xlu1 %391 }
 0xd49   :  { %5787 = vmatprep.subr.mxu0 %v6432_v3 }
 0xd4a   :  { %5788 = vmatpush3.msra.mxu0 %v7067_v21 }
 0xd4b   :  { %5789 = vmatprep.subr.mxu0 %v6432_v3 }
 0xd4c   :  { %5790 = vmatpush3.msra.mxu0 %v7122_v38 }
 0xd4d   :  { %5805 = vmatprep.subr.mxu0 %v6432_v3 }
 0xdaf   :  { %v1562_v40 = vpop.permute.xlu0 %1561 }
 0xdb0   :  { %1565 = vst.msk [vmem:[#allocation5 + $0x58] sm:$0xff] %vm90_vm0, %v1562_v40  ;;  %5781 = vmatmul.mubr.msk.f32.vlgmr.msra.gmra.mxu1 %vm90_vm0, %v1562_v40 }
 0xdb1   :  { %5795 = vmatpush3.msra.mxu1 %v7131_v50  ;;  %5802 = vmatprep.mubr.msk.f32.mxu1 %vm6433_vm1, %v6432_v3 }
 0xdb2   :  { %5796 = vmatprep.subr.mxu1 %v6432_v3 }
 0xdb3   :  { %v390_v0 = vpop.permute.xlu0 %389  ;;  %5797 = vmatpush3.msra.mxu1 %v7140_v10 }
 0xdb4   :  { %v423_v14 = vsel %vm90_vm0, %v390_v0, %v392_v61  ;;  %5798 = vmatprep.subr.mxu1 %v6432_v3 }
 0xdb5   :  { %455 = vst.msk [vmem:[#allocation3 + $0x50] sm:$0xff] %vm300_vm2, %v423_v14  ;;  %5799 = vmatpush3.msra.mxu1 %v7149_v20 }
 0xdb6   :  { %5800 = vmatprep.subr.mxu1 %v6432_v3 }
 0xdb7   :  { %5801 = vmatpush3.msra.mxu1 %v7156_v2 }
 0xdb8   :  { %5816 = vmatprep.subr.mxu1 %v6432_v3 }
 0xdbc   :  { %v1569_v31 = vld [vmem:[#allocation3 + $0x50] sm:$0xff] }
 0xe05   :  { %v1638_v62 = vpop.f32.mrf.mxu0 }
 0xe06   :  { %v1721_v22 = vadd.f32 %v1638_v62, %v6743_v44  ;;  %v1714_v6 = vadd.f32 %v1638_v62, %v1567_v42 }
 0xe07   :  { %v5771_v46 = vpop.f32.mrf.mxu0 }
 0xe08   :  { %1723 = vrot.lane.b32.xlu1 %v1721_v22, %s6434_s25  ;;  %v5319_v13 = vmul.f32 -1.442695, %v1714_v6 }
 0xe0a   :  { %6244 = vpow2.f32 %v5319_v13 }
 0xe17   :  { %v6245_v17 = vpop.eup %6244 }
 0xe18   :  { %v1718_v9 = vadd.f32 1.0, %v6245_v17 }
 0xe1a   :  { %6246 = vrcp.f32 %v1718_v9 }
 0xe27   :  { %v6247_v4 = vpop.eup %6246 }
 0xe28   :  { %v1733_v61 = vsub.f32 1.0, %v6247_v4  ;;  %v1739_v14 = vmul.f32 %v6247_v4, %v7096_v23 }
 0xe70   :  { %v1710_v41 = vpop.f32.mrf.mxu1 }
 0xe71   :  { %v1748_v52 = vadd.f32 %v1710_v41, %v6872_v27  ;;  %v1741_v35 = vadd.f32 %v1710_v41, %v1569_v31 }
 0xe72   :  { %v5782_v56 = vpop.f32.mrf.mxu1 }
 0xe73   :  { %1750 = vrot.lane.b32.xlu0 %v1748_v52, %s6434_s25  ;;  %v5320_v37 = vmul.f32 -1.442695, %v1741_v35 }
 0xe75   :  { %6248 = vpow2.f32 %v5320_v37 }
 0xe7a   :  { %v1724_v25 = vpop.permute.xlu1 %1723 }
 0xe7b   :  { %v1726_v29 = vmul.f32 %v6247_v4, %v1724_v25  ;;  %v1781_v4 = vld [vmem:[#allocation2 + $0x30] sm:$0xff] }
 0xe7d   :  { %1728 = vrot.lane.b32.xlu1 %v1726_v29, %s6434_s25 }
 0xe82   :  { %v6249_v39 = vpop.eup %6248 }
 0xe83   :  { %v1745_v48 = vadd.f32 1.0, %v6249_v39 }
 0xe85   :  { %6250 = vrcp.f32 %v1745_v48 }
 0xe92   :  { %v6251_v7 = vpop.eup %6250 }
 0xe93   :  { %v1760_v46 = vsub.f32 1.0, %v6251_v7  ;;  %v1766_v6 = vmul.f32 %v6251_v7, %v7103_v18 }
 0xee5   :  { %v1751_v43 = vpop.permute.xlu0 %1750 }
 0xee6   :  { %v1753_v54 = vmul.f32 %v6251_v7, %v1751_v43 }
 0xee8   :  { %1755 = vrot.lane.b32.xlu0 %v1753_v54, %s6434_s25 }
 0xeef   :  { %v1729_v12 = vpop.permute.xlu1 %1728 }
 0xef0   :  { %v1731_v16 = vadd.f32 %v1729_v12, %v1567_v42 }
 0xef2   :  { %6252 = vtanh.f32 %v1731_v16 }
 0xeff   :  { %v6253_v58 = vpop.eup %6252 }
 0xf00   :  { %1735 = vrot.lane.b32.xlu1 %v6253_v58, %s6436_s0 }
 0xf5a   :  { %v1756_v33 = vpop.permute.xlu0 %1755 }
 0xf5b   :  { %v1758_v59 = vadd.f32 %v1756_v33, %v1569_v31 }
 0xf5d   :  { %6254 = vtanh.f32 %v1758_v59 }
 0xf6a   :  { %v6255_v40 = vpop.eup %6254 }
 0xf6b   :  { %1762 = vrot.lane.b32.xlu0 %v6255_v40, %s6436_s0 }
 0xf72   :  { %v1736_v0 = vpop.permute.xlu1 %1735 }
 0xf73   :  { %v1738_v62 = vmul.f32 %v1736_v0, %v1733_v61 }
 0xf75   :  { %v7169_v22 = vadd.f32 %v1739_v14, %v1738_v62 }
 0xf77   :  { %1769 = vrot.lane.b32.xlu1 %v7169_v22, %s6436_s0 }
 0xf7b   :  { %387 = vrot.lane.b32.xlu1 %v6830_v36, %s6435_s3 }
 0xfdd   :  { %v1763_v42 = vpop.permute.xlu0 %1762 }
 0xfde   :  { %v1765_v13 = vmul.f32 %v1763_v42, %v1760_v46 }
 0xfe0   :  { %v7176_v17 = vadd.f32 %v1766_v6, %v1765_v13 }
 0xfe2   :  { %1775 = vrot.lane.b32.xlu0 %v7176_v17, %s6436_s0 }
 0xfe6   :  { %385 = vrot.lane.b32.xlu0 %v6825_v34, %s6435_s3 }
 0xfe9   :  { %v1770_v23 = vpop.permute.xlu1 %1769 }
 0xfea   :  { %1773 = vst.msk [vmem:[#allocation4 + $0x28] sm:$0xff] %vm90_vm0, %v1770_v23  ;;  %5792 = vmatmul.mubr.msk.f32.vlgmr.msra.gmra.mxu0 %vm90_vm0, %v1770_v23 }
 0xfeb   :  { %5806 = vmatpush3.msra.mxu0 %v7051_v49  ;;  %5813 = vmatprep.mubr.msk.f32.mxu0 %vm6433_vm1, %v6432_v3 }
 0xfec   :  { %5807 = vmatprep.subr.mxu0 %v6432_v3 }
 0xfed   :  { %5808 = vmatpush3.msra.mxu0 %v7060_v45  ;;  %v388_v36 = vpop.permute.xlu1 %387 }
 0xfee   :  { %5809 = vmatprep.subr.mxu0 %v6432_v3 }
 0xfef   :  { %5810 = vmatpush3.msra.mxu0 %v7067_v21 }
 0xff0   :  { %5811 = vmatprep.subr.mxu0 %v6432_v3 }
 0xff1   :  { %5812 = vmatpush3.msra.mxu0 %v7122_v38 }
 0xff2   :  { %5827 = vmatprep.subr.mxu0 %v6432_v3 }
0x1054   :  { %v1776_v34 = vpop.permute.xlu0 %1775 }
0x1055   :  { %1779 = vst.msk [vmem:[#allocation5 + $0x50] sm:$0xff] %vm90_vm0, %v1776_v34  ;;  %5803 = vmatmul.mubr.msk.f32.vlgmr.msra.gmra.mxu1 %vm90_vm0, %v1776_v34 }
0x1056   :  { %5817 = vmatpush3.msra.mxu1 %v7131_v50  ;;  %5824 = vmatprep.mubr.msk.f32.mxu1 %vm6433_vm1, %v6432_v3 }
0x1057   :  { %5818 = vmatprep.subr.mxu1 %v6432_v3 }
0x1058   :  { %v386_v18 = vpop.permute.xlu0 %385  ;;  %5819 = vmatpush3.msra.mxu1 %v7140_v10 }
0x1059   :  { %v422_v9 = vsel %vm90_vm0, %v386_v18, %v388_v36  ;;  %5820 = vmatprep.subr.mxu1 %v6432_v3 }
0x105a   :  { %454 = vst.msk [vmem:[#allocation3 + $0x48] sm:$0xff] %vm300_vm2, %v422_v9  ;;  %5821 = vmatpush3.msra.mxu1 %v7149_v20 }
0x105b   :  { %5822 = vmatprep.subr.mxu1 %v6432_v3 }
0x105c   :  { %5823 = vmatpush3.msra.mxu1 %v7156_v2 }
0x105d   :  { %5838 = vmatprep.subr.mxu1 %v6432_v3 }
0x1061   :  { %v1783_v12 = vld [vmem:[#allocation3 + $0x48] sm:$0xff] }
0x10aa   :  { %v1852_v41 = vpop.f32.mrf.mxu0 }
0x10ab   :  { %v1935_v52 = vadd.f32 %v1852_v41, %v6743_v44  ;;  %v1928_v25 = vadd.f32 %v1852_v41, %v1781_v4 }
0x10ac   :  { %v5793_v56 = vpop.f32.mrf.mxu0 }
0x10ad   :  { %1937 = vrot.lane.b32.xlu1 %v1935_v52, %s6434_s25  ;;  %v5323_v29 = vmul.f32 -1.442695, %v1928_v25 }
0x10af   :  { %6256 = vpow2.f32 %v5323_v29 }
0x10bc   :  { %v6257_v31 = vpop.eup %6256 }
0x10bd   :  { %v1932_v35 = vadd.f32 1.0, %v6257_v31 }
0x10bf   :  { %6258 = vrcp.f32 %v1932_v35 }
0x10cc   :  { %v6259_v7 = vpop.eup %6258 }
0x10cd   :  { %v1947_v23 = vsub.f32 1.0, %v6259_v7  ;;  %v1953_v36 = vmul.f32 %v6259_v7, %v7169_v22 }
0x1115   :  { %v1924_v37 = vpop.f32.mrf.mxu1 }
0x1116   :  { %v1962_v39 = vadd.f32 %v1924_v37, %v6872_v27  ;;  %v1955_v16 = vadd.f32 %v1924_v37, %v1783_v12 }
0x1117   :  { %v5804_v48 = vpop.f32.mrf.mxu1 }
0x1118   :  { %1964 = vrot.lane.b32.xlu0 %v1962_v39, %s6434_s25  ;;  %v5324_v58 = vmul.f32 -1.442695, %v1955_v16  ;;  %v1995_v39 = vld [vmem:[#allocation2 + $0x38] sm:$0xff] }
0x111a   :  { %6260 = vpow2.f32 %v5324_v58 }
0x111f   :  { %v1938_v43 = vpop.permute.xlu1 %1937 }
0x1120   :  { %v1940_v54 = vmul.f32 %v6259_v7, %v1938_v43 }
0x1122   :  { %1942 = vrot.lane.b32.xlu1 %v1940_v54, %s6434_s25 }
0x1127   :  { %v6261_v33 = vpop.eup %6260 }
0x1128   :  { %v1959_v59 = vadd.f32 1.0, %v6261_v33 }
0x112a   :  { %6262 = vrcp.f32 %v1959_v59 }
0x1137   :  { %v6263_v40 = vpop.eup %6262 }
0x1138   :  { %v1974_v41 = vsub.f32 1.0, %v6263_v40  ;;  %v1980_v56 = vmul.f32 %v6263_v40, %v7176_v17 }
0x118a   :  { %v1965_v61 = vpop.permute.xlu0 %1964 }
0x118b   :  { %v1967_v0 = vmul.f32 %v6263_v40, %v1965_v61 }
0x118d   :  { %1969 = vrot.lane.b32.xlu0 %v1967_v0, %s6434_s25 }
0x1194   :  { %v1943_v14 = vpop.permute.xlu1 %1942 }
0x1195   :  { %v1945_v62 = vadd.f32 %v1943_v14, %v1781_v4 }
0x1197   :  { %6264 = vtanh.f32 %v1945_v62 }
0x11a4   :  { %v6265_v46 = vpop.eup %6264 }
0x11a5   :  { %1949 = vrot.lane.b32.xlu1 %v6265_v46, %s6436_s0 }
0x11ff   :  { %v1970_v42 = vpop.permute.xlu0 %1969 }
0x1200   :  { %v1972_v6 = vadd.f32 %v1970_v42, %v1783_v12 }
0x1202   :  { %6266 = vtanh.f32 %v1972_v6 }
0x120f   :  { %v6267_v13 = vpop.eup %6266 }
0x1210   :  { %1976 = vrot.lane.b32.xlu0 %v6267_v13, %s6436_s0 }
0x1217   :  { %v1950_v34 = vpop.permute.xlu1 %1949 }
0x1218   :  { %v1952_v18 = vmul.f32 %v1950_v34, %v1947_v23 }
0x121a   :  { %v7217_v9 = vadd.f32 %v1953_v36, %v1952_v18 }
0x121c   :  { %1983 = vrot.lane.b32.xlu1 %v7217_v9, %s6436_s0 }
0x1220   :  { %383 = vrot.lane.b32.xlu1 %v6822_v32, %s6435_s3 }
0x1282   :  { %v1977_v52 = vpop.permute.xlu0 %1976 }
0x1283   :  { %v1979_v4 = vmul.f32 %v1977_v52, %v1974_v41 }
0x1285   :  { %v7224_v25 = vadd.f32 %v1980_v56, %v1979_v4 }
0x1287   :  { %1989 = vrot.lane.b32.xlu0 %v7224_v25, %s6436_s0 }
0x128b   :  { %381 = vrot.lane.b32.xlu0 %v6817_v30, %s6435_s3 }
0x128e   :  { %v1984_v22 = vpop.permute.xlu1 %1983 }
0x128f   :  { %1987 = vst.msk [vmem:[#allocation4 + $0x30] sm:$0xff] %vm90_vm0, %v1984_v22  ;;  %5814 = vmatmul.mubr.msk.f32.vlgmr.msra.gmra.mxu0 %vm90_vm0, %v1984_v22 }
0x1290   :  { %5828 = vmatpush3.msra.mxu0 %v7051_v49  ;;  %5835 = vmatprep.mubr.msk.f32.mxu0 %vm6433_vm1, %v6432_v3 }
0x1291   :  { %5829 = vmatprep.subr.mxu0 %v6432_v3 }
0x1292   :  { %5830 = vmatpush3.msra.mxu0 %v7060_v45  ;;  %v384_v32 = vpop.permute.xlu1 %383 }
0x1293   :  { %5831 = vmatprep.subr.mxu0 %v6432_v3 }
0x1294   :  { %5832 = vmatpush3.msra.mxu0 %v7067_v21 }
0x1295   :  { %5833 = vmatprep.subr.mxu0 %v6432_v3 }
0x1296   :  { %5834 = vmatpush3.msra.mxu0 %v7122_v38 }
0x1297   :  { %5849 = vmatprep.subr.mxu0 %v6432_v3 }
0x12f9   :  { %v1990_v30 = vpop.permute.xlu0 %1989 }
0x12fa   :  { %1993 = vst.msk [vmem:[#allocation5 + $0x48] sm:$0xff] %vm90_vm0, %v1990_v30  ;;  %5825 = vmatmul.mubr.msk.f32.vlgmr.msra.gmra.mxu1 %vm90_vm0, %v1990_v30 }
0x12fb   :  { %5839 = vmatpush3.msra.mxu1 %v7131_v50  ;;  %5846 = vmatprep.mubr.msk.f32.mxu1 %vm6433_vm1, %v6432_v3 }
0x12fc   :  { %5840 = vmatprep.subr.mxu1 %v6432_v3 }
0x12fd   :  { %v382_v17 = vpop.permute.xlu0 %381  ;;  %5841 = vmatpush3.msra.mxu1 %v7140_v10 }
0x12fe   :  { %v421_v29 = vsel %vm90_vm0, %v382_v17, %v384_v32  ;;  %5842 = vmatprep.subr.mxu1 %v6432_v3 }
0x12ff   :  { %453 = vst.msk [vmem:[#allocation3 + $0x40] sm:$0xff] %vm300_vm2, %v421_v29  ;;  %5843 = vmatpush3.msra.mxu1 %v7149_v20 }
0x1300   :  { %5844 = vmatprep.subr.mxu1 %v6432_v3 }
0x1301   :  { %5845 = vmatpush3.msra.mxu1 %v7156_v2 }
0x1302   :  { %5860 = vmatprep.subr.mxu1 %v6432_v3 }
0x1306   :  { %v1997_v61 = vld [vmem:[#allocation3 + $0x40] sm:$0xff] }
0x134f   :  { %v2066_v31 = vpop.f32.mrf.mxu0 }
0x1350   :  { %v2149_v35 = vadd.f32 %v2066_v31, %v6743_v44  ;;  %v2142_v48 = vadd.f32 %v2066_v31, %v1995_v39 }
0x1351   :  { %v5815_v37 = vpop.f32.mrf.mxu0 }
0x1352   :  { %2151 = vrot.lane.b32.xlu1 %v2149_v35, %s6434_s25  ;;  %v5327_v7 = vmul.f32 -1.442695, %v2142_v48 }
0x1354   :  { %6268 = vpow2.f32 %v5327_v7 }
0x1361   :  { %v6269_v43 = vpop.eup %6268 }
0x1362   :  { %v2146_v54 = vadd.f32 1.0, %v6269_v43 }
0x1364   :  { %6270 = vrcp.f32 %v2146_v54  ;;  %v2209_v54 = vld [vmem:[#allocation2 + $0x40] sm:$0xff] }
0x1371   :  { %v6271_v33 = vpop.eup %6270 }
0x1372   :  { %v2161_v56 = vsub.f32 1.0, %v6271_v33  ;;  %v2167_v22 = vmul.f32 %v6271_v33, %v7217_v9 }
0x13ba   :  { %v2138_v12 = vpop.f32.mrf.mxu1 }
0x13bb   :  { %v2176_v16 = vadd.f32 %v2138_v12, %v6872_v27  ;;  %v2169_v0 = vadd.f32 %v2138_v12, %v1997_v61 }
0x13bc   :  { %v5826_v58 = vpop.f32.mrf.mxu1 }
0x13bd   :  { %2178 = vrot.lane.b32.xlu0 %v2176_v16, %s6434_s25  ;;  %v5328_v14 = vmul.f32 -1.442695, %v2169_v0 }
0x13bf   :  { %6272 = vpow2.f32 %v5328_v14 }
0x13c4   :  { %v2152_v59 = vpop.permute.xlu1 %2151 }
0x13c5   :  { %v2154_v40 = vmul.f32 %v6271_v33, %v2152_v59 }
0x13c7   :  { %2156 = vrot.lane.b32.xlu1 %v2154_v40, %s6434_s25 }
0x13cc   :  { %v6273_v62 = vpop.eup %6272 }
0x13cd   :  { %v2173_v46 = vadd.f32 1.0, %v6273_v62 }
0x13cf   :  { %6274 = vrcp.f32 %v2173_v46 }
0x13dc   :  { %v6275_v42 = vpop.eup %6274 }
0x13dd   :  { %v2188_v17 = vsub.f32 1.0, %v6275_v42  ;;  %v2194_v31 = vmul.f32 %v6275_v42, %v7224_v25 }
0x142f   :  { %v2179_v6 = vpop.permute.xlu0 %2178 }
0x1430   :  { %v2181_v13 = vmul.f32 %v6275_v42, %v2179_v6 }
0x1432   :  { %2183 = vrot.lane.b32.xlu0 %v2181_v13, %s6434_s25 }
0x1439   :  { %v2157_v23 = vpop.permute.xlu1 %2156 }
0x143a   :  { %v2159_v34 = vadd.f32 %v2157_v23, %v1995_v39 }
0x143c   :  { %6276 = vtanh.f32 %v2159_v34 }
0x1449   :  { %v6277_v36 = vpop.eup %6276 }
0x144a   :  { %2163 = vrot.lane.b32.xlu1 %v6277_v36, %s6436_s0 }
0x14a4   :  { %v2184_v18 = vpop.permute.xlu0 %2183 }
0x14a5   :  { %v2186_v41 = vadd.f32 %v2184_v18, %v1997_v61 }
0x14a7   :  { %6278 = vtanh.f32 %v2186_v41 }
0x14b4   :  { %v6279_v52 = vpop.eup %6278 }
0x14b5   :  { %2190 = vrot.lane.b32.xlu0 %v6279_v52, %s6436_s0 }
0x14bc   :  { %v2164_v4 = vpop.permute.xlu1 %2163 }
0x14bd   :  { %v2166_v30 = vmul.f32 %v2164_v4, %v2161_v56 }
0x14bf   :  { %v7265_v32 = vadd.f32 %v2167_v22, %v2166_v30 }
0x14c1   :  { %2197 = vrot.lane.b32.xlu1 %v7265_v32, %s6436_s0 }
0x14c5   :  { %379 = vrot.lane.b32.xlu1 %v6814_v28, %s6435_s3 }
0x1527   :  { %v2191_v29 = vpop.permute.xlu0 %2190 }
0x1528   :  { %v2193_v35 = vmul.f32 %v2191_v29, %v2188_v17 }
0x152a   :  { %v7272_v37 = vadd.f32 %v2194_v31, %v2193_v35 }
0x152c   :  { %2203 = vrot.lane.b32.xlu0 %v7272_v37, %s6436_s0 }
0x1530   :  { %377 = vrot.lane.b32.xlu0 %v6809_v26, %s6435_s3 }
0x1533   :  { %v2198_v9 = vpop.permute.xlu1 %2197 }
0x1534   :  { %2201 = vst.msk [vmem:[#allocation4 + $0x38] sm:$0xff] %vm90_vm0, %v2198_v9  ;;  %5836 = vmatmul.mubr.msk.f32.vlgmr.msra.gmra.mxu0 %vm90_vm0, %v2198_v9 }
0x1535   :  { %5850 = vmatpush3.msra.mxu0 %v7051_v49  ;;  %5857 = vmatprep.mubr.msk.f32.mxu0 %vm6433_vm1, %v6432_v3 }
0x1536   :  { %5851 = vmatprep.subr.mxu0 %v6432_v3 }
0x1537   :  { %5852 = vmatpush3.msra.mxu0 %v7060_v45  ;;  %v380_v28 = vpop.permute.xlu1 %379 }
0x1538   :  { %5853 = vmatprep.subr.mxu0 %v6432_v3 }
0x1539   :  { %5854 = vmatpush3.msra.mxu0 %v7067_v21 }
0x153a   :  { %5855 = vmatprep.subr.mxu0 %v6432_v3 }
0x153b   :  { %5856 = vmatpush3.msra.mxu0 %v7122_v38 }
0x153c   :  { %5871 = vmatprep.subr.mxu0 %v6432_v3 }
0x159e   :  { %v2204_v26 = vpop.permute.xlu0 %2203 }
0x159f   :  { %2207 = vst.msk [vmem:[#allocation5 + $0x40] sm:$0xff] %vm90_vm0, %v2204_v26  ;;  %5847 = vmatmul.mubr.msk.f32.vlgmr.msra.gmra.mxu1 %vm90_vm0, %v2204_v26 }
0x15a0   :  { %5861 = vmatpush3.msra.mxu1 %v7131_v50  ;;  %5868 = vmatprep.mubr.msk.f32.mxu1 %vm6433_vm1, %v6432_v3 }
0x15a1   :  { %5862 = vmatprep.subr.mxu1 %v6432_v3 }
0x15a2   :  { %v378_v25 = vpop.permute.xlu0 %377  ;;  %5863 = vmatpush3.msra.mxu1 %v7140_v10 }
0x15a3   :  { %v420_v39 = vsel %vm90_vm0, %v378_v25, %v380_v28  ;;  %5864 = vmatprep.subr.mxu1 %v6432_v3 }
0x15a4   :  { %452 = vst.msk [vmem:[#allocation3 + $0x38] sm:$0xff] %vm300_vm2, %v420_v39  ;;  %5865 = vmatpush3.msra.mxu1 %v7149_v20 }
0x15a5   :  { %5866 = vmatprep.subr.mxu1 %v6432_v3 }
0x15a6   :  { %5867 = vmatpush3.msra.mxu1 %v7156_v2 }
0x15a7   :  { %5882 = vmatprep.subr.mxu1 %v6432_v3 }
0x15ab   :  { %v2211_v46 = vld [vmem:[#allocation3 + $0x38] sm:$0xff] }
0x15f4   :  { %v2280_v48 = vpop.f32.mrf.mxu0 }
0x15f5   :  { %v2363_v7 = vadd.f32 %v2280_v48, %v6743_v44  ;;  %v2356_v12 = vadd.f32 %v2280_v48, %v2209_v54 }
0x15f6   :  { %v5837_v43 = vpop.f32.mrf.mxu0 }
0x15f7   :  { %2365 = vrot.lane.b32.xlu1 %v2363_v7, %s6434_s25  ;;  %v5331_v16 = vmul.f32 -1.442695, %v2356_v12 }
0x15f9   :  { %6280 = vpow2.f32 %v5331_v16  ;;  %v2423_v16 = vld [vmem:[#allocation2 + $0x48] sm:$0xff] }
0x1606   :  { %v6281_v58 = vpop.eup %6280 }
0x1607   :  { %v2360_v33 = vadd.f32 1.0, %v6281_v58 }
0x1609   :  { %6282 = vrcp.f32 %v2360_v33 }
0x1616   :  { %v6283_v0 = vpop.eup %6282 }
0x1617   :  { %v2375_v17 = vsub.f32 1.0, %v6283_v0  ;;  %v2381_v31 = vmul.f32 %v6283_v0, %v7265_v32 }
0x165f   :  { %v2352_v59 = vpop.f32.mrf.mxu1 }
0x1660   :  { %v2390_v40 = vadd.f32 %v2352_v59, %v6872_v27  ;;  %v2383_v42 = vadd.f32 %v2352_v59, %v2211_v46 }
0x1661   :  { %v5848_v61 = vpop.f32.mrf.mxu1 }
0x1662   :  { %2392 = vrot.lane.b32.xlu0 %v2390_v40, %s6434_s25  ;;  %v5332_v6 = vmul.f32 -1.442695, %v2383_v42 }
0x1664   :  { %6284 = vpow2.f32 %v5332_v6 }
0x1669   :  { %v2366_v14 = vpop.permute.xlu1 %2365 }
0x166a   :  { %v2368_v62 = vmul.f32 %v6283_v0, %v2366_v14 }
0x166c   :  { %2370 = vrot.lane.b32.xlu1 %v2368_v62, %s6434_s25 }
0x1671   :  { %v6285_v13 = vpop.eup %6284 }
0x1672   :  { %v2387_v23 = vadd.f32 1.0, %v6285_v13 }
0x1674   :  { %6286 = vrcp.f32 %v2387_v23 }
0x1681   :  { %v6287_v34 = vpop.eup %6286 }
0x1682   :  { %v2402_v26 = vsub.f32 1.0, %v6287_v34  ;;  %v2408_v25 = vmul.f32 %v6287_v34, %v7272_v37 }
0x16d4   :  { %v2393_v36 = vpop.permute.xlu0 %2392 }
0x16d5   :  { %v2395_v18 = vmul.f32 %v6287_v34, %v2393_v36 }
0x16d7   :  { %2397 = vrot.lane.b32.xlu0 %v2395_v18, %s6434_s25 }
0x16de   :  { %v2371_v41 = vpop.permute.xlu1 %2370 }
0x16df   :  { %v2373_v52 = vadd.f32 %v2371_v41, %v2209_v54 }
0x16e1   :  { %6288 = vtanh.f32 %v2373_v52 }
0x16ee   :  { %v6289_v56 = vpop.eup %6288 }
0x16ef   :  { %2377 = vrot.lane.b32.xlu1 %v6289_v56, %s6436_s0 }
0x1749   :  { %v2398_v4 = vpop.permute.xlu0 %2397 }
0x174a   :  { %v2400_v22 = vadd.f32 %v2398_v4, %v2211_v46 }
0x174c   :  { %6290 = vtanh.f32 %v2400_v22 }
0x1759   :  { %v6291_v30 = vpop.eup %6290 }
0x175a   :  { %2404 = vrot.lane.b32.xlu0 %v6291_v30, %s6436_s0 }
0x1761   :  { %v2378_v29 = vpop.permute.xlu1 %2377 }
0x1762   :  { %v2380_v35 = vmul.f32 %v2378_v29, %v2375_v17 }
0x1764   :  { %v7313_v9 = vadd.f32 %v2381_v31, %v2380_v35 }
0x1766   :  { %2411 = vrot.lane.b32.xlu1 %v7313_v9, %s6436_s0 }
0x176a   :  { %375 = vrot.lane.b32.xlu1 %v6806_v24, %s6435_s3 }
0x17cc   :  { %v2405_v28 = vpop.permute.xlu0 %2404 }
0x17cd   :  { %v2407_v39 = vmul.f32 %v2405_v28, %v2402_v26 }
0x17cf   :  { %v7320_v48 = vadd.f32 %v2408_v25, %v2407_v39 }
0x17d1   :  { %2417 = vrot.lane.b32.xlu0 %v7320_v48, %s6436_s0 }
0x17d5   :  { %373 = vrot.lane.b32.xlu0 %v6801_v19, %s6435_s3 }
0x17d8   :  { %v2412_v32 = vpop.permute.xlu1 %2411 }
0x17d9   :  { %2415 = vst.msk [vmem:[#allocation4 + $0x40] sm:$0xff] %vm90_vm0, %v2412_v32  ;;  %5858 = vmatmul.mubr.msk.f32.vlgmr.msra.gmra.mxu0 %vm90_vm0, %v2412_v32 }
0x17da   :  { %5872 = vmatpush3.msra.mxu0 %v7051_v49  ;;  %5879 = vmatprep.mubr.msk.f32.mxu0 %vm6433_vm1, %v6432_v3 }
0x17db   :  { %5873 = vmatprep.subr.mxu0 %v6432_v3 }
0x17dc   :  { %5874 = vmatpush3.msra.mxu0 %v7060_v45  ;;  %v376_v24 = vpop.permute.xlu1 %375 }
0x17dd   :  { %5875 = vmatprep.subr.mxu0 %v6432_v3 }
0x17de   :  { %5876 = vmatpush3.msra.mxu0 %v7067_v21 }
0x17df   :  { %5877 = vmatprep.subr.mxu0 %v6432_v3 }
0x17e0   :  { %5878 = vmatpush3.msra.mxu0 %v7122_v38 }
0x17e1   :  { %5893 = vmatprep.subr.mxu0 %v6432_v3 }
0x1843   :  { %v2418_v19 = vpop.permute.xlu0 %2417 }
0x1844   :  { %2421 = vst.msk [vmem:[#allocation5 + $0x38] sm:$0xff] %vm90_vm0, %v2418_v19  ;;  %5869 = vmatmul.mubr.msk.f32.vlgmr.msra.gmra.mxu1 %vm90_vm0, %v2418_v19 }
0x1845   :  { %5883 = vmatpush3.msra.mxu1 %v7131_v50  ;;  %5890 = vmatprep.mubr.msk.f32.mxu1 %vm6433_vm1, %v6432_v3 }
0x1846   :  { %5884 = vmatprep.subr.mxu1 %v6432_v3 }
0x1847   :  { %v374_v37 = vpop.permute.xlu0 %373  ;;  %5885 = vmatpush3.msra.mxu1 %v7140_v10 }
0x1848   :  { %v419_v7 = vsel %vm90_vm0, %v374_v37, %v376_v24  ;;  %5886 = vmatprep.subr.mxu1 %v6432_v3 }
0x1849   :  { %451 = vst.msk [vmem:[#allocation3 + $0x30] sm:$0xff] %vm300_vm2, %v419_v7  ;;  %5887 = vmatpush3.msra.mxu1 %v7149_v20 }
0x184a   :  { %5888 = vmatprep.subr.mxu1 %v6432_v3 }
0x184b   :  { %5889 = vmatpush3.msra.mxu1 %v7156_v2 }
0x184c   :  { %5904 = vmatprep.subr.mxu1 %v6432_v3 }
0x1850   :  { %v2425_v6 = vld [vmem:[#allocation3 + $0x30] sm:$0xff] }
0x1899   :  { %v2494_v43 = vpop.f32.mrf.mxu0 }
0x189a   :  { %v2577_v54 = vadd.f32 %v2494_v43, %v6743_v44  ;;  %v2570_v58 = vadd.f32 %v2494_v43, %v2423_v16  ;;  %v2637_v43 = vld [vmem:[#allocation2 + $0x50] sm:$0xff] }
0x189b   :  { %v5859_v12 = vpop.f32.mrf.mxu0 }
0x189c   :  { %2579 = vrot.lane.b32.xlu1 %v2577_v54, %s6434_s25  ;;  %v5335_v33 = vmul.f32 -1.442695, %v2570_v58 }
0x189e   :  { %6292 = vpow2.f32 %v5335_v33 }
0x18ab   :  { %v6293_v59 = vpop.eup %6292 }
0x18ac   :  { %v2574_v40 = vadd.f32 1.0, %v6293_v59 }
0x18ae   :  { %6294 = vrcp.f32 %v2574_v40 }
0x18bb   :  { %v6295_v62 = vpop.eup %6294 }
0x18bc   :  { %v2589_v31 = vsub.f32 1.0, %v6295_v62  ;;  %v2595_v26 = vmul.f32 %v6295_v62, %v7313_v9 }
0x1904   :  { %v2566_v61 = vpop.f32.mrf.mxu1 }
0x1905   :  { %v2604_v0 = vadd.f32 %v2566_v61, %v6872_v27  ;;  %v2597_v13 = vadd.f32 %v2566_v61, %v2425_v6 }
0x1906   :  { %v5870_v14 = vpop.f32.mrf.mxu1 }
0x1907   :  { %2606 = vrot.lane.b32.xlu0 %v2604_v0, %s6434_s25  ;;  %v5336_v23 = vmul.f32 -1.442695, %v2597_v13 }
0x1909   :  { %6296 = vpow2.f32 %v5336_v23 }
0x190e   :  { %v2580_v46 = vpop.permute.xlu1 %2579 }
0x190f   :  { %v2582_v42 = vmul.f32 %v6295_v62, %v2580_v46 }
0x1911   :  { %2584 = vrot.lane.b32.xlu1 %v2582_v42, %s6434_s25 }
0x1916   :  { %v6297_v34 = vpop.eup %6296 }
0x1917   :  { %v2601_v36 = vadd.f32 1.0, %v6297_v34 }
0x1919   :  { %6298 = vrcp.f32 %v2601_v36 }
0x1926   :  { %v6299_v18 = vpop.eup %6298 }
0x1927   :  { %v2616_v39 = vsub.f32 1.0, %v6299_v18  ;;  %v2622_v19 = vmul.f32 %v6299_v18, %v7320_v48 }
0x1979   :  { %v2607_v41 = vpop.permute.xlu0 %2606 }
0x197a   :  { %v2609_v52 = vmul.f32 %v6299_v18, %v2607_v41 }
0x197c   :  { %2611 = vrot.lane.b32.xlu0 %v2609_v52, %s6434_s25 }
0x1983   :  { %v2585_v56 = vpop.permute.xlu1 %2584 }
0x1984   :  { %v2587_v4 = vadd.f32 %v2585_v56, %v2423_v16 }
0x1986   :  { %6300 = vtanh.f32 %v2587_v4 }
0x1993   :  { %v6301_v22 = vpop.eup %6300 }
0x1994   :  { %2591 = vrot.lane.b32.xlu1 %v6301_v22, %s6436_s0 }
0x19ee   :  { %v2612_v30 = vpop.permute.xlu0 %2611 }
0x19ef   :  { %v2614_v17 = vadd.f32 %v2612_v30, %v2425_v6 }
0x19f1   :  { %6302 = vtanh.f32 %v2614_v17 }
0x19fe   :  { %v6303_v29 = vpop.eup %6302 }
0x19ff   :  { %2618 = vrot.lane.b32.xlu0 %v6303_v29, %s6436_s0 }
0x1a06   :  { %v2592_v35 = vpop.permute.xlu1 %2591 }
0x1a07   :  { %v2594_v28 = vmul.f32 %v2592_v35, %v2589_v31 }
0x1a09   :  { %v7361_v25 = vadd.f32 %v2595_v26, %v2594_v28 }
0x1a0b   :  { %2625 = vrot.lane.b32.xlu1 %v7361_v25, %s6436_s0 }
0x1a0f   :  { %371 = vrot.lane.b32.xlu1 %v6798_v15, %s6435_s3 }
0x1a71   :  { %v2619_v32 = vpop.permute.xlu0 %2618 }
0x1a72   :  { %v2621_v24 = vmul.f32 %v2619_v32, %v2616_v39 }
0x1a74   :  { %v7368_v37 = vadd.f32 %v2622_v19, %v2621_v24  ;;  %v7443_v24 = vld [vmem:[%s8060_s4 + $0x8] sm:$0xff] }
0x1a76   :  { %2631 = vrot.lane.b32.xlu0 %v7368_v37, %s6436_s0 }
0x1a7a   :  { %369 = vrot.lane.b32.xlu0 %v6793_v11, %s6435_s3 }
0x1a7d   :  { %v2626_v9 = vpop.permute.xlu1 %2625 }
0x1a7e   :  { %2629 = vst.msk [vmem:[#allocation4 + $0x48] sm:$0xff] %vm90_vm0, %v2626_v9  ;;  %5880 = vmatmul.mubr.msk.f32.vlgmr.msra.gmra.mxu0 %vm90_vm0, %v2626_v9 }
0x1a7f   :  { %5894 = vmatpush3.msra.mxu0 %v7051_v49  ;;  %5901 = vmatprep.mubr.msk.f32.mxu0 %vm6433_vm1, %v6432_v3 }
0x1a80   :  { %5895 = vmatprep.subr.mxu0 %v6432_v3 }
0x1a81   :  { %5896 = vmatpush3.msra.mxu0 %v7060_v45  ;;  %v372_v15 = vpop.permute.xlu1 %371 }
0x1a82   :  { %5897 = vmatprep.subr.mxu0 %v6432_v3 }
0x1a83   :  { %5898 = vmatpush3.msra.mxu0 %v7067_v21 }
0x1a84   :  { %5899 = vmatprep.subr.mxu0 %v6432_v3 }
0x1a85   :  { %5900 = vmatpush3.msra.mxu0 %v7122_v38 }
0x1a86   :  { %5915 = vmatprep.subr.mxu0 %v6432_v3 }
0x1ae8   :  { %v2632_v11 = vpop.permute.xlu0 %2631 }
0x1ae9   :  { %2635 = vst.msk [vmem:[#allocation5 + $0x30] sm:$0xff] %vm90_vm0, %v2632_v11  ;;  %5891 = vmatmul.mubr.msk.f32.vlgmr.msra.gmra.mxu1 %vm90_vm0, %v2632_v11 }
0x1aea   :  { %5905 = vmatpush3.msra.mxu1 %v7131_v50  ;;  %5912 = vmatprep.mubr.msk.f32.mxu1 %vm6433_vm1, %v6432_v3 }
0x1aeb   :  { %5906 = vmatprep.subr.mxu1 %v6432_v3 }
0x1aec   :  { %v370_v49 = vpop.permute.xlu0 %369  ;;  %5907 = vmatpush3.msra.mxu1 %v7140_v10 }
0x1aed   :  { %v418_v45 = vsel %vm90_vm0, %v370_v49, %v372_v15  ;;  %5908 = vmatprep.subr.mxu1 %v6432_v3 }
0x1aee   :  { %450 = vst.msk [vmem:[#allocation3 + $0x28] sm:$0xff] %vm300_vm2, %v418_v45  ;;  %5909 = vmatpush3.msra.mxu1 %v7149_v20 }
0x1aef   :  { %5910 = vmatprep.subr.mxu1 %v6432_v3 }
0x1af0   :  { %5911 = vmatpush3.msra.mxu1 %v7156_v2 }
0x1af1   :  { %5926 = vmatprep.subr.mxu1 %v6432_v3 }
0x1af5   :  { %v2639_v62 = vld [vmem:[#allocation3 + $0x28] sm:$0xff] }
0x1b3e   :  { %v2708_v21 = vpop.f32.mrf.mxu0 }
0x1b3f   :  { %v2791_v48 = vadd.f32 %v2708_v21, %v6743_v44  ;;  %v2784_v54 = vadd.f32 %v2708_v21, %v2637_v43 }
0x1b40   :  { %v5881_v7 = vpop.f32.mrf.mxu0 }
0x1b41   :  { %2793 = vrot.lane.b32.xlu1 %v2791_v48, %s6434_s25  ;;  %v5339_v12 = vmul.f32 -1.442695, %v2784_v54 }
0x1b43   :  { %6304 = vpow2.f32 %v5339_v12 }
0x1b50   :  { %v6305_v16 = vpop.eup %6304 }
0x1b51   :  { %v2788_v58 = vadd.f32 1.0, %v6305_v16 }
0x1b53   :  { %6306 = vrcp.f32 %v2788_v58 }
0x1b60   :  { %v6307_v61 = vpop.eup %6306 }
0x1b61   :  { %v2803_v30 = vsub.f32 1.0, %v6307_v61  ;;  %v2809_v29 = vmul.f32 %v6307_v61, %v7361_v25 }
0x1ba9   :  { %v2780_v33 = vpop.f32.mrf.mxu1 }
0x1baa   :  { %v2818_v59 = vadd.f32 %v2780_v33, %v6872_v27  ;;  %v2811_v46 = vadd.f32 %v2780_v33, %v2639_v62 }
0x1bab   :  { %v5892_v40 = vpop.f32.mrf.mxu1 }
0x1bac   :  { %2820 = vrot.lane.b32.xlu0 %v2818_v59, %s6434_s25  ;;  %v5340_v42 = vmul.f32 -1.442695, %v2811_v46 }
0x1bae   :  { %6308 = vpow2.f32 %v5340_v42 }
0x1bb3   :  { %v2794_v0 = vpop.permute.xlu1 %2793 }
0x1bb4   :  { %v2796_v14 = vmul.f32 %v6307_v61, %v2794_v0 }
0x1bb6   :  { %2798 = vrot.lane.b32.xlu1 %v2796_v14, %s6434_s25 }
0x1bbb   :  { %v6309_v6 = vpop.eup %6308 }
0x1bbc   :  { %v2815_v13 = vadd.f32 1.0, %v6309_v6 }
0x1bbe   :  { %6310 = vrcp.f32 %v2815_v13 }
0x1bcb   :  { %v6311_v23 = vpop.eup %6310 }
0x1bcc   :  { %v2830_v26 = vsub.f32 1.0, %v6311_v23  ;;  %v2836_v39 = vmul.f32 %v6311_v23, %v7368_v37 }
0x1c1e   :  { %v2821_v34 = vpop.permute.xlu0 %2820 }
0x1c1f   :  { %v2823_v36 = vmul.f32 %v6311_v23, %v2821_v34 }
0x1c21   :  { %2825 = vrot.lane.b32.xlu0 %v2823_v36, %s6434_s25 }
0x1c28   :  { %v2799_v18 = vpop.permute.xlu1 %2798 }
0x1c29   :  { %v2801_v41 = vadd.f32 %v2799_v18, %v2637_v43 }
0x1c2b   :  { %6312 = vtanh.f32 %v2801_v41 }
0x1c38   :  { %v6313_v52 = vpop.eup %6312 }
0x1c39   :  { %2805 = vrot.lane.b32.xlu1 %v6313_v52, %s6436_s0 }
0x1c93   :  { %v2826_v56 = vpop.permute.xlu0 %2825 }
0x1c94   :  { %v2828_v4 = vadd.f32 %v2826_v56, %v2639_v62 }
0x1c96   :  { %6314 = vtanh.f32 %v2828_v4 }
0x1ca3   :  { %v6315_v22 = vpop.eup %6314 }
0x1ca4   :  { %2832 = vrot.lane.b32.xlu0 %v6315_v22, %s6436_s0 }
0x1cab   :  { %v2806_v17 = vpop.permute.xlu1 %2805 }
0x1cac   :  { %v2808_v31 = vmul.f32 %v2806_v17, %v2803_v30 }
0x1cae   :  { %v7409_v35 = vadd.f32 %v2809_v29, %v2808_v31 }
0x1cb0   :  { %2839 = vrot.lane.b32.xlu1 %v7409_v35, %s6436_s0 }
0x1cb4   :  { %367 = vrot.lane.b32.xlu1 %v6790_v8, %s6435_s3  ;;  %v7427_v8 = vld [vmem:[%s8060_s4 + $0x18] sm:$0xff] }
0x1d16   :  { %v2833_v28 = vpop.permute.xlu0 %2832 }
0x1d17   :  { %v2835_v32 = vmul.f32 %v2833_v28, %v2830_v26 }
0x1d19   :  { %v7416_v19 = vadd.f32 %v2836_v39, %v2835_v32  ;;  %v7516_v39 = vld [vmem:[%s8061_s5 + $0x10] sm:$0xff] }
0x1d1b   :  { %2845 = vrot.lane.b32.xlu0 %v7416_v19, %s6436_s0 }
0x1d1f   :  { %365 = vrot.lane.b32.xlu0 %v6785_v5, %s6435_s3  ;;  %v7436_v5 = vld [vmem:[%s8060_s4 + $0x10] sm:$0xff] }
0x1d22   :  { %v2840_v25 = vpop.permute.xlu1 %2839 }
0x1d23   :  { %2843 = vst.msk [vmem:[#allocation4 + $0x50] sm:$0xff] %vm90_vm0, %v2840_v25  ;;  %5902 = vmatmul.mubr.msk.f32.vlgmr.msra.gmra.mxu0 %vm90_vm0, %v2840_v25  ;;  %v7532_v25 = vld [vmem:[%s8061_s5] sm:$0xff] }
0x1d24   :  { %5916 = vmatpush3.msra.mxu0 %v7427_v8  ;;  %5923 = vmatprep.mubr.msk.f32.mxu0 %vm6433_vm1, %v6432_v3 }
0x1d25   :  { %5917 = vmatprep.subr.mxu0 %v6432_v3 }
0x1d26   :  { %5918 = vmatpush3.msra.mxu0 %v7436_v5  ;;  %v368_v9 = vpop.permute.xlu1 %367 }
0x1d27   :  { %5919 = vmatprep.subr.mxu0 %v6432_v3 }
0x1d28   :  { %5920 = vmatpush3.msra.mxu0 %v7443_v24 }
0x1d29   :  { %5921 = vmatprep.subr.mxu0 %v6432_v3 }
0x1d2a   :  { %5922 = vmatpush3.msra.mxu0 %v7122_v38 }
0x1d2b   :  { %5937 = vmatprep.subr.mxu0 %v6432_v3 }
0x1d8d   :  { %v2846_v37 = vpop.permute.xlu0 %2845 }
0x1d8e   :  { %2849 = vst.msk [vmem:[#allocation5 + $0x28] sm:$0xff] %vm90_vm0, %v2846_v37  ;;  %5913 = vmatmul.mubr.msk.f32.vlgmr.msra.gmra.mxu1 %vm90_vm0, %v2846_v37 }
0x1d8f   :  { %5927 = vmatpush3.msra.mxu1 %v7131_v50  ;;  %5934 = vmatprep.mubr.msk.f32.mxu1 %vm6433_vm1, %v6432_v3 }
0x1d90   :  { %5928 = vmatprep.subr.mxu1 %v6432_v3 }
0x1d91   :  { %v366_v11 = vpop.permute.xlu0 %365  ;;  %5929 = vmatpush3.msra.mxu1 %v7140_v10  ;;  %v2851_v10 = vld [vmem:[#allocation2 + $0x58] sm:$0xff] }
0x1d92   :  { %v417_v38 = vsel %vm90_vm0, %v366_v11, %v368_v9  ;;  %5930 = vmatprep.subr.mxu1 %v6432_v3 }
0x1d93   :  { %449 = vst.msk [vmem:[#allocation3 + $0x20] sm:$0xff] %vm300_vm2, %v417_v38  ;;  %5931 = vmatpush3.msra.mxu1 %v7149_v20  ;;  %v3065_v38 = vld [vmem:[#allocation2 + $0x60] sm:$0xff] }
0x1d94   :  { %5932 = vmatprep.subr.mxu1 %v6432_v3 }
0x1d95   :  { %5933 = vmatpush3.msra.mxu1 %v7156_v2 }
0x1d96   :  { %5948 = vmatprep.subr.mxu1 %v6432_v3 }
0x1d9a   :  { %v2853_v58 = vld [vmem:[#allocation3 + $0x20] sm:$0xff] }
0x1de3   :  { %v2922_v50 = vpop.f32.mrf.mxu0 }
0x1de4   :  { %v3005_v15 = vadd.f32 %v2922_v50, %v6743_v44  ;;  %v2998_v45 = vadd.f32 %v2922_v50, %v2851_v10 }
0x1de5   :  { %v5903_v49 = vpop.f32.mrf.mxu0 }
0x1de6   :  { %3007 = vrot.lane.b32.xlu1 %v3005_v15, %s6434_s25  ;;  %v5343_v21 = vmul.f32 -1.442695, %v2998_v45 }
0x1de8   :  { %6316 = vpow2.f32 %v5343_v21 }
0x1df5   :  { %v6317_v48 = vpop.eup %6316 }
0x1df6   :  { %v3002_v7 = vadd.f32 1.0, %v6317_v48 }
0x1df8   :  { %6318 = vrcp.f32 %v3002_v7 }
0x1e05   :  { %v6319_v2 = vpop.eup %6318 }
0x1e06   :  { %v3017_v36 = vsub.f32 1.0, %v6319_v2  ;;  %v3023_v41 = vmul.f32 %v6319_v2, %v7409_v35  ;;  %v7507_v35 = vld [vmem:[%s8061_s5 + $0x18] sm:$0xff] }
0x1e4e   :  { %v2994_v20 = vpop.f32.mrf.mxu1 }
0x1e4f   :  { %v3032_v43 = vadd.f32 %v2994_v20, %v6872_v27  ;;  %v3025_v33 = vadd.f32 %v2994_v20, %v2853_v58 }
0x1e50   :  { %v5914_v54 = vpop.f32.mrf.mxu1 }
0x1e51   :  { %3034 = vrot.lane.b32.xlu0 %v3032_v43, %s6434_s25  ;;  %v5344_v59 = vmul.f32 -1.442695, %v3025_v33 }
0x1e53   :  { %6320 = vpow2.f32 %v5344_v59 }
0x1e58   :  { %v3008_v12 = vpop.permute.xlu1 %3007 }
0x1e59   :  { %v3010_v16 = vmul.f32 %v6319_v2, %v3008_v12 }
0x1e5b   :  { %3012 = vrot.lane.b32.xlu1 %v3010_v16, %s6434_s25 }
0x1e60   :  { %v6321_v40 = vpop.eup %6320 }
0x1e61   :  { %v3029_v61 = vadd.f32 1.0, %v6321_v40 }
0x1e63   :  { %6322 = vrcp.f32 %v3029_v61 }
0x1e70   :  { %v6323_v0 = vpop.eup %6322 }
0x1e71   :  { %v3044_v4 = vsub.f32 1.0, %v6323_v0  ;;  %v3050_v30 = vmul.f32 %v6323_v0, %v7416_v19  ;;  %v7525_v19 = vld [vmem:[%s8061_s5 + $0x8] sm:$0xff]  ;;  %s6437_s5 = smov 8  }
0x1ec3   :  { %v3035_v14 = vpop.permute.xlu0 %3034 }
0x1ec4   :  { %v3037_v62 = vmul.f32 %v6323_v0, %v3035_v14 }
0x1ec6   :  { %3039 = vrot.lane.b32.xlu0 %v3037_v62, %s6434_s25 }
0x1ecd   :  { %v3013_v46 = vpop.permute.xlu1 %3012 }
0x1ece   :  { %v3015_v42 = vadd.f32 %v3013_v46, %v2851_v10 }
0x1ed0   :  { %6324 = vtanh.f32 %v3015_v42 }
0x1edd   :  { %v6325_v6 = vpop.eup %6324 }
0x1ede   :  { %3019 = vrot.lane.b32.xlu1 %v6325_v6, %s6436_s0 }
0x1f38   :  { %v3040_v13 = vpop.permute.xlu0 %3039 }
0x1f39   :  { %v3042_v23 = vadd.f32 %v3040_v13, %v2853_v58 }
0x1f3b   :  { %6326 = vtanh.f32 %v3042_v23 }
0x1f48   :  { %v6327_v34 = vpop.eup %6326 }
0x1f49   :  { %3046 = vrot.lane.b32.xlu0 %v6327_v34, %s6436_s0 }
0x1f50   :  { %v3020_v18 = vpop.permute.xlu1 %3019 }
0x1f51   :  { %v3022_v52 = vmul.f32 %v3020_v18, %v3017_v36 }
0x1f53   :  { %v7472_v56 = vadd.f32 %v3023_v41, %v3022_v52 }
0x1f55   :  { %3053 = vrot.lane.b32.xlu1 %v7472_v56, %s6436_s0 }
0x1f59   :  { %363 = vrot.lane.b32.xlu1 %v6782_v1, %s6435_s3 }
0x1fbb   :  { %v3047_v22 = vpop.permute.xlu0 %3046 }
0x1fbc   :  { %v3049_v17 = vmul.f32 %v3047_v22, %v3044_v4 }
0x1fbe   :  { %v7479_v29 = vadd.f32 %v3050_v30, %v3049_v17 }
0x1fc0   :  { %3059 = vrot.lane.b32.xlu0 %v7479_v29, %s6436_s0 }
0x1fc4   :  { %361 = vrot.lane.b32.xlu0 %v6777_v63, %s6435_s3  ;;  %v7498_v63 = vld [vmem:[%s8060_s4] sm:$0xff] }
0x1fc7   :  { %v3054_v31 = vpop.permute.xlu1 %3053 }
0x1fc8   :  { %3057 = vst.msk [vmem:[#allocation4 + $0x58] sm:$0xff] %vm90_vm0, %v3054_v31  ;;  %5924 = vmatmul.mubr.msk.f32.vlgmr.msra.gmra.mxu0 %vm90_vm0, %v3054_v31 }
0x1fc9   :  { %5938 = vmatpush3.msra.mxu0 %v7427_v8  ;;  %5945 = vmatprep.mubr.msk.f32.mxu0 %vm6433_vm1, %v6432_v3 }
0x1fca   :  { %5939 = vmatprep.subr.mxu0 %v6432_v3 }
0x1fcb   :  { %5940 = vmatpush3.msra.mxu0 %v7436_v5  ;;  %v364_v26 = vpop.permute.xlu1 %363 }
0x1fcc   :  { %5941 = vmatprep.subr.mxu0 %v6432_v3 }
0x1fcd   :  { %5942 = vmatpush3.msra.mxu0 %v7443_v24 }
0x1fce   :  { %5943 = vmatprep.subr.mxu0 %v6432_v3 }
0x1fcf   :  { %5944 = vmatpush3.msra.mxu0 %v7498_v63 }
0x1fd0   :  { %5959 = vmatprep.subr.mxu0 %v6432_v3 }
0x2032   :  { %v3060_v1 = vpop.permute.xlu0 %3059 }
0x2033   :  { %3063 = vst.msk [vmem:[#allocation5 + $0x20] sm:$0xff] %vm90_vm0, %v3060_v1  ;;  %5935 = vmatmul.mubr.msk.f32.vlgmr.msra.gmra.mxu1 %vm90_vm0, %v3060_v1 }
0x2034   :  { %5949 = vmatpush3.msra.mxu1 %v7507_v35  ;;  %5956 = vmatprep.mubr.msk.f32.mxu1 %vm6433_vm1, %v6432_v3 }
0x2035   :  { %5950 = vmatprep.subr.mxu1 %v6432_v3 }
0x2036   :  { %v362_v28 = vpop.permute.xlu0 %361  ;;  %5951 = vmatpush3.msra.mxu1 %v7516_v39 }
0x2037   :  { %v416_v32 = vsel %vm90_vm0, %v362_v28, %v364_v26  ;;  %5952 = vmatprep.subr.mxu1 %v6432_v3  ;;  %v3279_v26 = vld [vmem:[#allocation2 + $0x68] sm:$0xff] }
0x2038   :  { %448 = vst.msk [vmem:[#allocation3 + $0x18] sm:$0xff] %vm300_vm2, %v416_v32  ;;  %5953 = vmatpush3.msra.mxu1 %v7525_v19 }
0x2039   :  { %5954 = vmatprep.subr.mxu1 %v6432_v3 }
0x203a   :  { %5955 = vmatpush3.msra.mxu1 %v7532_v25 }
0x203b   :  { %5970 = vmatprep.subr.mxu1 %v6432_v3 }
0x203f   :  { %v3067_v54 = vld [vmem:[#allocation3 + $0x18] sm:$0xff] }
0x2088   :  { %v3136_v37 = vpop.f32.mrf.mxu0 }
0x2089   :  { %v3219_v9 = vadd.f32 %v3136_v37, %v6743_v44  ;;  %v3212_v50 = vadd.f32 %v3136_v37, %v3065_v38 }
0x208a   :  { %v5925_v11 = vpop.f32.mrf.mxu0 }
0x208b   :  { %3221 = vrot.lane.b32.xlu1 %v3219_v9, %s6434_s25  ;;  %v5347_v15 = vmul.f32 -1.442695, %v3212_v50 }
0x208d   :  { %6328 = vpow2.f32 %v5347_v15 }
0x209a   :  { %v6329_v49 = vpop.eup %6328 }
0x209b   :  { %v3216_v10 = vadd.f32 1.0, %v6329_v49 }
0x209d   :  { %6330 = vrcp.f32 %v3216_v10 }
0x20aa   :  { %v6331_v7 = vpop.eup %6330 }
0x20ab   :  { %v3231_v6 = vsub.f32 1.0, %v6331_v7  ;;  %v3237_v23 = vmul.f32 %v6331_v7, %v7472_v56 }
0x20f3   :  { %v3208_v45 = vpop.f32.mrf.mxu1 }
0x20f4   :  { %v3246_v21 = vadd.f32 %v3208_v45, %v6872_v27  ;;  %v3239_v2 = vadd.f32 %v3208_v45, %v3067_v54 }
0x20f5   :  { %v5936_v48 = vpop.f32.mrf.mxu1 }
0x20f6   :  { %3248 = vrot.lane.b32.xlu0 %v3246_v21, %s6434_s25  ;;  %v5348_v12 = vmul.f32 -1.442695, %v3239_v2 }
0x20f8   :  { %6332 = vpow2.f32 %v5348_v12 }
0x20fd   :  { %v3222_v20 = vpop.permute.xlu1 %3221 }
0x20fe   :  { %v3224_v43 = vmul.f32 %v6331_v7, %v3222_v20 }
0x2100   :  { %3226 = vrot.lane.b32.xlu1 %v3224_v43, %s6434_s25 }
0x2105   :  { %v6333_v16 = vpop.eup %6332 }
0x2106   :  { %v3243_v58 = vadd.f32 1.0, %v6333_v16 }
0x2108   :  { %6334 = vrcp.f32 %v3243_v58 }
0x2115   :  { %v6335_v33 = vpop.eup %6334 }
0x2116   :  { %v3258_v18 = vsub.f32 1.0, %v6335_v33  ;;  %v3264_v52 = vmul.f32 %v6335_v33, %v7479_v29 }
0x2168   :  { %v3249_v59 = vpop.permute.xlu0 %3248 }
0x2169   :  { %v3251_v40 = vmul.f32 %v6335_v33, %v3249_v59 }
0x216b   :  { %3253 = vrot.lane.b32.xlu0 %v3251_v40, %s6434_s25 }
0x2172   :  { %v3227_v61 = vpop.permute.xlu1 %3226 }
0x2173   :  { %v3229_v0 = vadd.f32 %v3227_v61, %v3065_v38 }
0x2175   :  { %6336 = vtanh.f32 %v3229_v0 }
0x2182   :  { %v6337_v14 = vpop.eup %6336 }
0x2183   :  { %3233 = vrot.lane.b32.xlu1 %v6337_v14, %s6436_s0 }
0x21dd   :  { %v3254_v62 = vpop.permute.xlu0 %3253 }
0x21de   :  { %v3256_v46 = vadd.f32 %v3254_v62, %v3067_v54 }
0x21e0   :  { %6338 = vtanh.f32 %v3256_v46 }
0x21ed   :  { %v6339_v42 = vpop.eup %6338 }
0x21ee   :  { %3260 = vrot.lane.b32.xlu0 %v6339_v42, %s6436_s0 }
0x21f5   :  { %v3234_v13 = vpop.permute.xlu1 %3233 }
0x21f6   :  { %v3236_v34 = vmul.f32 %v3234_v13, %v3231_v6 }
0x21f8   :  { %v7545_v36 = vadd.f32 %v3237_v23, %v3236_v34 }
0x21fa   :  { %3267 = vrot.lane.b32.xlu1 %v7545_v36, %s6436_s0 }
0x21fe   :  { %359 = vrot.lane.b32.xlu1 %v6774_v60, %s6435_s3 }
0x2260   :  { %v3261_v41 = vpop.permute.xlu0 %3260 }
0x2261   :  { %v3263_v4 = vmul.f32 %v3261_v41, %v3258_v18  ;;  %v3493_v18 = vld [vmem:[#allocation2 + $0x70] sm:$0xff] }
0x2263   :  { %v7552_v22 = vadd.f32 %v3264_v52, %v3263_v4 }
0x2265   :  { %3273 = vrot.lane.b32.xlu0 %v7552_v22, %s6436_s0 }
0x2269   :  { %357 = vrot.lane.b32.xlu0 %v6767_v57, %s6435_s3 }
0x226c   :  { %v3268_v56 = vpop.permute.xlu1 %3267 }
0x226d   :  { %3271 = vst.msk [vmem:[#allocation4 + $0x60] sm:$0xff] %vm90_vm0, %v3268_v56  ;;  %5946 = vmatmul.mubr.msk.f32.vlgmr.msra.gmra.mxu0 %vm90_vm0, %v3268_v56 }
0x226e   :  { %5960 = vmatpush3.msra.mxu0 %v7427_v8  ;;  %5967 = vmatprep.mubr.msk.f32.mxu0 %vm6433_vm1, %v6432_v3 }
0x226f   :  { %5961 = vmatprep.subr.mxu0 %v6432_v3 }
0x2270   :  { %5962 = vmatpush3.msra.mxu0 %v7436_v5  ;;  %v360_v60 = vpop.permute.xlu1 %359 }
0x2271   :  { %5963 = vmatprep.subr.mxu0 %v6432_v3 }
0x2272   :  { %5964 = vmatpush3.msra.mxu0 %v7443_v24 }
0x2273   :  { %5965 = vmatprep.subr.mxu0 %v6432_v3 }
0x2274   :  { %5966 = vmatpush3.msra.mxu0 %v7498_v63 }
0x2275   :  { %5981 = vmatprep.subr.mxu0 %v6432_v3 }
0x22d7   :  { %v3274_v57 = vpop.permute.xlu0 %3273 }
0x22d8   :  { %3277 = vst.msk [vmem:[#allocation5 + $0x18] sm:$0xff] %vm90_vm0, %v3274_v57  ;;  %5957 = vmatmul.mubr.msk.f32.vlgmr.msra.gmra.mxu1 %vm90_vm0, %v3274_v57 }
0x22d9   :  { %5971 = vmatpush3.msra.mxu1 %v7507_v35  ;;  %5978 = vmatprep.mubr.msk.f32.mxu1 %vm6433_vm1, %v6432_v3 }
0x22da   :  { %5972 = vmatprep.subr.mxu1 %v6432_v3 }
0x22db   :  { %v358_v30 = vpop.permute.xlu0 %357  ;;  %5973 = vmatpush3.msra.mxu1 %v7516_v39 }
0x22dc   :  { %v415_v17 = vsel %vm90_vm0, %v358_v30, %v360_v60  ;;  %5974 = vmatprep.subr.mxu1 %v6432_v3 }
0x22dd   :  { %447 = vst.msk [vmem:[#allocation3 + $0x10] sm:$0xff] %vm300_vm2, %v415_v17  ;;  %5975 = vmatpush3.msra.mxu1 %v7525_v19 }
0x22de   :  { %5976 = vmatprep.subr.mxu1 %v6432_v3 }
0x22df   :  { %5977 = vmatpush3.msra.mxu1 %v7532_v25 }
0x22e0   :  { %5992 = vmatprep.subr.mxu1 %v6432_v3 }
0x22e4   :  { %v3281_v45 = vld [vmem:[#allocation3 + $0x10] sm:$0xff] }
0x232d   :  { %v3350_v29 = vpop.f32.mrf.mxu0 }
0x232e   :  { %v3433_v31 = vadd.f32 %v3350_v29, %v6743_v44  ;;  %v3426_v28 = vadd.f32 %v3350_v29, %v3279_v26 }
0x232f   :  { %v5947_v1 = vpop.f32.mrf.mxu0 }
0x2330   :  { %3435 = vrot.lane.b32.xlu1 %v3433_v31, %s6434_s25  ;;  %v5351_v32 = vmul.f32 -1.442695, %v3426_v28 }
0x2332   :  { %6340 = vpow2.f32 %v5351_v32 }
0x233f   :  { %v6341_v37 = vpop.eup %6340 }
0x2340   :  { %v3430_v9 = vadd.f32 1.0, %v6341_v37 }
0x2342   :  { %6342 = vrcp.f32 %v3430_v9 }
0x234f   :  { %v6343_v15 = vpop.eup %6342 }
0x2350   :  { %v3445_v61 = vsub.f32 1.0, %v6343_v15  ;;  %v3451_v14 = vmul.f32 %v6343_v15, %v7545_v36 }
0x2398   :  { %v3422_v11 = vpop.f32.mrf.mxu1 }
0x2399   :  { %v3460_v38 = vadd.f32 %v3422_v11, %v6872_v27  ;;  %v3453_v21 = vadd.f32 %v3422_v11, %v3281_v45 }
0x239a   :  { %v5958_v50 = vpop.f32.mrf.mxu1 }
0x239b   :  { %3462 = vrot.lane.b32.xlu0 %v3460_v38, %s6434_s25  ;;  %v5352_v48 = vmul.f32 -1.442695, %v3453_v21 }
0x239d   :  { %6344 = vpow2.f32 %v5352_v48 }
0x23a2   :  { %v3436_v49 = vpop.permute.xlu1 %3435 }
0x23a3   :  { %v3438_v10 = vmul.f32 %v6343_v15, %v3436_v49 }
0x23a5   :  { %3440 = vrot.lane.b32.xlu1 %v3438_v10, %s6434_s25 }
0x23aa   :  { %v6345_v7 = vpop.eup %6344 }
0x23ab   :  { %v3457_v20 = vadd.f32 1.0, %v6345_v7 }
0x23ad   :  { %6346 = vrcp.f32 %v3457_v20 }
0x23ba   :  { %v6347_v43 = vpop.eup %6346 }
0x23bb   :  { %v3472_v42 = vsub.f32 1.0, %v6347_v43  ;;  %v3478_v13 = vmul.f32 %v6347_v43, %v7552_v22 }
0x240d   :  { %v3463_v54 = vpop.permute.xlu0 %3462 }
0x240e   :  { %v3465_v2 = vmul.f32 %v6347_v43, %v3463_v54 }
0x2410   :  { %3467 = vrot.lane.b32.xlu0 %v3465_v2, %s6434_s25 }
0x2417   :  { %v3441_v12 = vpop.permute.xlu1 %3440 }
0x2418   :  { %v3443_v16 = vadd.f32 %v3441_v12, %v3279_v26 }
0x241a   :  { %6348 = vtanh.f32 %v3443_v16 }
0x2427   :  { %v6349_v58 = vpop.eup %6348 }
0x2428   :  { %3447 = vrot.lane.b32.xlu1 %v6349_v58, %s6436_s0 }
0x2482   :  { %v3468_v33 = vpop.permute.xlu0 %3467 }
0x2483   :  { %v3470_v59 = vadd.f32 %v3468_v33, %v3281_v45 }
0x2485   :  { %6350 = vtanh.f32 %v3470_v59 }
0x2492   :  { %v6351_v40 = vpop.eup %6350 }
0x2493   :  { %3474 = vrot.lane.b32.xlu0 %v6351_v40, %s6436_s0 }
0x249a   :  { %v3448_v0 = vpop.permute.xlu1 %3447 }
0x249b   :  { %v3450_v62 = vmul.f32 %v3448_v0, %v3445_v61  ;;  %v3707_v61 = vld [vmem:[#allocation2 + $0x78] sm:$0xff] }
0x249d   :  { %v7593_v46 = vadd.f32 %v3451_v14, %v3450_v62 }
0x249f   :  { %3481 = vrot.lane.b32.xlu1 %v7593_v46, %s6436_s0 }
0x24a3   :  { %355 = vrot.lane.b32.xlu1 %v6764_v55, %s6435_s3 }
0x2505   :  { %v3475_v6 = vpop.permute.xlu0 %3474 }
0x2506   :  { %v3477_v23 = vmul.f32 %v3475_v6, %v3472_v42 }
0x2508   :  { %v7600_v34 = vadd.f32 %v3478_v13, %v3477_v23 }
0x250a   :  { %3487 = vrot.lane.b32.xlu0 %v7600_v34, %s6436_s0 }
0x250e   :  { %353 = vrot.lane.b32.xlu0 %v6759_v53, %s6435_s3 }
0x2511   :  { %v3482_v36 = vpop.permute.xlu1 %3481 }
0x2512   :  { %3485 = vst.msk [vmem:[#allocation4 + $0x68] sm:$0xff] %vm90_vm0, %v3482_v36  ;;  %5968 = vmatmul.mubr.msk.f32.vlgmr.msra.gmra.mxu0 %vm90_vm0, %v3482_v36 }
0x2513   :  { %5982 = vmatpush3.msra.mxu0 %v7427_v8  ;;  %5989 = vmatprep.mubr.msk.f32.mxu0 %vm6433_vm1, %v6432_v3 }
0x2514   :  { %5983 = vmatprep.subr.mxu0 %v6432_v3 }
0x2515   :  { %5984 = vmatpush3.msra.mxu0 %v7436_v5  ;;  %v356_v55 = vpop.permute.xlu1 %355 }
0x2516   :  { %5985 = vmatprep.subr.mxu0 %v6432_v3 }
0x2517   :  { %5986 = vmatpush3.msra.mxu0 %v7443_v24 }
0x2518   :  { %5987 = vmatprep.subr.mxu0 %v6432_v3 }
0x2519   :  { %5988 = vmatpush3.msra.mxu0 %v7498_v63 }
0x257c   :  { %v3488_v53 = vpop.permute.xlu0 %3487 }
0x257d   :  { %3491 = vst.msk [vmem:[#allocation5 + $0x10] sm:$0xff] %vm90_vm0, %v3488_v53  ;;  %5979 = vmatmul.mubr.msk.f32.vlgmr.msra.gmra.mxu1 %vm90_vm0, %v3488_v53 }
0x257e   :  { %5993 = vmatpush3.msra.mxu1 %v7507_v35  ;;  %6000 = vmatprep.mubr.msk.f32.mxu1 %vm6433_vm1, %v6432_v3 }
0x257f   :  { %5994 = vmatprep.subr.mxu1 %v6432_v3 }
0x2580   :  { %v354_v8 = vpop.permute.xlu0 %353  ;;  %5995 = vmatpush3.msra.mxu1 %v7516_v39 }
0x2581   :  { %v414_v5 = vsel %vm90_vm0, %v354_v8, %v356_v55  ;;  %5996 = vmatprep.subr.mxu1 %v6432_v3 }
0x2582   :  { %446 = vst.msk [vmem:[#allocation3 + $0x8] sm:$0xff] %vm300_vm2, %v414_v5  ;;  %5997 = vmatpush3.msra.mxu1 %v7525_v19 }
0x2583   :  { %5998 = vmatprep.subr.mxu1 %v6432_v3 }
0x2584   :  { %5999 = vmatpush3.msra.mxu1 %v7532_v25 }
0x2589   :  { %v3495_v30 = vld [vmem:[#allocation3 + $0x8] sm:$0xff] }
0x25d2   :  { %v3564_v24 = vpop.f32.mrf.mxu0 }
0x25d3   :  { %v3647_v63 = vadd.f32 %v3564_v24, %v6743_v44  ;;  %v3640_v39 = vadd.f32 %v3564_v24, %v3493_v18 }
0x25d4   :  { %v5969_v35 = vpop.f32.mrf.mxu0 }
0x25d5   :  { %3649 = vrot.lane.b32.xlu1 %v3647_v63, %s6434_s25  ;;  %v5355_v41 = vmul.f32 -1.442695, %v3640_v39 }
0x25d7   :  { %6352 = vpow2.f32 %v5355_v41 }
0x25e4   :  { %v6353_v52 = vpop.eup %6352 }
0x25e5   :  { %v3644_v4 = vadd.f32 1.0, %v6353_v52 }
0x25e7   :  { %6354 = vrcp.f32 %v3644_v4 }
0x25f4   :  { %v6355_v25 = vpop.eup %6354 }
0x25f5   :  { %v3659_v49 = vsub.f32 1.0, %v6355_v25  ;;  %v3665_v45 = vmul.f32 %v6355_v25, %v7593_v46 }
0x263d   :  { %v3636_v22 = vpop.f32.mrf.mxu1 }
0x263e   :  { %v3674_v19 = vadd.f32 %v3636_v22, %v6872_v27  ;;  %v3667_v17 = vadd.f32 %v3636_v22, %v3495_v30 }
0x263f   :  { %v5980_v56 = vpop.f32.mrf.mxu1 }
0x2640   :  { %3676 = vrot.lane.b32.xlu0 %v3674_v19, %s6434_s25  ;;  %v5356_v29 = vmul.f32 -1.442695, %v3667_v17 }
0x2642   :  { %6356 = vpow2.f32 %v5356_v29 }
0x2647   :  { %v3650_v57 = vpop.permute.xlu1 %3649 }
0x2648   :  { %v3652_v60 = vmul.f32 %v6355_v25, %v3650_v57 }
0x264a   :  { %3654 = vrot.lane.b32.xlu1 %v3652_v60, %s6434_s25 }
0x264f   :  { %v6357_v31 = vpop.eup %6356 }
0x2650   :  { %v3671_v1 = vadd.f32 1.0, %v6357_v31 }
0x2652   :  { %6358 = vrcp.f32 %v3671_v1 }
0x265f   :  { %v6359_v26 = vpop.eup %6358 }
0x2660   :  { %v3686_v7 = vsub.f32 1.0, %v6359_v26  ;;  %v3692_v43 = vmul.f32 %v6359_v26, %v7600_v34 }
0x26b2   :  { %v3677_v28 = vpop.permute.xlu0 %3676 }
0x26b3   :  { %v3679_v32 = vmul.f32 %v6359_v26, %v3677_v28  ;;  %v3918_v28 = vld [vmem:[#allocation4] sm:$0xff] }
0x26b5   :  { %3681 = vrot.lane.b32.xlu0 %v3679_v32, %s6434_s25 }
0x26bc   :  { %v3655_v37 = vpop.permute.xlu1 %3654 }
0x26bd   :  { %v3657_v9 = vadd.f32 %v3655_v37, %v3493_v18 }
0x26bf   :  { %6360 = vtanh.f32 %v3657_v9 }
0x26cc   :  { %v6361_v11 = vpop.eup %6360 }
0x26cd   :  { %3661 = vrot.lane.b32.xlu1 %v6361_v11, %s6436_s0  ;;  %v3919_v11 = vld [vmem:[#allocation4 + $0x8] sm:$0xff] }
0x2727   :  { %v3682_v38 = vpop.permute.xlu0 %3681 }
0x2728   :  { %v3684_v50 = vadd.f32 %v3682_v38, %v3495_v30 }
0x272a   :  { %6362 = vtanh.f32 %v3684_v50  ;;  %v3936_v50 = vld [vmem:[#allocation5 + $0x10] sm:$0xff] }
0x2737   :  { %v6363_v15 = vpop.eup %6362 }
0x2738   :  { %3688 = vrot.lane.b32.xlu0 %v6363_v15, %s6436_s0  ;;  %v3920_v15 = vld [vmem:[#allocation4 + $0x10] sm:$0xff] }
0x273f   :  { %v3662_v10 = vpop.permute.xlu1 %3661 }
0x2740   :  { %v3664_v21 = vmul.f32 %v3662_v10, %v3659_v49  ;;  %v3952_v49 = vadd.f32 %v3936_v50, %v3920_v15  ;;  %v3937_v10 = vld [vmem:[#allocation5 + $0x18] sm:$0xff] }
0x2741   :  { %v4036_v50 = vld [vmem:[%s8064_s8 + $0x18] sm:$0xff] }
0x2742   :  { %v3666_v48 = vadd.f32 %v3665_v45, %v3664_v21  ;;  %v3921_v45 = vld [vmem:[#allocation4 + $0x18] sm:$0xff] }
0x2743   :  { %v3953_v21 = vadd.f32 %v3937_v10, %v3921_v45  ;;  %v4411_v15 = vld [vmem:[%s8065_s9 + $0x18] sm:$0xff]  ;;  %v4409_v10 = vld [vmem:[%s8065_s9 + $0x8] sm:$0xff]  ;;  %v5150_v45 = vld [vmem:[%s8066_s10] sm:$0xff] }
0x2744   :  { %3695 = vrot.lane.b32.xlu1 %v3666_v48, %s6436_s0 }
0x2748   :  { %351 = vrot.lane.b32.xlu1 %v6755_v51, %s6435_s3 }
0x27aa   :  { %v3689_v20 = vpop.permute.xlu0 %3688 }
0x27ab   :  { %v3691_v54 = vmul.f32 %v3689_v20, %v3686_v7  ;;  %v3922_v7 = vld [vmem:[#allocation4 + $0x20] sm:$0xff] }
0x27ad   :  { %v3693_v2 = vadd.f32 %v3692_v43, %v3691_v54  ;;  %v3939_v43 = vld [vmem:[#allocation5 + $0x28] sm:$0xff] }
0x27ae   :  { %v3923_v54 = vld [vmem:[#allocation4 + $0x28] sm:$0xff] }
0x27af   :  { %3701 = vrot.lane.b32.xlu0 %v3693_v2, %s6436_s0 }
0x27b3   :  { %349 = vrot.lane.b32.xlu0 %v6748_v47, %s6435_s3  ;;  %s6440_s3 = smov 112  }
0x27b6   :  { %v3696_v12 = vpop.permute.xlu1 %3695 }
0x27b7   :  { %3699 = vst.msk [vmem:[#allocation4 + $0x70] sm:$0xff] %vm90_vm0, %v3696_v12  ;;  %5990 = vmatmul.mubr.msk.f32.vlgmr.msra.gmra.mxu0 %vm90_vm0, %v3696_v12  ;;  %v3940_v12 = vld [vmem:[#allocation5 + $0x30] sm:$0xff] }
0x27ba   :  { %v352_v51 = vpop.permute.xlu1 %351 }
0x2821   :  { %v3702_v16 = vpop.permute.xlu0 %3701 }
0x2822   :  { %3705 = vst.msk [vmem:[#allocation5 + $0x8] sm:$0xff] %vm90_vm0, %v3702_v16  ;;  %6001 = vmatmul.mubr.msk.f32.vlgmr.msra.gmra.mxu1 %vm90_vm0, %v3702_v16  ;;  %v3924_v16 = vld [vmem:[#allocation4 + $0x30] sm:$0xff] }
0x2825   :  { %v350_v58 = vpop.permute.xlu0 %349 }
0x2826   :  { %v413_v33 = vsel %vm90_vm0, %v350_v58, %v352_v51  ;;  %v3956_v51 = vadd.f32 %v3940_v12, %v3924_v16  ;;  %v3941_v58 = vld [vmem:[#allocation5 + $0x38] sm:$0xff] }
0x2827   :  { %445 = vst.msk [vmem:[#allocation3] sm:$0xff] %vm300_vm2, %v413_v33  ;;  %v3925_v33 = vld [vmem:[#allocation4 + $0x38] sm:$0xff] }
0x2828   :  { %v5181_v12 = vld [vmem:[%s8067_s11 + $0x18] sm:$0xff] }
0x2829   :  { %v3935_v9 = vld [vmem:[#allocation5 + $0x8] sm:$0xff] }
0x282a   :  { %v3951_v38 = vadd.f32 %v3935_v9, %v3919_v11  ;;  %v4034_v9 = vld [vmem:[%s8064_s8 + $0x8] sm:$0xff]  ;;  %v4035_v11 = vld [vmem:[%s8064_s8 + $0x10] sm:$0xff] }
0x2877   :  { %v3777_v59 = vpop.f32.mrf.mxu0 }
0x2878   :  { %v3860_v40 = vadd.f32 %v3777_v59, %v6743_v44  ;;  %v3853_v0 = vadd.f32 %v3777_v59, %v3707_v61  ;;  %v3708_v44 = vld [vmem:[#allocation3] sm:$0xff]  ;;  %v3957_v59 = vadd.f32 %v3941_v58, %v3925_v33 }
0x2879   :  { %v5991_v47 = vpop.f32.mrf.mxu0 }
0x287a   :  { %3862 = vrot.lane.b32.xlu1 %v3860_v40, %s6434_s25  ;;  %v5359_v14 = vmul.f32 -1.442695, %v3853_v0  ;;  %v3926_v40 = vld [vmem:[#allocation4 + $0x40] sm:$0xff]  ;;  %v3927_v0 = vld [vmem:[#allocation4 + $0x48] sm:$0xff] }
0x287b   :  { %v3942_v47 = vld [vmem:[#allocation5 + $0x40] sm:$0xff] }
0x287c   :  { %6364 = vpow2.f32 %v5359_v14  ;;  %v3943_v14 = vld [vmem:[#allocation5 + $0x48] sm:$0xff] }
0x2889   :  { %v6365_v62 = vpop.eup %6364 }
0x288a   :  { %v3857_v46 = vadd.f32 1.0, %v6365_v62  ;;  %v3959_v62 = vadd.f32 %v3943_v14, %v3927_v0  ;;  %v6394_v0 = vld [vmem:[%s8075_s17] sm:$0xff] }
0x288c   :  { %6366 = vrcp.f32 %v3857_v46  ;;  %v3928_v46 = vld [vmem:[#allocation4 + $0x50] sm:$0xff] }
0x2899   :  { %v6367_v23 = vpop.eup %6366 }
0x289a   :  { %v3872_v22 = vsub.f32 1.0, %v6367_v23  ;;  %v3878_v56 = vmul.f32 %v6367_v23, %v3666_v48  ;;  %v3938_v48 = vld [vmem:[#allocation5 + $0x20] sm:$0xff] }
0x289b   :  { %v3954_v20 = vadd.f32 %v3938_v48, %v3922_v7  ;;  %v5152_v48 = vld [vmem:[%s8066_s10 + $0x10] sm:$0xff]  ;;  %v4408_v7 = vld [vmem:[%s8065_s9] sm:$0xff] }
0x28e2   :  { %v3849_v42 = vpop.f32.mrf.mxu1 }
0x28e3   :  { %v3887_v6 = vadd.f32 %v3849_v42, %v6872_v27  ;;  %v3880_v53 = vadd.f32 %v3849_v42, %v3708_v44  ;;  %v3944_v42 = vld [vmem:[#allocation5 + $0x50] sm:$0xff] }
0x28e4   :  { %v6002_v13 = vpop.f32.mrf.mxu1 }
0x28e5   :  { %3889 = vrot.lane.b32.xlu0 %v3887_v6, %s6434_s25  ;;  %v5360_v55 = vmul.f32 -1.442695, %v3880_v53  ;;  %v3960_v6 = vadd.f32 %v3944_v42, %v3928_v46  ;;  %v3929_v13 = vld [vmem:[#allocation4 + $0x58] sm:$0xff]  ;;  %v6396_v42 = vld [vmem:[%s8075_s17 + $0x10] sm:$0xff] }
0x28e7   :  { %6368 = vpow2.f32 %v5360_v55  ;;  %v3931_v55 = vld [vmem:[#allocation4 + $0x68] sm:$0xff] }
0x28ec   :  { %v3863_v34 = vpop.permute.xlu1 %3862 }
0x28ed   :  { %v3865_v36 = vmul.f32 %v6367_v23, %v3863_v34  ;;  %v3945_v23 = vld [vmem:[#allocation5 + $0x58] sm:$0xff] }
0x28ee   :  { %v3961_v34 = vadd.f32 %v3945_v23, %v3929_v13  ;;  %v6397_v13 = vld [vmem:[%s8075_s17 + $0x18] sm:$0xff] }
0x28ef   :  { %3867 = vrot.lane.b32.xlu1 %v3865_v36, %s6434_s25  ;;  %v3930_v36 = vld [vmem:[#allocation4 + $0x60] sm:$0xff] }
0x28f4   :  { %v6369_v8 = vpop.eup %6368 }
0x28f5   :  { %v3884_v5 = vadd.f32 1.0, %v6369_v8  ;;  %v3947_v8 = vld [vmem:[#allocation5 + $0x68] sm:$0xff] }
0x28f7   :  { %6370 = vrcp.f32 %v3884_v5  ;;  %v3963_v5 = vadd.f32 %v3947_v8, %v3931_v55  ;;  %v6399_v8 = vld [vmem:[%s8075_s17 + $0x28] sm:$0xff] }
0x2904   :  { %v6371_v24 = vpop.eup %6370 }
0x2905   :  { %v3899_v60 = vsub.f32 1.0, %v6371_v24  ;;  %v3905_v17 = vmul.f32 %v6371_v24, %v3693_v2  ;;  %v3955_v2 = vadd.f32 %v3939_v43, %v3923_v54  ;;  %v5178_v43 = vld [vmem:[%s8067_s11] sm:$0xff]  ;;  %v5179_v54 = vld [vmem:[%s8067_s11 + $0x8] sm:$0xff] }
0x2957   :  { %v3890_v63 = vpop.permute.xlu0 %3889 }
0x2958   :  { %v3892_v35 = vmul.f32 %v6371_v24, %v3890_v63  ;;  %v3932_v24 = vld [vmem:[#allocation4 + $0x70] sm:$0xff] }
0x2959   :  { %v3948_v63 = vld [vmem:[#allocation5 + $0x70] sm:$0xff] }
0x295a   :  { %3894 = vrot.lane.b32.xlu0 %v3892_v35, %s6434_s25  ;;  %v3964_v35 = vadd.f32 %v3948_v63, %v3932_v24  ;;  %s6439_s25 = smov 120   ;;  %v5362_v24 = vld [vmem:[%s8064_s8 + $0x28] sm:$0xff] }
0x2961   :  { %v3868_v27 = vpop.permute.xlu1 %3867 }
0x2962   :  { %v3870_v18 = vadd.f32 %v3868_v27, %v3707_v61  ;;  %v3958_v61 = vadd.f32 %v3942_v47, %v3926_v40 }
0x2964   :  { %6372 = vtanh.f32 %v3870_v18  ;;  %v3949_v18 = vld [vmem:[#allocation5 + $0x78] sm:$0xff] }
0x2971   :  { %v6373_v39 = vpop.eup %6372 }
0x2972   :  { %3874 = vrot.lane.b32.xlu1 %v6373_v39, %s6436_s0 }
0x29cc   :  { %v3895_v41 = vpop.permute.xlu0 %3894 }
0x29cd   :  { %v3897_v52 = vadd.f32 %v3895_v41, %v3708_v44  ;;  %v3946_v44 = vld [vmem:[#allocation5 + $0x60] sm:$0xff] }
0x29ce   :  { %v3962_v53 = vadd.f32 %v3946_v44, %v3930_v36  ;;  %v6398_v36 = vld [vmem:[%s8075_s17 + $0x20] sm:$0xff] }
0x29cf   :  { %6374 = vtanh.f32 %v3897_v52 }
0x29dc   :  { %v6375_v4 = vpop.eup %6374 }
0x29dd   :  { %3901 = vrot.lane.b32.xlu0 %v6375_v4, %s6436_s0 }
0x29e4   :  { %v3875_v19 = vpop.permute.xlu1 %3874 }
0x29e5   :  { %v3877_v25 = vmul.f32 %v3875_v19, %v3872_v22  ;;  %v6438_v19 = vmov 0  }
0x29e6   :  { %6182 = vset.pattern.permute.xlu1 %v6438_v19 }
0x29e7   :  { %v3879_v57 = vadd.f32 %v3878_v56, %v3877_v25 }
0x29e9   :  { %3908 = vrot.lane.b32.xlu1 %v3879_v57, %s6436_s0 }
0x2a4f   :  { %v3902_v30 = vpop.permute.xlu0 %3901 }
0x2a50   :  { %v3904_v29 = vmul.f32 %v3902_v30, %v3899_v60 }
0x2a52   :  { %v3906_v31 = vadd.f32 %v3905_v17, %v3904_v29 }
0x2a54   :  { %3914 = vrot.lane.b32.xlu0 %v3906_v31, %s6436_s0 }
0x2a5b   :  { %v3909_v1 = vpop.permute.xlu1 %3908 }
0x2a5c   :  { %3912 = vst.msk [vmem:[#allocation4 + $0x78] sm:$0xff] %vm90_vm0, %v3909_v1 }
0x2a63   :  { %v3933_v27 = vld [vmem:[#allocation4 + $0x78] sm:$0xff] }
0x2a64   :  { %v3965_v39 = vadd.f32 %v3949_v18, %v3933_v27  ;;  %v5363_v27 = vld [vmem:[%s8064_s8 + $0x30] sm:$0xff] }
0x2a65   :  { %v6400_v18 = vld [vmem:[%s8075_s17 + $0x30] sm:$0xff] }
0x2ac6   :  { %v3915_v26 = vpop.permute.xlu0 %3914 }
0x2ac7   :  { %3917 = vst.msk [vmem:[#allocation5] sm:$0xff] %vm90_vm0, %v3915_v26 }
0x2ace   :  { %v3934_v32 = vld [vmem:[#allocation5] sm:$0xff] }
0x2acf   :  { %v3950_v37 = vadd.f32 %v3934_v32, %v3918_v28  ;;  %v5361_v32 = vld [vmem:[%s8064_s8 + $0x20] sm:$0xff] }
0x2ad0   :  { %6011 = vmatprep.mubr.msk.f32.mxu0 %vm90_vm0, %v5361_v32  ;;  %v6404_v32 = vld [vmem:[%s8075_s17 + $0x50] sm:$0xff] }
0x2ad1   :  { %3966 = vxpose.xlu0.b32.start [1/16] (narrow) %v3950_v37, 32  ;;  %v4033_v37 = vld [vmem:[%s8064_s8] sm:$0xff] }
0x2ad2   :  { %6025 = vmatprep.mubr.msk.f32.mxu1 %vm90_vm0, %v4033_v37  ;;  %v6405_v37 = vld [vmem:[%s8075_s17 + $0x58] sm:$0xff] }
0x2ad5   :  { %3967 = vxpose.xlu0.b32.cont [2/16] (narrow) %v3951_v38, 32 }
0x2ad9   :  { %3968 = vxpose.xlu0.b32.cont [3/16] (narrow) %v3952_v49, 32  ;;  %v4410_v49 = vld [vmem:[%s8065_s9 + $0x10] sm:$0xff] }
0x2add   :  { %3969 = vxpose.xlu0.b32.cont [4/16] (narrow) %v3953_v21, 32  ;;  %v5151_v21 = vld [vmem:[%s8066_s10 + $0x8] sm:$0xff] }
0x2ae1   :  { %3970 = vxpose.xlu0.b32.cont [5/16] (narrow) %v3954_v20, 32  ;;  %v5153_v20 = vld [vmem:[%s8066_s10 + $0x18] sm:$0xff] }
0x2ae5   :  { %3971 = vxpose.xlu0.b32.cont [6/16] (narrow) %v3955_v2, 32  ;;  %v5180_v2 = vld [vmem:[%s8067_s11 + $0x10] sm:$0xff] }
0x2ae9   :  { %3972 = vxpose.xlu0.b32.cont [7/16] (narrow) %v3956_v51, 32 }
0x2aed   :  { %3973 = vxpose.xlu0.b32.cont [8/16] (narrow) %v3957_v59, 32 }
0x2af1   :  { %3974 = vxpose.xlu0.b32.cont [9/16] (narrow) %v3958_v61, 32 }
0x2af5   :  { %3975 = vxpose.xlu0.b32.cont [10/16] (narrow) %v3959_v62, 32  ;;  %v6395_v62 = vld [vmem:[%s8075_s17 + $0x8] sm:$0xff] }
0x2af9   :  { %3976 = vxpose.xlu0.b32.cont [11/16] (narrow) %v3960_v6, 32 }
0x2afd   :  { %3977 = vxpose.xlu0.b32.cont [12/16] (narrow) %v3961_v34, 32 }
0x2b01   :  { %3978 = vxpose.xlu0.b32.cont [13/16] (narrow) %v3962_v53, 32 }
0x2b05   :  { %3979 = vxpose.xlu0.b32.cont [14/16] (narrow) %v3963_v5, 32 }
0x2b09   :  { %3980 = vxpose.xlu0.b32.cont [15/16] (narrow) %v3964_v35, 32 }
0x2b0d   :  { %3981 = vxpose.xlu0.b32.end [16/16] (narrow) %v3965_v39, 32 }
0x2b36   :  { %6183 = vset.pattern.permute.xlu0 %v6438_v19  ;;  %v5364_v19 = vld [vmem:[%s8064_s8 + $0x38] sm:$0xff] }
0x2b37   :  { %4414 = vperm.xlu0 %6183, %v4408_v7   ;;  %v7881_v7 = vld [vmem:[%s8070_s14 + $0x48] sm:$0xff] }
0x2b4d   :  { %v7676_v41 = vpop.trf.xlu0 }
0x2b51   :  { %v7678_v52 = vpop.trf.xlu0 }
0x2b55   :  { %v7680_v4 = vpop.trf.xlu0 }
0x2b56   :  { %4016 = vrot.lane.b32.xlu1 %v7680_v4, %s6437_s5 }
0x2b59   :  { %v7684_v22 = vpop.trf.xlu0 }
0x2b5a   :  { %4018 = vrot.lane.b32.xlu1 %v7684_v22, %s6437_s5 }
0x2b5e   :  { %4014 = vrot.lane.b32.xlu1 %v7678_v52, %s6437_s5 }
0x2b62   :  { %4012 = vrot.lane.b32.xlu1 %v7676_v41, %s6437_s5 }
0x2bc8   :  { %v4017_v56 = vpop.permute.xlu1 %4016 }
0x2bc9   :  { %4029 = vst.msk [vmem:[#allocation6 + $0x20] sm:$0xff] %vm4024_vm5, %v4017_v56 }
0x2bca   :  { %4030 = vst.msk [vmem:[#allocation6 + $0x28] sm:$0xff] %vm3998_vm3, %v4017_v56 }
0x2bcc   :  { %v4019_v25 = vpop.permute.xlu1 %4018 }
0x2bcd   :  { %4031 = vst.msk [vmem:[#allocation6 + $0x30] sm:$0xff] %vm4024_vm5, %v4019_v25 }
0x2bce   :  { %4032 = vst.msk [vmem:[#allocation6 + $0x38] sm:$0xff] %vm3998_vm3, %v4019_v25 }
0x2bd0   :  { %v4015_v57 = vpop.permute.xlu1 %4014  ;;  %v4039_v17 = vld [vmem:[#allocation6 + $0x20] sm:$0xff] }
0x2bd1   :  { %4027 = vst.msk [vmem:[#allocation6 + $0x10] sm:$0xff] %vm4024_vm5, %v4015_v57  ;;  %v4048_v28 = vld [vmem:[#allocation6 + $0x28] sm:$0xff] }
0x2bd2   :  { %4028 = vst.msk [vmem:[#allocation6 + $0x18] sm:$0xff] %vm3998_vm3, %v4015_v57  ;;  %v5373_v57 = vld [vmem:[%s8064_s8 + $0x40] sm:$0xff] }
0x2bd4   :  { %v4013_v60 = vpop.permute.xlu1 %4012  ;;  %v4040_v30 = vld [vmem:[#allocation6 + $0x30] sm:$0xff] }
0x2bd5   :  { %4025 = vst.msk [vmem:[#allocation6] sm:$0xff] %vm4024_vm5, %v4013_v60  ;;  %6017 = vmatprep.subr.mxu1 %v4040_v30  ;;  %v4049_v38 = vld [vmem:[#allocation6 + $0x38] sm:$0xff] }
0x2bd6   :  { %4026 = vst.msk [vmem:[#allocation6 + $0x8] sm:$0xff] %vm3998_vm3, %v4013_v60  ;;  %6018 = vmatpush3.msra.mxu1 %v4040_v30  ;;  %v6401_v60 = vld [vmem:[%s8075_s17 + $0x38] sm:$0xff] }
0x2bd7   :  { %6019 = vmatprep.subr.mxu1 %v4039_v17 }
0x2bd8   :  { %6020 = vmatpush3.msra.mxu1 %v4039_v17  ;;  %v4038_v29 = vld [vmem:[#allocation6 + $0x10] sm:$0xff] }
0x2bd9   :  { %6021 = vmatprep.subr.mxu1 %v4038_v29  ;;  %v4047_v26 = vld [vmem:[#allocation6 + $0x18] sm:$0xff] }
0x2bda   :  { %6022 = vmatpush3.msra.mxu1 %v4038_v29 }
0x2bdc   :  { %v4037_v31 = vld [vmem:[#allocation6] sm:$0xff] }
0x2bdd   :  { %4058 = vrot.lane.b32.xlu1 %v4037_v31, %s6439_s25  ;;  %6023 = vmatprep.subr.mxu1 %v4037_v31  ;;  %v4046_v1 = vld [vmem:[#allocation6 + $0x8] sm:$0xff] }
0x2bde   :  { %6024 = vmatpush3.msra.mxu1 %v4037_v31 }
0x2bdf   :  { %6045 = vmatprep.subr.mxu1 %v6432_v3  ;;  %6026 = vmatmul.mubr.msk.f32.vlgmr.msra.gmra.mxu1 %vm90_vm0, %v4034_v9  ;;  %v6406_v9 = vld [vmem:[%s8075_s17 + $0x60] sm:$0xff] }
0x2be0   :  { %6028 = vmatprep.mubr.msk.f32.mxu1 %vm90_vm0, %v4035_v11  ;;  %v6407_v11 = vld [vmem:[%s8075_s17 + $0x68] sm:$0xff] }
0x2be1   :  { %4060 = vrot.lane.b32.xlu1 %v4046_v1, %s6439_s25 }
0x2be3   :  { %6029 = vmatmul.mubr.msk.f32.gmra.mxu1 %vm90_vm0, %v4036_v50  ;;  %v6409_v50 = vld [vmem:[%s8075_s17 + $0x78] sm:$0xff] }
0x2be4   :  { %6053 = vmatprep.mubr.msk.f32.mxu1 %vm6433_vm1, %v6432_v3 }
0x2be5   :  { %4062 = vrot.lane.b32.xlu1 %v4038_v29, %s6439_s25 }
0x2be9   :  { %4064 = vrot.lane.b32.xlu1 %v4047_v26, %s6439_s25 }
0x2bed   :  { %4286 = vrot.lane.b32.xlu1 %v4038_v29, %s6440_s3  ;;  %v5374_v29 = vld [vmem:[%s8064_s8 + $0x48] sm:$0xff] }
0x2bf1   :  { %4288 = vrot.lane.b32.xlu1 %v4047_v26, %s6440_s3  ;;  %v5376_v26 = vld [vmem:[%s8064_s8 + $0x58] sm:$0xff] }
0x2bf5   :  { %4066 = vrot.lane.b32.xlu1 %v4039_v17, %s6439_s25 }
0x2bf9   :  { %4068 = vrot.lane.b32.xlu1 %v4048_v28, %s6439_s25 }
0x2bfd   :  { %4290 = vrot.lane.b32.xlu1 %v4039_v17, %s6440_s3 }
0x2c01   :  { %4292 = vrot.lane.b32.xlu1 %v4048_v28, %s6440_s3  ;;  %v6403_v28 = vld [vmem:[%s8075_s17 + $0x48] sm:$0xff] }
0x2c05   :  { %4070 = vrot.lane.b32.xlu1 %v4040_v30, %s6439_s25 }
0x2c09   :  { %4072 = vrot.lane.b32.xlu1 %v4049_v38, %s6439_s25 }
0x2c0d   :  { %4294 = vrot.lane.b32.xlu1 %v4040_v30, %s6440_s3 }
0x2c11   :  { %4296 = vrot.lane.b32.xlu1 %v4049_v38, %s6440_s3  ;;  %v6408_v38 = vld [vmem:[%s8075_s17 + $0x70] sm:$0xff] }
0x2c15   :  { %4282 = vrot.lane.b32.xlu1 %v4037_v31, %s6440_s3  ;;  %v5375_v31 = vld [vmem:[%s8064_s8 + $0x50] sm:$0xff] }
0x2c19   :  { %4284 = vrot.lane.b32.xlu1 %v4046_v1, %s6440_s3  ;;  %v6402_v1 = vld [vmem:[%s8075_s17 + $0x40] sm:$0xff] }
0x2c1d   :  { %4429 = vperm.xlu1 %6182, %v4411_v15   ;;  %v7841_v15 = vld [vmem:[%s8070_s14 + $0x78] sm:$0xff] }
0x2c21   :  { %4424 = vperm.xlu1 %6182, %v4410_v49   ;;  %v7846_v49 = vld [vmem:[%s8070_s14 + $0x70] sm:$0xff] }
0x2c25   :  { %4419 = vperm.xlu1 %6182, %v4409_v10   ;;  %v7853_v10 = vld [vmem:[%s8070_s14 + $0x68] sm:$0xff] }
0x2c29   :  { %5156 = vperm.xlu1 %6182, %v5150_v45   ;;  %v7860_v45 = vld [vmem:[%s8070_s14 + $0x60] sm:$0xff] }
0x2c2d   :  { %5161 = vperm.xlu1 %6182, %v5151_v21   ;;  %v7867_v21 = vld [vmem:[%s8070_s14 + $0x58] sm:$0xff] }
0x2c31   :  { %5166 = vperm.xlu1 %6182, %v5152_v48   ;;  %v7874_v48 = vld [vmem:[%s8070_s14 + $0x50] sm:$0xff] }
0x2c35   :  { %5171 = vperm.xlu1 %6182, %v5153_v20   ;;  %v7888_v20 = vld [vmem:[%s8070_s14 + $0x40] sm:$0xff] }
0x2c39   :  { %5184 = vperm.xlu1 %6182, %v5178_v43   ;;  %v7895_v43 = vld [vmem:[%s8070_s14 + $0x38] sm:$0xff] }
0x2c3d   :  { %5189 = vperm.xlu1 %6182, %v5179_v54   ;;  %v7902_v54 = vld [vmem:[%s8070_s14 + $0x30] sm:$0xff] }
0x2c41   :  { %5194 = vperm.xlu1 %6182, %v5180_v2   ;;  %v7909_v2 = vld [vmem:[%s8070_s14 + $0x28] sm:$0xff] }
0x2c45   :  { %5199 = vperm.xlu1 %6182, %v5181_v12   ;;  %v7916_v12 = vld [vmem:[%s8070_s14 + $0x20] sm:$0xff] }
0x2c4f   :  { %v4059_v16 = vpop.permute.xlu1 %4058 }
0x2c53   :  { %v4061_v51 = vpop.permute.xlu1 %4060 }
0x2c54   :  { %v4075_v5 = vsel %vm4074_vm6, %v4059_v16, %v4061_v51  ;;  %v7923_v16 = vld [vmem:[%s8070_s14 + $0x18] sm:$0xff]  ;;  %v7930_v51 = vld [vmem:[%s8070_s14 + $0x10] sm:$0xff] }
0x2c57   :  { %v4063_v58 = vpop.permute.xlu1 %4062 }
0x2c5b   :  { %v4065_v33 = vpop.permute.xlu1 %4064 }
0x2c5c   :  { %v4076_v55 = vsel %vm4074_vm6, %v4063_v58, %v4065_v33  ;;  %v7937_v58 = vld [vmem:[%s8070_s14 + $0x8] sm:$0xff] }
0x2c5f   :  { %v4287_v59 = vpop.permute.xlu1 %4286 }
0x2c63   :  { %v4289_v40 = vpop.permute.xlu1 %4288 }
0x2c64   :  { %v4300_v25 = vsel %vm4298_vm7, %v4287_v59, %v4289_v40 }
0x2c67   :  { %v4067_v47 = vpop.permute.xlu1 %4066 }
0x2c6b   :  { %v4069_v61 = vpop.permute.xlu1 %4068 }
0x2c6c   :  { %v4077_v44 = vsel %vm4074_vm6, %v4067_v47, %v4069_v61 }
0x2c6e   :  { %5218 = vxpose.xlu1.b32.start [1/16] (narrow) %v6394_v0, 32 }
0x2c6f   :  { %v4291_v14 = vpop.permute.xlu1 %4290 }
0x2c72   :  { %5219 = vxpose.xlu1.b32.cont [2/16] (narrow) %v6395_v62, 32 }
0x2c73   :  { %v4293_v46 = vpop.permute.xlu1 %4292 }
0x2c74   :  { %v4301_v39 = vsel %vm4298_vm7, %v4291_v14, %v4293_v46 }
0x2c76   :  { %5220 = vxpose.xlu1.b32.cont [3/16] (narrow) %v6396_v42, 32 }
0x2c77   :  { %v4071_v6 = vpop.permute.xlu1 %4070 }
0x2c7a   :  { %5221 = vxpose.xlu1.b32.cont [4/16] (narrow) %v6397_v13, 32 }
0x2c7b   :  { %v4073_v23 = vpop.permute.xlu1 %4072 }
0x2c7c   :  { %v4078_v34 = vsel %vm4074_vm6, %v4071_v6, %v4073_v23 }
0x2c7d   :  { %6003 = vmatprep.subr.mxu0 %v4078_v34 }
0x2c7e   :  { %5222 = vxpose.xlu1.b32.cont [5/16] (narrow) %v6398_v36, 32  ;;  %6004 = vmatpush3.msra.mxu0 %v4078_v34 }
0x2c7f   :  { %6005 = vmatprep.subr.mxu0 %v4077_v44  ;;  %v4295_v53 = vpop.permute.xlu1 %4294 }
0x2c80   :  { %6006 = vmatpush3.msra.mxu0 %v4077_v44 }
0x2c81   :  { %6007 = vmatprep.subr.mxu0 %v4076_v55 }
0x2c82   :  { %5223 = vxpose.xlu1.b32.cont [6/16] (narrow) %v6399_v8, 32  ;;  %6008 = vmatpush3.msra.mxu0 %v4076_v55 }
0x2c83   :  { %6009 = vmatprep.subr.mxu0 %v4075_v5  ;;  %v4297_v63 = vpop.permute.xlu1 %4296 }
0x2c84   :  { %6010 = vmatpush3.msra.mxu0 %v4075_v5  ;;  %v4302_v35 = vsel %vm4298_vm7, %v4295_v53, %v4297_v63 }
0x2c85   :  { %6012 = vmatmul.mubr.msk.f32.vlgmr.msra.gmra.mxu0 %vm90_vm0, %v5362_v24  ;;  %6031 = vmatprep.subr.mxu0 %v4302_v35 }
0x2c86   :  { %5224 = vxpose.xlu1.b32.cont [7/16] (narrow) %v6400_v18, 32  ;;  %6032 = vmatpush3.msra.mxu0 %v4302_v35 }
0x2c87   :  { %6033 = vmatprep.subr.mxu0 %v4301_v39  ;;  %v4283_v56 = vpop.permute.xlu1 %4282  ;;  %6014 = vmatprep.mubr.msk.f32.mxu0 %vm90_vm0, %v5363_v27 }
0x2c88   :  { %6034 = vmatpush3.msra.mxu0 %v4301_v39  ;;  %v4415_v39 = vpop.permute.xlu0 %4414 }
0x2c89   :  { %6015 = vmatmul.mubr.msk.f32.gmra.mxu0 %vm90_vm0, %v5364_v19  ;;  %6035 = vmatprep.subr.mxu0 %v4300_v25 }
0x2c8a   :  { %5225 = vxpose.xlu1.b32.cont [8/16] (narrow) %v6401_v60, 32  ;;  %6036 = vmatpush3.msra.mxu0 %v4300_v25  ;;  %v4436_v25 = vld [vmem:[%s8068_s12] sm:$0xf] }
0x2c8b   :  { %v4285_v30 = vpop.permute.xlu1 %4284  ;;  %6039 = vmatprep.mubr.msk.f32.mxu0 %vm90_vm0, %v5373_v57 }
0x2c8c   :  { %v4299_v17 = vsel %vm4298_vm7, %v4283_v56, %v4285_v30 }
0x2c8d   :  { %6037 = vmatprep.subr.mxu0 %v4299_v17 }
0x2c8e   :  { %5226 = vxpose.xlu1.b32.cont [9/16] (narrow) %v6402_v1, 32  ;;  %6038 = vmatpush3.msra.mxu0 %v4299_v17 }
0x2c8f   :  { %6040 = vmatmul.mubr.msk.f32.vlgmr.msra.gmra.mxu0 %vm90_vm0, %v5374_v29  ;;  %6056 = vmatprep.subr.mxu0 %v6432_v3  ;;  %v4441_v29 = vld [vmem:[%s8070_s14] sm:$0xff] }
0x2c90   :  { %6042 = vmatprep.mubr.msk.f32.mxu0 %vm90_vm0, %v5375_v31  ;;  %6057 = vmatpush3.msra.mxu0 %v7841_v15 }
0x2c91   :  { %6058 = vmatprep.subr.mxu0 %v6432_v3 }
0x2c92   :  { %5227 = vxpose.xlu1.b32.cont [10/16] (narrow) %v6403_v28, 32  ;;  %6059 = vmatpush3.msra.mxu0 %v7846_v49 }
0x2c93   :  { %6043 = vmatmul.mubr.msk.f32.gmra.mxu0 %vm90_vm0, %v5376_v26  ;;  %6060 = vmatprep.subr.mxu0 %v6432_v3 }
0x2c94   :  { %6088 = vmatprep.mubr.msk.f32.mxu0 %vm6433_vm1, %v6432_v3  ;;  %6061 = vmatpush3.msra.mxu0 %v7853_v10 }
0x2c95   :  { %6062 = vmatprep.subr.mxu0 %v6432_v3 }
0x2c96   :  { %5228 = vxpose.xlu1.b32.cont [11/16] (narrow) %v6404_v32, 32  ;;  %6063 = vmatpush3.msra.mxu0 %v7860_v45  ;;  %v4437_v32 = vld [vmem:[%s8069_s13] sm:$0xff] }
0x2c97   :  { %6064 = vmatprep.subr.mxu0 %v6432_v3 }
0x2c98   :  { %6065 = vmatpush3.msra.mxu0 %v7867_v21  ;;  %v4430_v0 = vpop.permute.xlu1 %4429 }
0x2c99   :  { %6066 = vmatprep.subr.mxu0 %v6432_v3 }
0x2c9a   :  { %5229 = vxpose.xlu1.b32.cont [12/16] (narrow) %v6405_v37, 32  ;;  %6067 = vmatpush3.msra.mxu0 %v7874_v48 }
0x2c9b   :  { %6068 = vmatprep.subr.mxu0 %v6432_v3 }
0x2c9c   :  { %6069 = vmatpush3.msra.mxu0 %v7881_v7  ;;  %v4425_v23 = vpop.permute.xlu1 %4424 }
0x2c9d   :  { %6070 = vmatprep.subr.mxu0 %v6432_v3 }
0x2c9e   :  { %5230 = vxpose.xlu1.b32.cont [13/16] (narrow) %v6406_v9, 32  ;;  %6071 = vmatpush3.msra.mxu0 %v7888_v20 }
0x2c9f   :  { %6072 = vmatprep.subr.mxu0 %v6432_v3  ;;  %v6027_v59 = vpop.f32.mrf.mxu1 }
0x2ca0   :  { %6073 = vmatpush3.msra.mxu0 %v7895_v43  ;;  %v4420_v18 = vpop.permute.xlu1 %4419 }
0x2ca1   :  { %6074 = vmatprep.subr.mxu0 %v6432_v3  ;;  %v4258_v47 = vpop.f32.mrf.mxu1 }
0x2ca2   :  { %5231 = vxpose.xlu1.b32.cont [14/16] (narrow) %v6407_v11, 32  ;;  %6075 = vmatpush3.msra.mxu0 %v7902_v54 }
0x2ca3   :  { %6076 = vmatprep.subr.mxu0 %v6432_v3  ;;  %v6030_v14 = vpop.f32.mrf.mxu1 }
0x2ca4   :  { %6077 = vmatpush3.msra.mxu0 %v7909_v2 }
0x2ca5   :  { %6078 = vmatprep.subr.mxu0 %v6432_v3  ;;  %v4268_v42 = vpop.f32.mrf.mxu1 }
0x2ca6   :  { %5232 = vxpose.xlu1.b32.cont [15/16] (narrow) %v6408_v38, 32  ;;  %6079 = vmatpush3.msra.mxu0 %v7916_v12 }
0x2ca7   :  { %6080 = vmatprep.subr.mxu0 %v6432_v3 }
0x2ca8   :  { %6081 = vmatpush3.msra.mxu0 %v7923_v16 }
0x2ca9   :  { %6082 = vmatprep.subr.mxu0 %v6432_v3 }
0x2caa   :  { %5233 = vxpose.xlu1.b32.end [16/16] (narrow) %v6409_v50, 32  ;;  %6083 = vmatpush3.msra.mxu0 %v7930_v51 }
0x2cab   :  { %6084 = vmatprep.subr.mxu0 %v6432_v3 }
0x2cac   :  { %6085 = vmatpush3.msra.mxu0 %v7937_v58 }
0x2cad   :  { %6086 = vmatprep.subr.mxu0 %v6432_v3 }
0x2cae   :  { %6087 = vmatpush3.msra.mxu0 %v4441_v29 }
0x2d45   :  { %v6013_v33 = vpop.f32.mrf.mxu0 }
0x2d46   :  { %v4264_v36 = vadd.f32 %v6027_v59, %v6013_v33 }
0x2d47   :  { %v4161_v40 = vpop.f32.mrf.mxu0 }
0x2d48   :  { %v4259_v8 = vadd.f32 %v4258_v47, %v4161_v40  ;;  %v5157_v47 = vpop.permute.xlu1 %5156 }
0x2d49   :  { %v6016_v61 = vpop.f32.mrf.mxu0 }
0x2d4a   :  { %v4274_v13 = vadd.f32 %v6030_v14, %v6016_v61 }
0x2d4b   :  { %v4171_v62 = vpop.f32.mrf.mxu0 }
0x2d4c   :  { %v4269_v44 = vadd.f32 %v4268_v42, %v4171_v62  ;;  %v5162_v61 = vpop.permute.xlu1 %5161 }
0x2d4f   :  { %v6041_v46 = vpop.f32.mrf.mxu0 }
0x2d50   :  { %v4405_v5 = vadd.f32 %v6041_v46, %v4264_v36 }
0x2d51   :  { %v4385_v6 = vpop.f32.mrf.mxu0 }
0x2d52   :  { %v4404_v35 = vadd.f32 %v4385_v6, %v4259_v8  ;;  %v7949_v19 = vadd.f32 %v4420_v18, %v4405_v5 }
0x2d53   :  { %v6044_v34 = vpop.f32.mrf.mxu0 }
0x2d54   :  { %v4407_v53 = vadd.f32 %v6044_v34, %v4274_v13  ;;  %v7953_v56 = vadd.f32 %v4415_v39, %v4404_v35  ;;  %v4602_v30 = vmul.f32 %v7949_v19, %v7949_v19 }
0x2d55   :  { %v4395_v55 = vpop.f32.mrf.mxu0 }
0x2d56   :  { %v7943_v24 = vadd.f32 %v4430_v0, %v4407_v53  ;;  %v4406_v63 = vadd.f32 %v4395_v55, %v4269_v44  ;;  %v4601_v17 = vmul.f32 %v7953_v56, %v7953_v56  ;;  %v5167_v0 = vpop.permute.xlu1 %5166 }
0x2d58   :  { %v7945_v27 = vadd.f32 %v4425_v23, %v4406_v63  ;;  %6046 = vmatpush3.msra.mxu1 %v7943_v24  ;;  %v4604_v57 = vmul.f32 %v7943_v24, %v7943_v24 }
0x2d59   :  { %6047 = vmatprep.subr.mxu1 %v6432_v3 }
0x2d5a   :  { %6048 = vmatpush3.msra.mxu1 %v7945_v27  ;;  %v4603_v60 = vmul.f32 %v7945_v27, %v7945_v27  ;;  %v5172_v14 = vpop.permute.xlu1 %5171 }
0x2d5b   :  { %6049 = vmatprep.subr.mxu1 %v6432_v3 }
0x2d5c   :  { %6050 = vmatpush3.msra.mxu1 %v7949_v19 }
0x2d5d   :  { %6051 = vmatprep.subr.mxu1 %v6432_v3 }
0x2d5e   :  { %6052 = vmatpush3.msra.mxu1 %v7953_v56  ;;  %v5185_v62 = vpop.permute.xlu1 %5184 }
0x2d5f   :  { %6054 = vmatmul.mubr.msk.f32.vlgmr.msra.gmra.mxu1 %vm90_vm0, %v4436_v25  ;;  %6091 = vmatprep.subr.mxu1 %v6432_v3 }
0x2d60   :  { %6092 = vmatpush3.msra.mxu1 %v4604_v57  ;;  %6099 = vmatprep.mubr.msk.f32.mxu1 %vm6433_vm1, %v6432_v3 }
0x2d61   :  { %6093 = vmatprep.subr.mxu1 %v6432_v3 }
0x2d62   :  { %6094 = vmatpush3.msra.mxu1 %v4603_v60  ;;  %v5190_v46 = vpop.permute.xlu1 %5189 }
0x2d63   :  { %6095 = vmatprep.subr.mxu1 %v6432_v3 }
0x2d64   :  { %6096 = vmatpush3.msra.mxu1 %v4602_v30 }
0x2d65   :  { %6097 = vmatprep.subr.mxu1 %v6432_v3 }
0x2d66   :  { %6098 = vmatpush3.msra.mxu1 %v4601_v17  ;;  %v5195_v42 = vpop.permute.xlu1 %5194 }
0x2d67   :  { %6100 = vmatmul.mubr.msk.f32.vlgmr.msra.gmra.mxu1 %vm90_vm0, %v4436_v25  ;;  %6102 = vmatprep.subr.mxu1 %v6432_v3 }
0x2d68   :  { %6103 = vmatpush3.msra.mxu1 %v7841_v15  ;;  %6134 = vmatprep.mubr.msk.f32.mxu1 %vm6433_vm1, %v6432_v3 }
0x2d69   :  { %6104 = vmatprep.subr.mxu1 %v6432_v3 }
0x2d6a   :  { %6105 = vmatpush3.msra.mxu1 %v7846_v49  ;;  %v5200_v6 = vpop.permute.xlu1 %5199 }
0x2d6b   :  { %6106 = vmatprep.subr.mxu1 %v6432_v3 }
0x2d6c   :  { %6107 = vmatpush3.msra.mxu1 %v7853_v10 }
0x2d6d   :  { %6108 = vmatprep.subr.mxu1 %v6432_v3 }
0x2d6e   :  { %6109 = vmatpush3.msra.mxu1 %v7860_v45  ;;  %v5234_v13 = vpop.trf.xlu1 }
0x2d6f   :  { %6110 = vmatprep.subr.mxu1 %v6432_v3 }
0x2d70   :  { %6111 = vmatpush3.msra.mxu1 %v7867_v21 }
0x2d71   :  { %6112 = vmatprep.subr.mxu1 %v6432_v3 }
0x2d72   :  { %6113 = vmatpush3.msra.mxu1 %v7874_v48  ;;  %v5235_v44 = vpop.trf.xlu1 }
0x2d73   :  { %6114 = vmatprep.subr.mxu1 %v6432_v3 }
0x2d74   :  { %6115 = vmatpush3.msra.mxu1 %v7881_v7  ;;  %v4438_v7 = vld [vmem:[%s8069_s13 + $0x8] sm:$0xff] }
0x2d75   :  { %6116 = vmatprep.subr.mxu1 %v6432_v3 }
0x2d76   :  { %6117 = vmatpush3.msra.mxu1 %v7888_v20  ;;  %v5236_v18 = vpop.trf.xlu1 }
0x2d77   :  { %6118 = vmatprep.subr.mxu1 %v6432_v3 }
0x2d78   :  { %6119 = vmatpush3.msra.mxu1 %v7895_v43  ;;  %v4440_v43 = vld [vmem:[%s8069_s13 + $0x18] sm:$0xff] }
0x2d79   :  { %6120 = vmatprep.subr.mxu1 %v6432_v3 }
0x2d7a   :  { %6121 = vmatpush3.msra.mxu1 %v7902_v54  ;;  %v4457_v54 = vld [vmem:[%s8071_s15] sm:$0x3] }
0x2d7b   :  { %6122 = vmatprep.subr.mxu1 %v6432_v3 }
0x2d7c   :  { %6123 = vmatpush3.msra.mxu1 %v7909_v2 }
0x2d7d   :  { %6124 = vmatprep.subr.mxu1 %v6432_v3 }
0x2d7e   :  { %6125 = vmatpush3.msra.mxu1 %v7916_v12 }
0x2d7f   :  { %6126 = vmatprep.subr.mxu1 %v6432_v3 }
0x2d80   :  { %6127 = vmatpush3.msra.mxu1 %v7923_v16 }
0x2d81   :  { %6128 = vmatprep.subr.mxu1 %v6432_v3 }
0x2d82   :  { %6129 = vmatpush3.msra.mxu1 %v7930_v51 }
0x2d83   :  { %6130 = vmatprep.subr.mxu1 %v6432_v3 }
0x2d84   :  { %6131 = vmatpush3.msra.mxu1 %v7937_v58 }
0x2d85   :  { %6132 = vmatprep.subr.mxu1 %v6432_v3  ;;  %v4439_v3 = vld [vmem:[%s8069_s13 + $0x10] sm:$0xff]  ;;  %s6441_s13 = smov [#allocation7]  }
0x2d86   :  { %6133 = vmatpush3.msra.mxu1 %v4441_v29  ;;  %s5267_s15 = sshll.u32 %s6441_s13, 4  ;;  %s5268_s15 = int_to_ptr.vmem [resolvable:$true] %s5267_s15 }
0x2d87   :  { %s6410_s8 = scalar_lea.vmem %s5268_s15, 512  ;;  %p6415_p1 = scmp.lt.s32.totalorder %s5268_s15, %s5268_s15 }
0x2d88   :  { %p6411_p0 = scmp.ne.s32.totalorder %s5268_s15, %s6410_s8  ;;  %p6416_p2 = scmp.lt.s32.totalorder %s6410_s8, %s6410_s8 }
0x2d8a   :  { %p6417_p3 = por %p6416_p2, %p6415_p1 }
0x2d8c   :  { %p6418_p4 = pnand %p6417_p3, %p6411_p0 }
0x2e1f   :  { %v4527_v31 = vpop.f32.mrf.mxu1 }
0x2e20   :  { %6089 = vmatmul.mubr.f32.vlgmr.msra.gmra.mxu0 %v4527_v31 }
0x2e21   :  { %v6055_v1 = vpop.f32.mrf.mxu1  ;;  %6139 = vmatprep.mubr.msk.f32.mxu0 %vm4753_vm8, %v4437_v32 }
0x2e27   :  { %v4671_v26 = vpop.f32.mrf.mxu1 }
0x2e28   :  { %6135 = vmatmul.mubr.f32.vlgmr.msra.gmra.mxu1 %v4671_v26 }
0x2e29   :  { %v6101_v28 = vpop.f32.mrf.mxu1  ;;  %6142 = vmatprep.mubr.msk.f32.mxu1 %vm4753_vm8, %v4439_v3 }
0x2ee0   :  { %v4597_v37 = vpop.f32.mrf.mxu0 }
0x2ee1   :  { %v4745_v11 = vmul.f32 0.0078125, %v4597_v37 }
0x2ee2   :  { %v6090_v9 = vpop.f32.mrf.mxu0 }
0x2ee3   :  { %v4747_v50 = vmul.f32 %v4745_v11, %v4745_v11  ;;  %v4751_v21 = vsub.f32 0.0, %v4745_v11  ;;  %v5250_v11 = vadd.f32 %v5234_v13, %v7676_v41 }
0x2ee8   :  { %v4741_v38 = vpop.f32.mrf.mxu1 }
0x2ee9   :  { %v4746_v15 = vmul.f32 0.0078125, %v4741_v38 }
0x2eea   :  { %v6136_v49 = vpop.f32.mrf.mxu1 }
0x2eeb   :  { %v4748_v10 = vsub.f32 %v4746_v15, %v4747_v50 }
0x2eed   :  { %v4749_v45 = vadd.f32 1e-05, %v4748_v10 }
0x2eef   :  { %6376 = vrsqrt.f32 %v4749_v45 }
0x2efc   :  { %v6377_v48 = vpop.eup %6376 }
0x2efd   :  { %6137 = vmatprep.subr.msk.mxu0 %vm4766_vm9, %v6377_v48  ;;  %6169 = vmatprep.subr.msk.mxu1 %vm4766_vm9, %v6377_v48  ;;  %v4752_v20 = vmul.f32 %v6377_v48, %v4751_v21 }
0x2efe   :  { %6138 = vmatpush3.msk.msra.mxu0 %vm4766_vm9, %v6377_v48  ;;  %6170 = vmatpush3.msk.msra.mxu1 %vm4766_vm9, %v6377_v48 }
0x2eff   :  { %6140 = vmatmul.mubr.msk.f32.vlgmr.msra.gmra.mxu0 %vm4753_vm8, %v4438_v7  ;;  %6153 = vmatprep.subr.msk.mxu1 %vm4766_vm9, %v4752_v20 }
0x2f00   :  { %6143 = vmatmul.mubr.msk.f32.vlgmr.msra.gmra.mxu1 %vm4753_vm8, %v4440_v43  ;;  %6145 = vmatprep.subr.msk.mxu0 %vm4868_vm10, %v4457_v54 }
0x2f01   :  { %6154 = vmatpush3.msk.msra.mxu1 %vm4766_vm9, %v4752_v20  ;;  %6155 = vmatprep.mubr.msk.f32.mxu1 %vm4753_vm8, %v4437_v32 }
0x2f02   :  { %6146 = vmatpush3.msk.msra.mxu0 %vm4868_vm10, %v4457_v54 }
0x2f03   :  { %6161 = vmatprep.subr.msk.mxu0 %vm4868_vm10, %v4457_v54 }
0x2f04   :  { %6156 = vmatmul.mubr.msk.f32.vlgmr.msra.gmra.mxu1 %vm4753_vm8, %v4438_v7  ;;  %v5252_v7 = vadd.f32 %v5236_v18, %v7680_v4 }
0x2f05   :  { %6158 = vmatprep.mubr.msk.f32.mxu1 %vm4753_vm8, %v4439_v3  ;;  %v5237_v3 = vpop.trf.xlu1 }
0x2f06   :  { %v5253_v49 = vadd.f32 %v5237_v3, %v7684_v22 }
0x2f08   :  { %6159 = vmatmul.mubr.msk.f32.gmra.mxu1 %vm4753_vm8, %v4440_v43 }
0x2fbf   :  { %v6141_v2 = vpop.f32.mrf.mxu0 }
0x2fc0   :  { %v6144_v12 = vpop.f32.mrf.mxu1 }
0x2fc1   :  { %v4836_v16 = vpop.f32.mrf.mxu0 }
0x2fc2   :  { %6147 = vmatprep.mubr.msk.f32.mxu0 %vm4855_vm11, %v4836_v16  ;;  %v4846_v51 = vpop.f32.mrf.mxu1 }
0x2fc3   :  { %6148 = vmatmul.mubr.msk.f32.vlgmr.msra.gmra.mxu0 %vm4855_vm11, %v6141_v2 }
0x2fc4   :  { %6150 = vmatprep.mubr.msk.f32.mxu0 %vm4855_vm11, %v4846_v51  ;;  %6162 = vmatpush3.msk.msra.mxu0 %vm4868_vm10, %v4457_v54  ;;  %v6157_v58 = vpop.f32.mrf.mxu1 }
0x2fc6   :  { %v5026_v33 = vpop.f32.mrf.mxu1 }
0x2fc7   :  { %6151 = vmatmul.mubr.msk.f32.gmra.mxu0 %vm4855_vm11, %v6144_v12 }
0x2fc8   :  { %6163 = vmatprep.mubr.msk.f32.mxu0 %vm4855_vm11, %v5026_v33  ;;  %v6160_v59 = vpop.f32.mrf.mxu1 }
0x2fca   :  { %v5036_v40 = vpop.f32.mrf.mxu1 }
0x2fcb   :  { %6164 = vmatmul.mubr.msk.f32.vlgmr.msra.gmra.mxu0 %vm4855_vm11, %v6157_v58 }
0x2fcc   :  { %6166 = vmatprep.mubr.msk.f32.mxu0 %vm4855_vm11, %v5036_v40 }
0x2fcf   :  { %6167 = vmatmul.mubr.msk.f32.gmra.mxu0 %vm4855_vm11, %v6160_v59 }
0x3083   :  { %v6149_v23 = vpop.f32.mrf.mxu0 }
0x3084   :  { %v5143_v55 = vmul.f32 %v6149_v23, %v7949_v19 }
0x3085   :  { %v4938_v34 = vpop.f32.mrf.mxu0 }
0x3086   :  { %v5142_v5 = vmul.f32 %v4938_v34, %v7953_v56  ;;  %v5251_v56 = vadd.f32 %v5235_v44, %v7678_v52 }
0x3087   :  { %v6152_v36 = vpop.f32.mrf.mxu0 }
0x3088   :  { %v5145_v39 = vmul.f32 %v6152_v36, %v7943_v24 }
0x3089   :  { %v4948_v53 = vpop.f32.mrf.mxu0 }
0x308a   :  { %v5144_v31 = vmul.f32 %v4948_v53, %v7945_v27 }
0x308b   :  { %v6165_v8 = vpop.f32.mrf.mxu0 }
0x308c   :  { %v5147_v63 = vadd.f32 %v6165_v8, %v5143_v55 }
0x308d   :  { %v5123_v35 = vpop.f32.mrf.mxu0 }
0x308e   :  { %v5175_v25 = vmul.f32 %v5162_v61, %v5147_v63  ;;  %v5146_v57 = vadd.f32 %v5142_v5, %v5123_v35 }
0x308f   :  { %v6168_v60 = vpop.f32.mrf.mxu0 }
0x3090   :  { %v5203_v30 = vadd.f32 %v5190_v46, %v5175_v25  ;;  %v5174_v17 = vmul.f32 %v5157_v47, %v5146_v57  ;;  %v5149_v29 = vadd.f32 %v6168_v60, %v5145_v39 }
0x3091   :  { %v5133_v1 = vpop.f32.mrf.mxu0 }
0x3092   :  { %vm5207_vm12 = vcmp.ge.f32.partialorder %v5203_v30, 0.0  ;;  %v5211_v26 = vmul.f32 0.01, %v5203_v30  ;;  %v5202_v19 = vadd.f32 %v5185_v62, %v5174_v17  ;;  %v5177_v28 = vmul.f32 %v5172_v14, %v5149_v29 }
0x3093   :  { %v5148_v32 = vadd.f32 %v5144_v31, %v5133_v1 }
0x3094   :  { %v5215_v37 = vsel %vm5207_vm12, %v5203_v30, %v5211_v26  ;;  %vm5206_vm13 = vcmp.ge.f32.partialorder %v5202_v19, 0.0  ;;  %v5210_v24 = vmul.f32 0.01, %v5202_v19  ;;  %v5205_v9 = vadd.f32 %v5200_v6, %v5177_v28 }
0x3095   :  { %v5255_v38 = vadd.f32 %v5251_v56, %v5215_v37  ;;  %v5176_v50 = vmul.f32 %v5167_v0, %v5148_v32 }
0x3096   :  { %v5214_v15 = vsel %vm5206_vm13, %v5202_v19, %v5210_v24  ;;  %vm5209_vm14 = vcmp.ge.f32.partialorder %v5205_v9, 0.0  ;;  %v5213_v27 = vmul.f32 0.01, %v5205_v9 }
0x3097   :  { %5259 = vst [vmem:[#allocation7 + $0x8] sm:$0xff] %v5255_v38  ;;  %v5254_v10 = vadd.f32 %v5250_v11, %v5214_v15  ;;  %v5204_v45 = vadd.f32 %v5195_v42, %v5176_v50 }
0x3098   :  { %v5217_v21 = vsel %vm5209_vm14, %v5205_v9, %v5213_v27 }
0x3099   :  { %5258 = vst [vmem:[#allocation7] sm:$0xff] %v5254_v10  ;;  %v5257_v52 = vadd.f32 %v5253_v49, %v5217_v21  ;;  %vm5208_vm15 = vcmp.ge.f32.partialorder %v5204_v45, 0.0  ;;  %v5212_v48 = vmul.f32 0.01, %v5204_v45 }
0x309b   :  { %5261 = vst [vmem:[#allocation7 + $0x18] sm:$0xff] %v5257_v52  ;;  %v5216_v41 = vsel %vm5208_vm15, %v5204_v45, %v5212_v48 }
0x309c   :  { %v5256_v20 = vadd.f32 %v5252_v7, %v5216_v41 }
0x309e   :  { %5260 = vst [vmem:[#allocation7 + $0x10] sm:$0xff] %v5256_v20 }
0x309f   :  { %6421 = shalt.err (!%p6418_p4)
}
0x30a0   :  { %s6442_s20 = smov 128  }
0x30a1   :  { %5273 = dma.vmem_to_hbm [thread:$0]  %s5268_s15, 512, %s8072_s16, [#allocation8], %s6442_s20, %s6442_s20, %s6437_s5  }
0x30a2   :  { %6430 = dma.done.wait [#allocation8], 512  }
0x30a3   :  { %6431 = vsyncadd [#allocation8], 4294966784 }
0x30a4   :  { %5277 = vsyncpa [#allocation8], 1 }

</bundles_post_ra>
